<compile_context>
chip_gen: v5e
topology: v5e:2x2
jax: 0.10.0
libtpu: 0.0.40
codegen_flags: <defaults>
</compile_context>

<pallas_src>
import functools
import math

import jax
import jax.numpy as jnp
from jax.experimental import pallas as pl
from jax.experimental.pallas import tpu as pltpu

D_MODEL = 256          # embedding dim (module default; lane-aligned)
VOCAB = 256            # vocabulary size (module default; multiple of 128 for MXU)
ROWS_PER_TILE = 1024   # output rows per grid step (1024x256 f32 tile = 1 MiB)


def embedding_kernel(idx_ref, lut_ref, out_ref, *, scale):
    # idx_ref: VMEM (rows, 1) int32     -- token ids for this tile
    # lut_ref: VMEM (vocab, d_model)    -- full embedding table (fetched once)
    # out_ref: VMEM (rows, d_model)     -- output tile (single full lane-dense store)
    rows = out_ref.shape[0]
    vocab = lut_ref.shape[0]
    ids = idx_ref[...]                                            # (rows, 1)
    iota = jax.lax.broadcasted_iota(jnp.int32, (rows, vocab), 1)  # (rows, vocab)
    # One-hot with the sqrt(d_model) scale folded in (exact: one nonzero per row).
    one_hot = jnp.where(iota == ids, scale, 0.0).astype(lut_ref.dtype)
    out_ref[...] = jnp.dot(
        one_hot, lut_ref[...], preferred_element_type=jnp.float32
    ).astype(out_ref.dtype)


def embeddings_forward(x, lut, *, rows_per_tile=ROWS_PER_TILE):
    """x: (B, S) int token ids; lut: (vocab, d_model) f32. Returns (B, S, d_model) f32."""
    B, S = x.shape
    vocab, d_model = lut.shape
    N = B * S
    # Clamp the tile so tiny inputs don't over-pad; keep sublane (8) alignment.
    rows = max(8, min(rows_per_tile, pl.cdiv(N, 8) * 8))
    n_steps = pl.cdiv(N, rows)
    n_pad = n_steps * rows
    scale = math.sqrt(d_model)

    ids = x.reshape(N).astype(jnp.int32)
    if n_pad != N:
        # Only the tiny int32 id vector is padded (id 0); the output is emitted at
        # its true (N, d_model) size and the ragged last tile is masked on
        # writeback, so there is no post-kernel slice copy of the output.
        ids = jnp.pad(ids, (0, n_pad - N))
    ids = ids.reshape(n_pad, 1)

    kernel = functools.partial(embedding_kernel, scale=scale)
    out_flat = pl.pallas_call(
        kernel,
        out_shape=jax.ShapeDtypeStruct((N, d_model), lut.dtype),
        grid=(n_steps,),
        in_specs=[
            pl.BlockSpec((rows, 1), lambda i: (i, 0)),            # token-id tile
            # Constant block index -> pipeline keeps the same block, no re-DMA.
            # (Single-buffering it would save 256 KiB VMEM; negligible here.)
            pl.BlockSpec((vocab, d_model), lambda i: (0, 0)),     # full table
        ],
        out_specs=pl.BlockSpec((rows, d_model), lambda i: (i, 0)),
        compiler_params=pltpu.CompilerParams(
            dimension_semantics=("parallel",),  # independent tiles; shards across v7x's 2 TCs
        ),
    )(ids, lut)
    return out_flat.reshape(B, S, d_model)


if __name__ == "__main__":
    key = jax.random.PRNGKey(0)
    k_lut, k_x1, k_x2 = jax.random.split(key, 3)

    # Deterministic parameter init: nn.Embedding weights ~ N(0, 1)
    lut = jax.random.normal(k_lut, (VOCAB, D_MODEL), dtype=jnp.float32)
    scale = math.sqrt(D_MODEL)

    # Case 1: N = 1024 -> one full 1024-row grid step, no padding.
    B1, S1 = 2, 512
    x1 = jax.random.randint(k_x1, (B1, S1), 0, VOCAB, dtype=jnp.int32)
    out1 = jax.block_until_ready(embeddings_forward(x1, lut))
    ref1 = jnp.take(lut, x1, axis=0) * scale
    assert out1.shape == (B1, S1, D_MODEL)
    assert jnp.allclose(out1, ref1, atol=1e-4, rtol=1e-5), "case1 mismatch vs reference"

    # Case 2: N = 1200 -> 2 grid steps, ragged last output tile (masked writeback,
    # no post-kernel slice copy).
    B2, S2 = 2, 600
    x2 = jax.random.randint(k_x2, (B2, S2), 0, VOCAB, dtype=jnp.int32)
    out2 = jax.block_until_ready(embeddings_forward(x2, lut))
    ref2 = jnp.take(lut, x2, axis=0) * scale
    assert out2.shape == (B2, S2, D_MODEL)
    assert jnp.allclose(out2, ref2, atol=1e-4, rtol=1e-5), "case2 mismatch vs reference"

    # NOTE: for performance measurements use realistic token counts (B*S >= 16K)
    # and min-of-N xprof timings; these small shapes only validate correctness.
    print("KERNEL_OK")
</pallas_src>

<mosaic_0001>
module attributes {stable_mosaic.version = 11 : i64} {
  func.func @embedding_kernel(%arg0: i32, %arg1: memref<1024x1xi32, #tpu.memory_space<vmem>>, %arg2: memref<256x256xf32, #tpu.memory_space<vmem>>, %arg3: memref<1024x256xf32, #tpu.memory_space<vmem>>) attributes {dimension_semantics = [#tpu.dimension_semantics<parallel>], iteration_bounds = array<i64: 1>, scalar_prefetch = 0 : i64, scratch_operands = 0 : i64, tpu.core_type = #tpu.core_type<tc>, window_params = [{transform_indices = @transform_0, window_bounds = array<i64: 1024, 1>}, {pipeline_mode = #tpu.pipeline_mode<synchronous>, transform_indices = @transform_1, window_bounds = array<i64: 256, 256>}, {transform_indices = @transform_2, window_bounds = array<i64: 1024, 256>}]} {
    %c0 = arith.constant 0 : index
    %c0_0 = arith.constant 0 : index
    %0 = vector.load %arg1[%c0, %c0_0] : memref<1024x1xi32, #tpu.memory_space<vmem>>, vector<1024x1xi32>
    %1 = tpu.iota {dimensions = array<i32: 1>} : vector<1024x256xi32>
    %2 = vector.broadcast %0 : vector<1024x1xi32> to vector<1024x256xi32>
    %3 = arith.cmpi eq, %1, %2 : vector<1024x256xi32>
    %cst = arith.constant 1.600000e+01 : f32
    %cst_1 = arith.constant 0.000000e+00 : f32
    %4 = vector.broadcast %cst : f32 to vector<1024x256xf32>
    %5 = vector.broadcast %cst_1 : f32 to vector<1024x256xf32>
    %6 = arith.select %3, %4, %5 : vector<1024x256xi1>, vector<1024x256xf32>
    %c0_2 = arith.constant 0 : index
    %c0_3 = arith.constant 0 : index
    %7 = vector.load %arg2[%c0_2, %c0_3] : memref<256x256xf32, #tpu.memory_space<vmem>>, vector<256x256xf32>
    %cst_4 = arith.constant dense<0.000000e+00> : vector<1024x256xf32>
    %8 = tpu.matmul %6, %7, %cst_4 {dimension_numbers = #tpu.dot_dimension_numbers<[1], [0], [0], [1], [0, 0, 1, 1], [], []>} : vector<1024x256xf32>, vector<256x256xf32>, vector<1024x256xf32> -> vector<1024x256xf32>
    %c0_5 = arith.constant 0 : index
    %c0_6 = arith.constant 0 : index
    %9 = vector.load %arg3[%c0_5, %c0_6] : memref<1024x256xf32, #tpu.memory_space<vmem>>, vector<1024x256xf32>
    tpu.vector_store %arg3[%c0_5, %c0_6], %8 {strides = array<i32>} : memref<1024x256xf32, #tpu.memory_space<vmem>>, vector<1024x256xf32>,
    return
  }
  func.func @transform_0(%arg0: i32) -> (i32, i32) {
    %c0_i32 = arith.constant 0 : i32
    %c0_i32_0 = arith.constant 0 : i32
    return %arg0, %c0_i32 : i32, i32
  }
  func.func @transform_1(%arg0: i32) -> (i32, i32) {
    %c0_i32 = arith.constant 0 : i32
    %c0_i32_0 = arith.constant 0 : i32
    %c0_i32_1 = arith.constant 0 : i32
    return %c0_i32, %c0_i32_0 : i32, i32
  }
  func.func @transform_2(%arg0: i32) -> (i32, i32) {
    %c0_i32 = arith.constant 0 : i32
    %c0_i32_0 = arith.constant 0 : i32
    return %arg0, %c0_i32 : i32, i32
  }
}

</mosaic_0001>

<bundles_post_ra>
// kernel: tpu_custom_call.1
= control target key start
LH: loop header
LB: loop body
LE: loop exit
PB: predicated region body
PF: predicated region fallthrough
CT: control target
= control target key end

     0   :  { %v3527_v3 = vmov 0   ;;  %s4899_s0 = inlined_call_operand.vmem [shape: s32[1024,1], index: 0, kind: input, shape index: {}]   ;;  %s4900_s1 = inlined_call_operand.vmem [shape: f32[256,256], index: 1, kind: input, shape index: {}]   ;;  %s4901_s2 = inlined_call_operand.hbm [shape: f32[1024,256], index: 2, kind: output, shape index: {}]  }
   0x1   :  { %v16_v0 = vld [vmem:[%s4899_s0 + $0x20] sm:$0xff]  ;;  %v14_v1 = vld [vmem:[%s4899_s0 + $0x10] sm:$0xff]  ;;  %3500 = vset.pattern.permute.xlu2 %v3527_v3  ;;  %3499 = vset.pattern.permute.xlu1 %v3527_v3 }
   0x2   :  { %v12_v2 = vld [vmem:[%s4899_s0] sm:$0xff]  ;;  %3498 = vset.pattern.permute.xlu0 %v3527_v3  ;;  %156 = vperm.xlu2 %3500, %v16_v0  }
   0x3   :  { %150 = vperm.xlu1 %3499, %v14_v1   ;;  %144 = vperm.xlu0 %3498, %v12_v2  }
   0x4   :  { %7 = vsyncpa [#allocation3], 0  ;;  %v17_v4 = vld [vmem:[%s4899_s0 + $0x28] sm:$0xff]  ;;  %v15_v5 = vld [vmem:[%s4899_s0 + $0x18] sm:$0xff]  ;;  %s2969_s25 = sshll.u32 %s4901_s2, 4  ;;  %s3530_s26 = smov 256   ;;  %s2970_s25 = int_to_ptr.hbm [resolvable:$true] %s2969_s25 }
   0x5   :  { %v13_v6 = vld [vmem:[%s4899_s0 + $0x8] sm:$0xff]  ;;  %v20_v7 = vld [vmem:[%s4899_s0 + $0x40] sm:$0xff]  ;;  %v19_v8 = vld [vmem:[%s4899_s0 + $0x38] sm:$0xff]  ;;  %s3531_s27 = smov 16  }
   0x6   :  { %v18_v9 = vld [vmem:[%s4899_s0 + $0x30] sm:$0xff]  ;;  %v23_v10 = vld [vmem:[%s4899_s0 + $0x58] sm:$0xff]  ;;  %v21_v12 = vld [vmem:[%s4899_s0 + $0x48] sm:$0xff] }
   0x7   :  { %v22_v11 = vld [vmem:[%s4899_s0 + $0x50] sm:$0xff]  ;;  %v25_v14 = vld [vmem:[%s4899_s0 + $0x68] sm:$0xff]  ;;  %v24_v15 = vld [vmem:[%s4899_s0 + $0x60] sm:$0xff] }
   0x8   :  { %v26_v13 = vld [vmem:[%s4899_s0 + $0x70] sm:$0xff]  ;;  %v29_v16 = vld [vmem:[%s4899_s0 + $0x88] sm:$0xff]  ;;  %v28_v17 = vld [vmem:[%s4899_s0 + $0x80] sm:$0xff] }
   0x9   :  { %v27_v18 = vld [vmem:[%s4899_s0 + $0x78] sm:$0xff]  ;;  %v32_v19 = vld [vmem:[%s4899_s0 + $0xa0] sm:$0xff]  ;;  %v30_v21 = vld [vmem:[%s4899_s0 + $0x90] sm:$0xff] }
   0xa   :  { %159 = vperm.xlu2 %3500, %v17_v4   ;;  %v31_v20 = vld [vmem:[%s4899_s0 + $0x98] sm:$0xff]  ;;  %v1069_v22 = vld [vmem:[%s4900_s1 + $0xf0] sm:$0xff]  ;;  %v1067_v26 = vld [vmem:[%s4900_s1 + $0xe0] sm:$0xff] }
   0xb   :  { %153 = vperm.xlu1 %3499, %v15_v5   ;;  %147 = vperm.xlu0 %3498, %v13_v6   ;;  %v1101_v23 = vld [vmem:[%s4900_s1 + $0x1f0] sm:$0xff]  ;;  %v1070_v24 = vld [vmem:[%s4900_s1 + $0xf8] sm:$0xff]  ;;  %v1099_v27 = vld [vmem:[%s4900_s1 + $0x1e0] sm:$0xff] }
   0xc   :  { %1103 = vmatpush.msra.mxu0 %v1069_v22  ;;  %1504 = vmatpush.msra.mxu1 %v1101_v23  ;;  %v1102_v25 = vld [vmem:[%s4900_s1 + $0x1f8] sm:$0xff]  ;;  %v1068_v28 = vld [vmem:[%s4900_s1 + $0xe8] sm:$0xff]  ;;  %v34_v31 = vld [vmem:[%s4899_s0 + $0xb0] sm:$0xff] }
   0xd   :  { %1905 = vmatpush.msra.mxu2 %v1070_v24  ;;  %2306 = vmatpush.msra.mxu3 %v1102_v25  ;;  %v1100_v29 = vld [vmem:[%s4900_s1 + $0x1e8] sm:$0xff]  ;;  %v35_v30 = vld [vmem:[%s4899_s0 + $0xb8] sm:$0xff]  ;;  %v1065_v33 = vld [vmem:[%s4900_s1 + $0xd0] sm:$0xff] }
   0xe   :  { %1104 = vmatpush.msra.mxu0 %v1067_v26  ;;  %1505 = vmatpush.msra.mxu1 %v1099_v27  ;;  %v33_v32 = vld [vmem:[%s4899_s0 + $0xa8] sm:$0xff]  ;;  %v1097_v34 = vld [vmem:[%s4900_s1 + $0x1d0] sm:$0xff]  ;;  %v1066_v35 = vld [vmem:[%s4900_s1 + $0xd8] sm:$0xff] }
   0xf   :  { %1906 = vmatpush.msra.mxu2 %v1068_v28  ;;  %2307 = vmatpush.msra.mxu3 %v1100_v29  ;;  %v1098_v36 = vld [vmem:[%s4900_s1 + $0x1d8] sm:$0xff]  ;;  %v1063_v37 = vld [vmem:[%s4900_s1 + $0xc0] sm:$0xff]  ;;  %v1064_v39 = vld [vmem:[%s4900_s1 + $0xc8] sm:$0xff] }
  0x10   :  { %1105 = vmatpush.msra.mxu0 %v1065_v33  ;;  %1506 = vmatpush.msra.mxu1 %v1097_v34  ;;  %v1095_v38 = vld [vmem:[%s4900_s1 + $0x1c0] sm:$0xff]  ;;  %v1096_v40 = vld [vmem:[%s4900_s1 + $0x1c8] sm:$0xff]  ;;  %v1061_v41 = vld [vmem:[%s4900_s1 + $0xb0] sm:$0xff] }
  0x11   :  { %1907 = vmatpush.msra.mxu2 %v1066_v35  ;;  %2308 = vmatpush.msra.mxu3 %v1098_v36  ;;  %v1093_v42 = vld [vmem:[%s4900_s1 + $0x1b0] sm:$0xff]  ;;  %v1062_v43 = vld [vmem:[%s4900_s1 + $0xb8] sm:$0xff]  ;;  %v1059_v46 = vld [vmem:[%s4900_s1 + $0xa0] sm:$0xff] }
  0x12   :  { %168 = vperm.xlu2 %3500, %v20_v7   ;;  %1106 = vmatpush.msra.mxu0 %v1063_v37  ;;  %v1094_v44 = vld [vmem:[%s4900_s1 + $0x1b8] sm:$0xff]  ;;  %v38_v45 = vld [vmem:[%s4899_s0 + $0xd0] sm:$0xff]  ;;  %v37_v47 = vld [vmem:[%s4899_s0 + $0xc8] sm:$0xff] }
  0x13   :  { %165 = vperm.xlu1 %3499, %v19_v8   ;;  %162 = vperm.xlu0 %3498, %v18_v9   ;;  %v36_v48 = vld [vmem:[%s4899_s0 + $0xc0] sm:$0xff]  ;;  %v1060_v50 = vld [vmem:[%s4900_s1 + $0xa8] sm:$0xff]  ;;  %v1057_v52 = vld [vmem:[%s4900_s1 + $0x90] sm:$0xff] }
  0x14   :  { %1507 = vmatpush.msra.mxu1 %v1095_v38  ;;  %1908 = vmatpush.msra.mxu2 %v1064_v39  ;;  %v1091_v49 = vld [vmem:[%s4900_s1 + $0x1a0] sm:$0xff]  ;;  %v1092_v51 = vld [vmem:[%s4900_s1 + $0x1a8] sm:$0xff]  ;;  %v1089_v53 = vld [vmem:[%s4900_s1 + $0x190] sm:$0xff] }
  0x15   :  { %2309 = vmatpush.msra.mxu3 %v1096_v40  ;;  %1107 = vmatpush.msra.mxu0 %v1061_v41  ;;  %v1058_v54 = vld [vmem:[%s4900_s1 + $0x98] sm:$0xff]  ;;  %v1055_v56 = vld [vmem:[%s4900_s1 + $0x80] sm:$0xff]  ;;  %v1056_v58 = vld [vmem:[%s4900_s1 + $0x88] sm:$0xff] }
  0x16   :  { %1508 = vmatpush.msra.mxu1 %v1093_v42  ;;  %1909 = vmatpush.msra.mxu2 %v1062_v43  ;;  %v1090_v55 = vld [vmem:[%s4900_s1 + $0x198] sm:$0xff]  ;;  %v1087_v57 = vld [vmem:[%s4900_s1 + $0x180] sm:$0xff]  ;;  %v1088_v59 = vld [vmem:[%s4900_s1 + $0x188] sm:$0xff]  ;;  %v140_v43 = vlaneseq }
  0x17   :  { %2310 = vmatpush.msra.mxu3 %v1094_v44  ;;  %1108 = vmatpush.msra.mxu0 %v1059_v46  ;;  %v1053_v60 = vld [vmem:[%s4900_s1 + $0x70] sm:$0xff]  ;;  %v41_v61 = vld [vmem:[%s4899_s0 + $0xe8] sm:$0xff]  ;;  %v40_v63 = vld [vmem:[%s4899_s0 + $0xe0] sm:$0xff] }
  0x18   :  { %1509 = vmatpush.msra.mxu1 %v1091_v49  ;;  %1910 = vmatpush.msra.mxu2 %v1060_v50  ;;  %v1085_v62 = vld [vmem:[%s4900_s1 + $0x170] sm:$0xff]  ;;  %v39_v0 = vld [vmem:[%s4899_s0 + $0xd8] sm:$0xff]  ;;  %v1051_v3 = vld [vmem:[%s4900_s1 + $0x60] sm:$0xff]  ;;  %v3865_v44 = vand.u32 127, %v140_v43  ;;  %v3528_v50 = vmov 16.0  }
  0x19   :  { %2311 = vmatpush.msra.mxu3 %v1092_v51  ;;  %1109 = vmatpush.msra.mxu0 %v1057_v52  ;;  %v1054_v1 = vld [vmem:[%s4900_s1 + $0x78] sm:$0xff]  ;;  %v1083_v4 = vld [vmem:[%s4900_s1 + $0x160] sm:$0xff]  ;;  %v1052_v5 = vld [vmem:[%s4900_s1 + $0x68] sm:$0xff] }
  0x1a   :  { %177 = vperm.xlu2 %3500, %v23_v10   ;;  %1510 = vmatpush.msra.mxu1 %v1089_v53  ;;  %v1086_v2 = vld [vmem:[%s4900_s1 + $0x178] sm:$0xff]  ;;  %v1084_v6 = vld [vmem:[%s4900_s1 + $0x168] sm:$0xff]  ;;  %v1049_v7 = vld [vmem:[%s4900_s1 + $0x50] sm:$0xff] }
  0x1b   :  { %174 = vperm.xlu1 %3499, %v22_v11   ;;  %171 = vperm.xlu0 %3498, %v21_v12   ;;  %v1081_v8 = vld [vmem:[%s4900_s1 + $0x150] sm:$0xff]  ;;  %v1050_v9 = vld [vmem:[%s4900_s1 + $0x58] sm:$0xff]  ;;  %v1047_v11 = vld [vmem:[%s4900_s1 + $0x40] sm:$0xff] }
  0x1c   :  { %1911 = vmatpush.msra.mxu2 %v1058_v54  ;;  %2312 = vmatpush.msra.mxu3 %v1090_v55  ;;  %v1082_v10 = vld [vmem:[%s4900_s1 + $0x158] sm:$0xff]  ;;  %v1079_v12 = vld [vmem:[%s4900_s1 + $0x140] sm:$0xff]  ;;  %v1044_v24 = vld [vmem:[%s4900_s1 + $0x28] sm:$0xff] }
  0x1d   :  { %1110 = vmatpush.msra.mxu0 %v1055_v56  ;;  %1511 = vmatpush.msra.mxu1 %v1087_v57  ;;  %v1043_v22 = vld [vmem:[%s4900_s1 + $0x20] sm:$0xff]  ;;  %v1076_v25 = vld [vmem:[%s4900_s1 + $0x128] sm:$0xff]  ;;  %v1041_v26 = vld [vmem:[%s4900_s1 + $0x10] sm:$0xff] }
  0x1e   :  { %1912 = vmatpush.msra.mxu2 %v1056_v58  ;;  %2313 = vmatpush.msra.mxu3 %v1088_v59  ;;  %v1075_v23 = vld [vmem:[%s4900_s1 + $0x120] sm:$0xff]  ;;  %v1073_v27 = vld [vmem:[%s4900_s1 + $0x110] sm:$0xff]  ;;  %v1042_v28 = vld [vmem:[%s4900_s1 + $0x18] sm:$0xff] }
  0x1f   :  { %1111 = vmatpush.msra.mxu0 %v1053_v60  ;;  %1512 = vmatpush.msra.mxu1 %v1085_v62  ;;  %v47_v29 = vld [vmem:[%s4899_s0 + $0x118] sm:$0xff]  ;;  %v1039_v33 = vld [vmem:[%s4900_s1] sm:$0xff]  ;;  %v1040_v35 = vld [vmem:[%s4900_s1 + $0x8] sm:$0xff] }
  0x20   :  { %1913 = vmatpush.msra.mxu2 %v1054_v1  ;;  %2314 = vmatpush.msra.mxu3 %v1086_v2  ;;  %v1071_v34 = vld [vmem:[%s4900_s1 + $0x100] sm:$0xff]  ;;  %v1072_v36 = vld [vmem:[%s4900_s1 + $0x108] sm:$0xff]  ;;  %v50_v37 = vld [vmem:[%s4899_s0 + $0x130] sm:$0xff] }
  0x21   :  { %1112 = vmatpush.msra.mxu0 %v1051_v3  ;;  %1513 = vmatpush.msra.mxu1 %v1083_v4  ;;  %v49_v38 = vld [vmem:[%s4899_s0 + $0x128] sm:$0xff]  ;;  %v48_v39 = vld [vmem:[%s4899_s0 + $0x120] sm:$0xff]  ;;  %v51_v42 = vld [vmem:[%s4899_s0 + $0x138] sm:$0xff] }
  0x22   :  { %186 = vperm.xlu2 %3500, %v26_v13   ;;  %1914 = vmatpush.msra.mxu2 %v1052_v5  ;;  %v44_v13 = vld [vmem:[%s4899_s0 + $0x100] sm:$0xff]  ;;  %v53_v40 = vld [vmem:[%s4899_s0 + $0x148] sm:$0xff]  ;;  %v55_v46 = vld [vmem:[%s4899_s0 + $0x158] sm:$0xff] }
  0x23   :  { %183 = vperm.xlu1 %3499, %v25_v14   ;;  %180 = vperm.xlu0 %3498, %v24_v15   ;;  %v1048_v14 = vld [vmem:[%s4900_s1 + $0x48] sm:$0xff]  ;;  %v43_v15 = vld [vmem:[%s4899_s0 + $0xf8] sm:$0xff]  ;;  %v52_v41 = vld [vmem:[%s4899_s0 + $0x140] sm:$0xff] }
  0x24   :  { %2315 = vmatpush.msra.mxu3 %v1084_v6  ;;  %1113 = vmatpush.msra.mxu0 %v1049_v7  ;;  %v59_v51 = vld [vmem:[%s4899_s0 + $0x178] sm:$0xff]  ;;  %v58_v52 = vld [vmem:[%s4899_s0 + $0x170] sm:$0xff]  ;;  %v57_v53 = vld [vmem:[%s4899_s0 + $0x168] sm:$0xff] }
  0x25   :  { %1514 = vmatpush.msra.mxu1 %v1081_v8  ;;  %1915 = vmatpush.msra.mxu2 %v1050_v9  ;;  %v62_v55 = vld [vmem:[%s4899_s0 + $0x190] sm:$0xff]  ;;  %v61_v56 = vld [vmem:[%s4899_s0 + $0x188] sm:$0xff]  ;;  %v60_v57 = vld [vmem:[%s4899_s0 + $0x180] sm:$0xff] }
  0x26   :  { %2316 = vmatpush.msra.mxu3 %v1082_v10  ;;  %1114 = vmatpush.msra.mxu0 %v1047_v11  ;;  %v65_v59 = vld [vmem:[%s4899_s0 + $0x1a8] sm:$0xff]  ;;  %v64_v60 = vld [vmem:[%s4899_s0 + $0x1a0] sm:$0xff]  ;;  %v66_v1 = vld [vmem:[%s4899_s0 + $0x1b0] sm:$0xff] }
  0x27   :  { %1515 = vmatpush.msra.mxu1 %v1079_v12  ;;  %1916 = vmatpush.msra.mxu2 %v1048_v14  ;;  %v71_v3 = vld [vmem:[%s4899_s0 + $0x1d8] sm:$0xff]  ;;  %v70_v4 = vld [vmem:[%s4899_s0 + $0x1d0] sm:$0xff]  ;;  %v69_v5 = vld [vmem:[%s4899_s0 + $0x1c8] sm:$0xff] }
  0x28   :  { %v74_v7 = vld [vmem:[%s4899_s0 + $0x1f0] sm:$0xff]  ;;  %v73_v8 = vld [vmem:[%s4899_s0 + $0x1e8] sm:$0xff]  ;;  %v72_v9 = vld [vmem:[%s4899_s0 + $0x1e0] sm:$0xff] }
  0x29   :  { %v77_v11 = vld [vmem:[%s4899_s0 + $0x208] sm:$0xff]  ;;  %v76_v12 = vld [vmem:[%s4899_s0 + $0x200] sm:$0xff] }
  0x2a   :  { %195 = vperm.xlu2 %3500, %v29_v16   ;;  %v42_v16 = vld [vmem:[%s4899_s0 + $0xf0] sm:$0xff]  ;;  %v101_v43 = vld [vmem:[%s4899_s0 + $0x2c8] sm:$0xff] }
  0x2b   :  { %192 = vperm.xlu1 %3499, %v28_v17   ;;  %189 = vperm.xlu0 %3498, %v27_v18   ;;  %v1080_v17 = vld [vmem:[%s4900_s1 + $0x148] sm:$0xff]  ;;  %v1045_v18 = vld [vmem:[%s4900_s1 + $0x30] sm:$0xff] }
  0x2c   :  { %2317 = vmatpush.msra.mxu3 %v1080_v17  ;;  %1115 = vmatpush.msra.mxu0 %v1045_v18  ;;  %v78_v17 = vld [vmem:[%s4899_s0 + $0x210] sm:$0xff] }
  0x2e   :  { %1116 = vmatpush.msra.mxu0 %v1043_v22 }
  0x30   :  { %1117 = vmatpush.msra.mxu0 %v1041_v26 }
  0x32   :  { %204 = vperm.xlu2 %3500, %v32_v19   ;;  %v1077_v19 = vld [vmem:[%s4900_s1 + $0x130] sm:$0xff]  ;;  %1118 = vmatpush.msra.mxu0 %v1039_v33 }
  0x33   :  { %201 = vperm.xlu1 %3499, %v31_v20   ;;  %198 = vperm.xlu0 %3498, %v30_v21   ;;  %v1046_v20 = vld [vmem:[%s4900_s1 + $0x38] sm:$0xff]  ;;  %v90_v33 = vld [vmem:[%s4899_s0 + $0x270] sm:$0xff] }
  0x34   :  { %v1078_v21 = vld [vmem:[%s4900_s1 + $0x138] sm:$0xff]  ;;  %1516 = vmatpush.msra.mxu1 %v1077_v19  ;;  %1917 = vmatpush.msra.mxu2 %v1046_v20  ;;  %v82_v20 = vld [vmem:[%s4899_s0 + $0x230] sm:$0xff] }
  0x35   :  { %2318 = vmatpush.msra.mxu3 %v1078_v21  ;;  %v83_v19 = vld [vmem:[%s4899_s0 + $0x238] sm:$0xff]  ;;  %v81_v21 = vld [vmem:[%s4899_s0 + $0x228] sm:$0xff] }
  0x36   :  { %1517 = vmatpush.msra.mxu1 %v1075_v23  ;;  %1918 = vmatpush.msra.mxu2 %v1044_v24  ;;  %v86_v23 = vld [vmem:[%s4899_s0 + $0x250] sm:$0xff]  ;;  %v85_v24 = vld [vmem:[%s4899_s0 + $0x248] sm:$0xff] }
  0x37   :  { %2319 = vmatpush.msra.mxu3 %v1076_v25  ;;  %v84_v25 = vld [vmem:[%s4899_s0 + $0x240] sm:$0xff] }
  0x38   :  { %1518 = vmatpush.msra.mxu1 %v1073_v27  ;;  %1919 = vmatpush.msra.mxu2 %v1042_v28  ;;  %v89_v27 = vld [vmem:[%s4899_s0 + $0x268] sm:$0xff]  ;;  %v88_v28 = vld [vmem:[%s4899_s0 + $0x260] sm:$0xff] }
  0x3a   :  { %213 = vperm.xlu2 %3500, %v35_v30   ;;  %v1074_v30 = vld [vmem:[%s4900_s1 + $0x118] sm:$0xff]  ;;  %1519 = vmatpush.msra.mxu1 %v1071_v34 }
  0x3b   :  { %210 = vperm.xlu1 %3499, %v34_v31   ;;  %207 = vperm.xlu0 %3498, %v33_v32   ;;  %v46_v31 = vld [vmem:[%s4899_s0 + $0x110] sm:$0xff]  ;;  %v45_v32 = vld [vmem:[%s4899_s0 + $0x108] sm:$0xff] }
  0x3c   :  { %2320 = vmatpush.msra.mxu3 %v1074_v30  ;;  %1920 = vmatpush.msra.mxu2 %v1040_v35  ;;  %v95_v35 = vld [vmem:[%s4899_s0 + $0x298] sm:$0xff] }
  0x3e   :  { %2321 = vmatpush.msra.mxu3 %v1072_v36  ;;  %v94_v36 = vld [vmem:[%s4899_s0 + $0x290] sm:$0xff] }
  0x42   :  { %222 = vperm.xlu2 %3500, %v38_v45   ;;  %v56_v45 = vld [vmem:[%s4899_s0 + $0x160] sm:$0xff] }
  0x43   :  { %219 = vperm.xlu1 %3499, %v37_v47   ;;  %216 = vperm.xlu0 %3498, %v36_v48   ;;  %v54_v47 = vld [vmem:[%s4899_s0 + $0x150] sm:$0xff]  ;;  %v3877_v48 = vadd.s32 128, %v3865_v44 }
  0x4a   :  { %231 = vperm.xlu2 %3500, %v41_v61   ;;  %v63_v61 = vld [vmem:[%s4899_s0 + $0x198] sm:$0xff] }
  0x4b   :  { %228 = vperm.xlu1 %3499, %v40_v63   ;;  %225 = vperm.xlu0 %3498, %v39_v0   ;;  %v68_v63 = vld [vmem:[%s4899_s0 + $0x1c0] sm:$0xff]  ;;  %v67_v0 = vld [vmem:[%s4899_s0 + $0x1b8] sm:$0xff] }
  0x52   :  { %240 = vperm.xlu2 %3500, %v44_v13   ;;  %v75_v13 = vld [vmem:[%s4899_s0 + $0x1f8] sm:$0xff] }
  0x53   :  { %237 = vperm.xlu1 %3499, %v43_v15   ;;  %234 = vperm.xlu0 %3498, %v42_v16   ;;  %v80_v15 = vld [vmem:[%s4899_s0 + $0x220] sm:$0xff]  ;;  %v79_v16 = vld [vmem:[%s4899_s0 + $0x218] sm:$0xff] }
  0x5a   :  { %249 = vperm.xlu2 %3500, %v47_v29   ;;  %v87_v29 = vld [vmem:[%s4899_s0 + $0x258] sm:$0xff] }
  0x5b   :  { %246 = vperm.xlu1 %3499, %v46_v31   ;;  %243 = vperm.xlu0 %3498, %v45_v32   ;;  %v92_v31 = vld [vmem:[%s4899_s0 + $0x280] sm:$0xff]  ;;  %v91_v32 = vld [vmem:[%s4899_s0 + $0x278] sm:$0xff] }
  0x5c   :  { %v157_v2 = vpop.permute.xlu2 %156 }
  0x5d   :  { %vm535_vm8 = vcmp.eq.s32.totalorder %v3865_v44, %v157_v2  ;;  %vm536_vm9 = vcmp.eq.s32.totalorder %v3877_v48, %v157_v2 }
  0x62   :  { %258 = vperm.xlu2 %3500, %v50_v37   ;;  %v93_v37 = vld [vmem:[%s4899_s0 + $0x288] sm:$0xff] }
  0x63   :  { %255 = vperm.xlu1 %3499, %v49_v38   ;;  %252 = vperm.xlu0 %3498, %v48_v39   ;;  %v98_v39 = vld [vmem:[%s4899_s0 + $0x2b0] sm:$0xff] }
  0x64   :  { %v160_v6 = vpop.permute.xlu2 %159 }
  0x65   :  { %vm537_vm10 = vcmp.eq.s32.totalorder %v3865_v44, %v160_v6  ;;  %vm538_vm11 = vcmp.eq.s32.totalorder %v3877_v48, %v160_v6 }
  0x6a   :  { %267 = vperm.xlu2 %3500, %v53_v40   ;;  %v97_v40 = vld [vmem:[%s4899_s0 + $0x2a8] sm:$0xff] }
  0x6b   :  { %264 = vperm.xlu1 %3499, %v52_v41   ;;  %261 = vperm.xlu0 %3498, %v51_v42   ;;  %v96_v41 = vld [vmem:[%s4899_s0 + $0x2a0] sm:$0xff] }
  0x6c   :  { %v169_v18 = vpop.permute.xlu2 %168 }
  0x72   :  { %276 = vperm.xlu2 %3500, %v56_v45   ;;  %v100_v45 = vld [vmem:[%s4899_s0 + $0x2c0] sm:$0xff] }
  0x73   :  { %273 = vperm.xlu1 %3499, %v55_v46   ;;  %270 = vperm.xlu0 %3498, %v54_v47   ;;  %v99_v46 = vld [vmem:[%s4899_s0 + $0x2b8] sm:$0xff] }
  0x74   :  { %v178_v30 = vpop.permute.xlu2 %177 }
  0x75   :  { %v145_v49 = vpop.permute.xlu0 %144  ;;  %v151_v58 = vpop.permute.xlu1 %150 }
  0x76   :  { %vm527_vm0 = vcmp.eq.s32.totalorder %v3865_v44, %v145_v49  ;;  %vm528_vm1 = vcmp.eq.s32.totalorder %v3877_v48, %v145_v49  ;;  %vm531_vm4 = vcmp.eq.s32.totalorder %v3865_v44, %v151_v58  ;;  %vm532_vm5 = vcmp.eq.s32.totalorder %v3877_v48, %v151_v58  ;;  %v104_v49 = vld [vmem:[%s4899_s0 + $0x2e0] sm:$0xff]  ;;  %v106_v58 = vld [vmem:[%s4899_s0 + $0x2f0] sm:$0xff] }
  0x77   :  { %2981 = vmatmul.msk.f32.vlgmr.msra.gmra.mxu0 %vm527_vm0, %v3528_v50  ;;  %3109 = vmatmul.msk.f32.vlgmr.msra.gmra.mxu1 %vm528_vm1, %v3528_v50 }
  0x78   :  { %3237 = vmatmul.msk.f32.vlgmr.msra.gmra.mxu2 %vm527_vm0, %v3528_v50  ;;  %3365 = vmatmul.msk.f32.vlgmr.msra.gmra.mxu3 %vm528_vm1, %v3528_v50  ;;  %vm543_vm0 = vcmp.eq.s32.totalorder %v3865_v44, %v169_v18  ;;  %vm544_vm1 = vcmp.eq.s32.totalorder %v3877_v48, %v169_v18 }
  0x7a   :  { %285 = vperm.xlu2 %3500, %v59_v51   ;;  %v103_v51 = vld [vmem:[%s4899_s0 + $0x2d8] sm:$0xff] }
  0x7b   :  { %282 = vperm.xlu1 %3499, %v58_v52   ;;  %279 = vperm.xlu0 %3498, %v57_v53   ;;  %v102_v52 = vld [vmem:[%s4899_s0 + $0x2d0] sm:$0xff] }
  0x7c   :  { %v187_v42 = vpop.permute.xlu2 %186 }
  0x7d   :  { %v148_v54 = vpop.permute.xlu0 %147  ;;  %v154_v62 = vpop.permute.xlu1 %153 }
  0x7e   :  { %vm529_vm2 = vcmp.eq.s32.totalorder %v3865_v44, %v148_v54  ;;  %vm530_vm3 = vcmp.eq.s32.totalorder %v3877_v48, %v148_v54  ;;  %vm533_vm6 = vcmp.eq.s32.totalorder %v3865_v44, %v154_v62  ;;  %vm534_vm7 = vcmp.eq.s32.totalorder %v3877_v48, %v154_v62 }
  0x7f   :  { %2982 = vmatmul.msk.f32.gmra.mxu0 %vm529_vm2, %v3528_v50  ;;  %3110 = vmatmul.msk.f32.gmra.mxu1 %vm530_vm3, %v3528_v50 }
  0x80   :  { %3238 = vmatmul.msk.f32.gmra.mxu2 %vm529_vm2, %v3528_v50  ;;  %3366 = vmatmul.msk.f32.gmra.mxu3 %vm530_vm3, %v3528_v50 }
  0x82   :  { %294 = vperm.xlu2 %3500, %v62_v55  }
  0x83   :  { %291 = vperm.xlu1 %3499, %v61_v56   ;;  %288 = vperm.xlu0 %3498, %v60_v57   ;;  %v107_v57 = vld [vmem:[%s4899_s0 + $0x2f8] sm:$0xff] }
  0x85   :  { %v163_v10 = vpop.permute.xlu0 %162  ;;  %v166_v14 = vpop.permute.xlu1 %165 }
  0x86   :  { %vm539_vm12 = vcmp.eq.s32.totalorder %v3865_v44, %v163_v10  ;;  %vm540_vm13 = vcmp.eq.s32.totalorder %v3877_v48, %v163_v10  ;;  %vm541_vm14 = vcmp.eq.s32.totalorder %v3865_v44, %v166_v14  ;;  %vm542_vm15 = vcmp.eq.s32.totalorder %v3877_v48, %v166_v14  ;;  %v112_v14 = vld [vmem:[%s4899_s0 + $0x320] sm:$0xff] }
  0x87   :  { %2983 = vmatmul.msk.f32.gmra.mxu0 %vm531_vm4, %v3528_v50  ;;  %3111 = vmatmul.msk.f32.gmra.mxu1 %vm532_vm5, %v3528_v50 }
  0x88   :  { %3239 = vmatmul.msk.f32.gmra.mxu2 %vm531_vm4, %v3528_v50  ;;  %3367 = vmatmul.msk.f32.gmra.mxu3 %vm532_vm5, %v3528_v50 }
  0x8a   :  { %303 = vperm.xlu2 %3500, %v65_v59   ;;  %v105_v59 = vld [vmem:[%s4899_s0 + $0x2e8] sm:$0xff] }
  0x8b   :  { %300 = vperm.xlu1 %3499, %v64_v60   ;;  %297 = vperm.xlu0 %3498, %v63_v61  }
  0x8d   :  { %v172_v22 = vpop.permute.xlu0 %171  ;;  %v175_v26 = vpop.permute.xlu1 %174 }
  0x8e   :  { %vm545_vm2 = vcmp.eq.s32.totalorder %v3865_v44, %v172_v22  ;;  %vm546_vm3 = vcmp.eq.s32.totalorder %v3877_v48, %v172_v22  ;;  %vm547_vm4 = vcmp.eq.s32.totalorder %v3865_v44, %v175_v26  ;;  %vm548_vm5 = vcmp.eq.s32.totalorder %v3877_v48, %v175_v26 }
  0x8f   :  { %2984 = vmatmul.msk.f32.gmra.mxu0 %vm533_vm6, %v3528_v50  ;;  %3112 = vmatmul.msk.f32.gmra.mxu1 %vm534_vm7, %v3528_v50 }
  0x90   :  { %3240 = vmatmul.msk.f32.gmra.mxu2 %vm533_vm6, %v3528_v50  ;;  %3368 = vmatmul.msk.f32.gmra.mxu3 %vm534_vm7, %v3528_v50  ;;  %vm549_vm6 = vcmp.eq.s32.totalorder %v3865_v44, %v178_v30  ;;  %vm550_vm7 = vcmp.eq.s32.totalorder %v3877_v48, %v178_v30 }
  0x92   :  { %312 = vperm.xlu2 %3500, %v68_v63  }
  0x93   :  { %309 = vperm.xlu1 %3499, %v67_v0   ;;  %306 = vperm.xlu0 %3498, %v66_v1   ;;  %v196_v1 = vpop.permute.xlu2 %195 }
  0x95   :  { %v181_v34 = vpop.permute.xlu0 %180  ;;  %v184_v38 = vpop.permute.xlu1 %183 }
  0x97   :  { %2985 = vmatmul.msk.f32.gmra.mxu0 %vm535_vm8, %v3528_v50  ;;  %3113 = vmatmul.msk.f32.gmra.mxu1 %vm536_vm9, %v3528_v50 }
  0x98   :  { %3241 = vmatmul.msk.f32.gmra.mxu2 %vm535_vm8, %v3528_v50  ;;  %3369 = vmatmul.msk.f32.gmra.mxu3 %vm536_vm9, %v3528_v50  ;;  %vm551_vm8 = vcmp.eq.s32.totalorder %v3865_v44, %v181_v34  ;;  %vm552_vm9 = vcmp.eq.s32.totalorder %v3877_v48, %v181_v34  ;;  %v118_v34 = vld [vmem:[%s4899_s0 + $0x350] sm:$0xff] }
  0x9a   :  { %321 = vperm.xlu2 %3500, %v71_v3   ;;  %v110_v3 = vld [vmem:[%s4899_s0 + $0x310] sm:$0xff] }
  0x9b   :  { %318 = vperm.xlu1 %3499, %v70_v4   ;;  %315 = vperm.xlu0 %3498, %v69_v5   ;;  %v109_v4 = vld [vmem:[%s4899_s0 + $0x308] sm:$0xff]  ;;  %v108_v5 = vld [vmem:[%s4899_s0 + $0x300] sm:$0xff] }
  0x9d   :  { %v190_v47 = vpop.permute.xlu0 %189  ;;  %v193_v53 = vpop.permute.xlu1 %192 }
  0x9f   :  { %2986 = vmatmul.msk.f32.gmra.mxu0 %vm537_vm10, %v3528_v50  ;;  %3114 = vmatmul.msk.f32.gmra.mxu1 %vm538_vm11, %v3528_v50 }
  0xa0   :  { %3242 = vmatmul.msk.f32.gmra.mxu2 %vm537_vm10, %v3528_v50  ;;  %3370 = vmatmul.msk.f32.gmra.mxu3 %vm538_vm11, %v3528_v50  ;;  %vm553_vm10 = vcmp.eq.s32.totalorder %v3865_v44, %v184_v38  ;;  %vm554_vm11 = vcmp.eq.s32.totalorder %v3877_v48, %v184_v38 }
  0xa2   :  { %330 = vperm.xlu2 %3500, %v74_v7  }
  0xa3   :  { %327 = vperm.xlu1 %3499, %v73_v8   ;;  %324 = vperm.xlu0 %3498, %v72_v9  }
  0xa5   :  { %v199_v6 = vpop.permute.xlu0 %198 }
  0xa7   :  { %2987 = vmatmul.msk.f32.gmra.mxu0 %vm539_vm12, %v3528_v50  ;;  %3115 = vmatmul.msk.f32.gmra.mxu1 %vm540_vm13, %v3528_v50 }
  0xa8   :  { %3243 = vmatmul.msk.f32.gmra.mxu2 %vm539_vm12, %v3528_v50  ;;  %3371 = vmatmul.msk.f32.gmra.mxu3 %vm540_vm13, %v3528_v50  ;;  %vm555_vm12 = vcmp.eq.s32.totalorder %v3865_v44, %v187_v42  ;;  %vm556_vm13 = vcmp.eq.s32.totalorder %v3877_v48, %v187_v42 }
  0xaa   :  { %339 = vperm.xlu2 %3500, %v77_v11  }
  0xab   :  { %336 = vperm.xlu1 %3499, %v76_v12   ;;  %333 = vperm.xlu0 %3498, %v75_v13   ;;  %v113_v13 = vld [vmem:[%s4899_s0 + $0x328] sm:$0xff] }
  0xaf   :  { %2988 = vmatmul.msk.f32.gmra.mxu0 %vm541_vm14, %v3528_v50  ;;  %3116 = vmatmul.msk.f32.gmra.mxu1 %vm542_vm15, %v3528_v50 }
  0xb0   :  { %3244 = vmatmul.msk.f32.gmra.mxu2 %vm541_vm14, %v3528_v50  ;;  %3372 = vmatmul.msk.f32.gmra.mxu3 %vm542_vm15, %v3528_v50  ;;  %vm557_vm14 = vcmp.eq.s32.totalorder %v3865_v44, %v190_v47  ;;  %vm558_vm15 = vcmp.eq.s32.totalorder %v3877_v48, %v190_v47 }
  0xb2   :  { %348 = vperm.xlu2 %3500, %v80_v15   ;;  %v111_v15 = vld [vmem:[%s4899_s0 + $0x318] sm:$0xff] }
  0xb3   :  { %345 = vperm.xlu1 %3499, %v79_v16   ;;  %342 = vperm.xlu0 %3498, %v78_v17   ;;  %v202_v16 = vpop.permute.xlu1 %201 }
  0xb7   :  { %2989 = vmatmul.msk.f32.gmra.mxu0 %vm543_vm0, %v3528_v50  ;;  %3117 = vmatmul.msk.f32.gmra.mxu1 %vm544_vm1, %v3528_v50 }
  0xb8   :  { %3245 = vmatmul.msk.f32.gmra.mxu2 %vm543_vm0, %v3528_v50  ;;  %3373 = vmatmul.msk.f32.gmra.mxu3 %vm544_vm1, %v3528_v50  ;;  %vm559_vm0 = vcmp.eq.s32.totalorder %v3865_v44, %v193_v53  ;;  %vm560_vm1 = vcmp.eq.s32.totalorder %v3877_v48, %v193_v53 }
  0xba   :  { %357 = vperm.xlu2 %3500, %v83_v19  }
  0xbb   :  { %354 = vperm.xlu1 %3499, %v82_v20   ;;  %351 = vperm.xlu0 %3498, %v81_v21   ;;  %v211_v47 = vpop.permute.xlu1 %210 }
  0xbf   :  { %2990 = vmatmul.msk.f32.gmra.mxu0 %vm545_vm2, %v3528_v50  ;;  %3118 = vmatmul.msk.f32.gmra.mxu1 %vm546_vm3, %v3528_v50 }
  0xc0   :  { %3246 = vmatmul.msk.f32.gmra.mxu2 %vm545_vm2, %v3528_v50  ;;  %3374 = vmatmul.msk.f32.gmra.mxu3 %vm546_vm3, %v3528_v50  ;;  %vm561_vm2 = vcmp.eq.s32.totalorder %v3865_v44, %v196_v1  ;;  %vm562_vm3 = vcmp.eq.s32.totalorder %v3877_v48, %v196_v1 }
  0xc2   :  { %366 = vperm.xlu2 %3500, %v86_v23   ;;  %v116_v23 = vld [vmem:[%s4899_s0 + $0x340] sm:$0xff] }
  0xc3   :  { %363 = vperm.xlu1 %3499, %v85_v24   ;;  %360 = vperm.xlu0 %3498, %v84_v25   ;;  %v115_v24 = vld [vmem:[%s4899_s0 + $0x338] sm:$0xff]  ;;  %v114_v25 = vld [vmem:[%s4899_s0 + $0x330] sm:$0xff] }
  0xc7   :  { %2991 = vmatmul.msk.f32.gmra.mxu0 %vm547_vm4, %v3528_v50  ;;  %3119 = vmatmul.msk.f32.gmra.mxu1 %vm548_vm5, %v3528_v50 }
  0xc8   :  { %3247 = vmatmul.msk.f32.gmra.mxu2 %vm547_vm4, %v3528_v50  ;;  %3375 = vmatmul.msk.f32.gmra.mxu3 %vm548_vm5, %v3528_v50  ;;  %vm563_vm4 = vcmp.eq.s32.totalorder %v3865_v44, %v199_v6  ;;  %vm564_vm5 = vcmp.eq.s32.totalorder %v3877_v48, %v199_v6 }
  0xca   :  { %375 = vperm.xlu2 %3500, %v89_v27  }
  0xcb   :  { %372 = vperm.xlu1 %3499, %v88_v28   ;;  %369 = vperm.xlu0 %3498, %v87_v29  }
  0xcf   :  { %2992 = vmatmul.msk.f32.gmra.mxu0 %vm549_vm6, %v3528_v50  ;;  %3120 = vmatmul.msk.f32.gmra.mxu1 %vm550_vm7, %v3528_v50 }
  0xd0   :  { %3248 = vmatmul.msk.f32.gmra.mxu2 %vm549_vm6, %v3528_v50  ;;  %3376 = vmatmul.msk.f32.gmra.mxu3 %vm550_vm7, %v3528_v50  ;;  %vm565_vm6 = vcmp.eq.s32.totalorder %v3865_v44, %v202_v16  ;;  %vm566_vm7 = vcmp.eq.s32.totalorder %v3877_v48, %v202_v16 }
  0xd2   :  { %384 = vperm.xlu2 %3500, %v92_v31   ;;  %v205_v31 = vpop.permute.xlu2 %204 }
  0xd3   :  { %381 = vperm.xlu1 %3499, %v91_v32   ;;  %378 = vperm.xlu0 %3498, %v90_v33   ;;  %v119_v33 = vld [vmem:[%s4899_s0 + $0x358] sm:$0xff] }
  0xd7   :  { %2993 = vmatmul.msk.f32.gmra.mxu0 %vm551_vm8, %v3528_v50  ;;  %3121 = vmatmul.msk.f32.gmra.mxu1 %vm552_vm9, %v3528_v50 }
  0xd8   :  { %3249 = vmatmul.msk.f32.gmra.mxu2 %vm551_vm8, %v3528_v50  ;;  %3377 = vmatmul.msk.f32.gmra.mxu3 %vm552_vm9, %v3528_v50  ;;  %vm567_vm8 = vcmp.eq.s32.totalorder %v3865_v44, %v205_v31  ;;  %vm568_vm9 = vcmp.eq.s32.totalorder %v3877_v48, %v205_v31 }
  0xda   :  { %393 = vperm.xlu2 %3500, %v95_v35   ;;  %v117_v35 = vld [vmem:[%s4899_s0 + $0x348] sm:$0xff] }
  0xdb   :  { %390 = vperm.xlu1 %3499, %v94_v36   ;;  %387 = vperm.xlu0 %3498, %v93_v37   ;;  %v208_v36 = vpop.permute.xlu0 %207 }
  0xdf   :  { %2994 = vmatmul.msk.f32.gmra.mxu0 %vm553_vm10, %v3528_v50  ;;  %3122 = vmatmul.msk.f32.gmra.mxu1 %vm554_vm11, %v3528_v50 }
  0xe0   :  { %3250 = vmatmul.msk.f32.gmra.mxu2 %vm553_vm10, %v3528_v50  ;;  %3378 = vmatmul.msk.f32.gmra.mxu3 %vm554_vm11, %v3528_v50  ;;  %vm569_vm10 = vcmp.eq.s32.totalorder %v3865_v44, %v208_v36  ;;  %vm570_vm11 = vcmp.eq.s32.totalorder %v3877_v48, %v208_v36 }
  0xe2   :  { %402 = vperm.xlu2 %3500, %v98_v39  }
  0xe3   :  { %399 = vperm.xlu1 %3499, %v97_v40   ;;  %396 = vperm.xlu0 %3498, %v96_v41  }
  0xe7   :  { %2995 = vmatmul.msk.f32.gmra.mxu0 %vm555_vm12, %v3528_v50  ;;  %3123 = vmatmul.msk.f32.gmra.mxu1 %vm556_vm13, %v3528_v50 }
  0xe8   :  { %3251 = vmatmul.msk.f32.gmra.mxu2 %vm555_vm12, %v3528_v50  ;;  %3379 = vmatmul.msk.f32.gmra.mxu3 %vm556_vm13, %v3528_v50  ;;  %vm571_vm12 = vcmp.eq.s32.totalorder %v3865_v44, %v211_v47  ;;  %vm572_vm13 = vcmp.eq.s32.totalorder %v3877_v48, %v211_v47 }
  0xea   :  { %411 = vperm.xlu2 %3500, %v101_v43   ;;  %v122_v43 = vld [vmem:[%s4899_s0 + $0x370] sm:$0xff] }
  0xeb   :  { %408 = vperm.xlu1 %3499, %v100_v45   ;;  %405 = vperm.xlu0 %3498, %v99_v46   ;;  %v121_v45 = vld [vmem:[%s4899_s0 + $0x368] sm:$0xff]  ;;  %v120_v46 = vld [vmem:[%s4899_s0 + $0x360] sm:$0xff] }
  0xef   :  { %2996 = vmatmul.msk.f32.gmra.mxu0 %vm557_vm14, %v3528_v50  ;;  %3124 = vmatmul.msk.f32.gmra.mxu1 %vm558_vm15, %v3528_v50 }
  0xf0   :  { %3252 = vmatmul.msk.f32.gmra.mxu2 %vm557_vm14, %v3528_v50  ;;  %3380 = vmatmul.msk.f32.gmra.mxu3 %vm558_vm15, %v3528_v50 }
  0xf2   :  { %420 = vperm.xlu2 %3500, %v104_v49  }
  0xf3   :  { %417 = vperm.xlu1 %3499, %v103_v51   ;;  %414 = vperm.xlu0 %3498, %v102_v52  }
  0xf4   :  { %v1120_v54 = vpop.f32.mrf.mxu0  ;;  %v1521_v55 = vpop.f32.mrf.mxu1 }
  0xf5   :  { %v1522_v56 = vadd.f32 %v1521_v55, %v1120_v54 }
  0xf7   :  { %2707 = vst [vmem:[#allocation2] sm:$0xff] %v1522_v56  ;;  %2997 = vmatmul.msk.f32.gmra.mxu0 %vm559_vm0, %v3528_v50  ;;  %3125 = vmatmul.msk.f32.gmra.mxu1 %vm560_vm1, %v3528_v50  ;;  %v125_v56 = vld [vmem:[%s4899_s0 + $0x388] sm:$0xff] }
  0xf8   :  { %3253 = vmatmul.msk.f32.gmra.mxu2 %vm559_vm0, %v3528_v50  ;;  %3381 = vmatmul.msk.f32.gmra.mxu3 %vm560_vm1, %v3528_v50 }
  0xfa   :  { %429 = vperm.xlu2 %3500, %v107_v57   ;;  %v124_v57 = vld [vmem:[%s4899_s0 + $0x380] sm:$0xff] }
  0xfb   :  { %v1922_v60 = vpop.f32.mrf.mxu2  ;;  %v2323_v61 = vpop.f32.mrf.mxu3  ;;  %426 = vperm.xlu1 %3499, %v106_v58   ;;  %423 = vperm.xlu0 %3498, %v105_v59   ;;  %v123_v58 = vld [vmem:[%s4899_s0 + $0x378] sm:$0xff] }
  0xfc   :  { %v2324_v62 = vadd.f32 %v2323_v61, %v1922_v60  ;;  %v1123_v63 = vpop.f32.mrf.mxu0  ;;  %v1524_v0 = vpop.f32.mrf.mxu1 }
  0xfd   :  { %v1525_v2 = vadd.f32 %v1524_v0, %v1123_v63  ;;  %v214_v59 = vpop.permute.xlu2 %213 }
  0xfe   :  { %2708 = vst [vmem:[#allocation2 + $0x8] sm:$0xff] %v2324_v62  ;;  %vm573_vm14 = vcmp.eq.s32.totalorder %v3865_v44, %v214_v59  ;;  %vm574_vm15 = vcmp.eq.s32.totalorder %v3877_v48, %v214_v59 }
  0xff   :  { %2709 = vst [vmem:[#allocation2 + $0x10] sm:$0xff] %v1525_v2  ;;  %2998 = vmatmul.msk.f32.gmra.mxu0 %vm561_vm2, %v3528_v50  ;;  %3126 = vmatmul.msk.f32.gmra.mxu1 %vm562_vm3, %v3528_v50  ;;  %v128_v2 = vld [vmem:[%s4899_s0 + $0x3a0] sm:$0xff] }
 0x100   :  { %3254 = vmatmul.msk.f32.gmra.mxu2 %vm561_vm2, %v3528_v50  ;;  %3382 = vmatmul.msk.f32.gmra.mxu3 %vm562_vm3, %v3528_v50 }
 0x102   :  { %438 = vperm.xlu2 %3500, %v110_v3   ;;  %v127_v3 = vld [vmem:[%s4899_s0 + $0x398] sm:$0xff] }
 0x103   :  { %v1925_v7 = vpop.f32.mrf.mxu2  ;;  %v2326_v8 = vpop.f32.mrf.mxu3  ;;  %435 = vperm.xlu1 %3499, %v109_v4   ;;  %432 = vperm.xlu0 %3498, %v108_v5   ;;  %v126_v4 = vld [vmem:[%s4899_s0 + $0x390] sm:$0xff] }
 0x104   :  { %v2327_v9 = vadd.f32 %v2326_v8, %v1925_v7  ;;  %v1126_v10 = vpop.f32.mrf.mxu0  ;;  %v1527_v11 = vpop.f32.mrf.mxu1 }
 0x105   :  { %v1528_v12 = vadd.f32 %v1527_v11, %v1126_v10  ;;  %v217_v5 = vpop.permute.xlu0 %216 }
 0x106   :  { %2710 = vst [vmem:[#allocation2 + $0x18] sm:$0xff] %v2327_v9  ;;  %vm575_vm0 = vcmp.eq.s32.totalorder %v3865_v44, %v217_v5  ;;  %vm576_vm1 = vcmp.eq.s32.totalorder %v3877_v48, %v217_v5 }
 0x107   :  { %2711 = vst [vmem:[#allocation2 + $0x20] sm:$0xff] %v1528_v12  ;;  %2999 = vmatmul.msk.f32.gmra.mxu0 %vm563_vm4, %v3528_v50  ;;  %3127 = vmatmul.msk.f32.gmra.mxu1 %vm564_vm5, %v3528_v50  ;;  %v131_v12 = vld [vmem:[%s4899_s0 + $0x3b8] sm:$0xff] }
 0x108   :  { %3255 = vmatmul.msk.f32.gmra.mxu2 %vm563_vm4, %v3528_v50  ;;  %3383 = vmatmul.msk.f32.gmra.mxu3 %vm564_vm5, %v3528_v50 }
 0x10a   :  { %447 = vperm.xlu2 %3500, %v113_v13   ;;  %v130_v13 = vld [vmem:[%s4899_s0 + $0x3b0] sm:$0xff] }
 0x10b   :  { %v1928_v17 = vpop.f32.mrf.mxu2  ;;  %v2329_v18 = vpop.f32.mrf.mxu3  ;;  %444 = vperm.xlu1 %3499, %v112_v14   ;;  %441 = vperm.xlu0 %3498, %v111_v15   ;;  %v129_v14 = vld [vmem:[%s4899_s0 + $0x3a8] sm:$0xff] }
 0x10c   :  { %v2330_v19 = vadd.f32 %v2329_v18, %v1928_v17  ;;  %v1129_v20 = vpop.f32.mrf.mxu0  ;;  %v1530_v21 = vpop.f32.mrf.mxu1 }
 0x10d   :  { %v1531_v22 = vadd.f32 %v1530_v21, %v1129_v20  ;;  %v220_v15 = vpop.permute.xlu1 %219 }
 0x10e   :  { %2712 = vst [vmem:[#allocation2 + $0x28] sm:$0xff] %v2330_v19  ;;  %vm577_vm2 = vcmp.eq.s32.totalorder %v3865_v44, %v220_v15  ;;  %vm578_vm3 = vcmp.eq.s32.totalorder %v3877_v48, %v220_v15 }
 0x10f   :  { %2713 = vst [vmem:[#allocation2 + $0x30] sm:$0xff] %v1531_v22  ;;  %3000 = vmatmul.msk.f32.gmra.mxu0 %vm565_vm6, %v3528_v50  ;;  %3128 = vmatmul.msk.f32.gmra.mxu1 %vm566_vm7, %v3528_v50  ;;  %v134_v22 = vld [vmem:[%s4899_s0 + $0x3d0] sm:$0xff] }
 0x110   :  { %3256 = vmatmul.msk.f32.gmra.mxu2 %vm565_vm6, %v3528_v50  ;;  %3384 = vmatmul.msk.f32.gmra.mxu3 %vm566_vm7, %v3528_v50 }
 0x112   :  { %456 = vperm.xlu2 %3500, %v116_v23   ;;  %v133_v23 = vld [vmem:[%s4899_s0 + $0x3c8] sm:$0xff] }
 0x113   :  { %v1931_v26 = vpop.f32.mrf.mxu2  ;;  %v2332_v27 = vpop.f32.mrf.mxu3  ;;  %453 = vperm.xlu1 %3499, %v115_v24   ;;  %450 = vperm.xlu0 %3498, %v114_v25   ;;  %v132_v24 = vld [vmem:[%s4899_s0 + $0x3c0] sm:$0xff] }
 0x114   :  { %v2333_v28 = vadd.f32 %v2332_v27, %v1931_v26  ;;  %v1132_v29 = vpop.f32.mrf.mxu0  ;;  %v1533_v30 = vpop.f32.mrf.mxu1 }
 0x115   :  { %v1534_v32 = vadd.f32 %v1533_v30, %v1132_v29  ;;  %v223_v25 = vpop.permute.xlu2 %222 }
 0x116   :  { %2714 = vst [vmem:[#allocation2 + $0x38] sm:$0xff] %v2333_v28  ;;  %vm579_vm4 = vcmp.eq.s32.totalorder %v3865_v44, %v223_v25  ;;  %vm580_vm5 = vcmp.eq.s32.totalorder %v3877_v48, %v223_v25 }
 0x117   :  { %2715 = vst [vmem:[#allocation2 + $0x40] sm:$0xff] %v1534_v32  ;;  %3001 = vmatmul.msk.f32.gmra.mxu0 %vm567_vm8, %v3528_v50  ;;  %3129 = vmatmul.msk.f32.gmra.mxu1 %vm568_vm9, %v3528_v50  ;;  %v137_v32 = vld [vmem:[%s4899_s0 + $0x3e8] sm:$0xff] }
 0x118   :  { %3257 = vmatmul.msk.f32.gmra.mxu2 %vm567_vm8, %v3528_v50  ;;  %3385 = vmatmul.msk.f32.gmra.mxu3 %vm568_vm9, %v3528_v50 }
 0x11a   :  { %465 = vperm.xlu2 %3500, %v119_v33   ;;  %v136_v33 = vld [vmem:[%s4899_s0 + $0x3e0] sm:$0xff] }
 0x11b   :  { %v1934_v37 = vpop.f32.mrf.mxu2  ;;  %v2335_v38 = vpop.f32.mrf.mxu3  ;;  %462 = vperm.xlu1 %3499, %v118_v34   ;;  %459 = vperm.xlu0 %3498, %v117_v35   ;;  %v135_v34 = vld [vmem:[%s4899_s0 + $0x3d8] sm:$0xff] }
 0x11c   :  { %v2336_v39 = vadd.f32 %v2335_v38, %v1934_v37  ;;  %v1135_v40 = vpop.f32.mrf.mxu0  ;;  %v1536_v41 = vpop.f32.mrf.mxu1 }
 0x11d   :  { %v1537_v42 = vadd.f32 %v1536_v41, %v1135_v40  ;;  %v226_v35 = vpop.permute.xlu0 %225 }
 0x11e   :  { %2716 = vst [vmem:[#allocation2 + $0x48] sm:$0xff] %v2336_v39  ;;  %vm581_vm6 = vcmp.eq.s32.totalorder %v3865_v44, %v226_v35  ;;  %vm582_vm7 = vcmp.eq.s32.totalorder %v3877_v48, %v226_v35 }
 0x11f   :  { %2717 = vst [vmem:[#allocation2 + $0x50] sm:$0xff] %v1537_v42  ;;  %3002 = vmatmul.msk.f32.gmra.mxu0 %vm569_vm10, %v3528_v50  ;;  %3130 = vmatmul.msk.f32.gmra.mxu1 %vm570_vm11, %v3528_v50  ;;  %v139_v42 = vld [vmem:[%s4899_s0 + $0x3f8] sm:$0xff] }
 0x120   :  { %3258 = vmatmul.msk.f32.gmra.mxu2 %vm569_vm10, %v3528_v50  ;;  %3386 = vmatmul.msk.f32.gmra.mxu3 %vm570_vm11, %v3528_v50 }
 0x122   :  { %474 = vperm.xlu2 %3500, %v122_v43   ;;  %v138_v43 = vld [vmem:[%s4899_s0 + $0x3f0] sm:$0xff]  ;;  %s3529_s0 = smov [#allocation2]  }
 0x123   :  { %v1937_v49 = vpop.f32.mrf.mxu2  ;;  %v2338_v51 = vpop.f32.mrf.mxu3  ;;  %471 = vperm.xlu1 %3499, %v121_v45   ;;  %468 = vperm.xlu0 %3498, %v120_v46   ;;  %s2967_s22 = sshll.u32 %s3529_s0, 4  ;;  %s2968_s22 = int_to_ptr.vmem [resolvable:$true] %s2967_s22 }
 0x124   :  { %v2339_v52 = vadd.f32 %v2338_v51, %v1937_v49  ;;  %v1138_v53 = vpop.f32.mrf.mxu0  ;;  %v1539_v54 = vpop.f32.mrf.mxu1 }
 0x125   :  { %v1540_v55 = vadd.f32 %v1539_v54, %v1138_v53  ;;  %v229_v45 = vpop.permute.xlu1 %228  ;;  %v232_v54 = vpop.permute.xlu2 %231 }
 0x126   :  { %2718 = vst [vmem:[#allocation2 + $0x58] sm:$0xff] %v2339_v52  ;;  %vm583_vm8 = vcmp.eq.s32.totalorder %v3865_v44, %v229_v45  ;;  %vm584_vm9 = vcmp.eq.s32.totalorder %v3877_v48, %v229_v45  ;;  %vm585_vm10 = vcmp.eq.s32.totalorder %v3865_v44, %v232_v54  ;;  %vm586_vm11 = vcmp.eq.s32.totalorder %v3877_v48, %v232_v54 }
 0x127   :  { %2719 = vst [vmem:[#allocation2 + $0x60] sm:$0xff] %v1540_v55  ;;  %3003 = vmatmul.msk.f32.gmra.mxu0 %vm571_vm12, %v3528_v50  ;;  %3131 = vmatmul.msk.f32.gmra.mxu1 %vm572_vm13, %v3528_v50 }
 0x128   :  { %3259 = vmatmul.msk.f32.gmra.mxu2 %vm571_vm12, %v3528_v50  ;;  %3387 = vmatmul.msk.f32.gmra.mxu3 %vm572_vm13, %v3528_v50 }
 0x12a   :  { %483 = vperm.xlu2 %3500, %v125_v56  }
 0x12b   :  { %v1940_v60 = vpop.f32.mrf.mxu2  ;;  %v2341_v61 = vpop.f32.mrf.mxu3  ;;  %480 = vperm.xlu1 %3499, %v124_v57   ;;  %477 = vperm.xlu0 %3498, %v123_v58  }
 0x12c   :  { %v2342_v62 = vadd.f32 %v2341_v61, %v1940_v60  ;;  %v1141_v63 = vpop.f32.mrf.mxu0  ;;  %v1542_v0 = vpop.f32.mrf.mxu1 }
 0x12d   :  { %v1543_v1 = vadd.f32 %v1542_v0, %v1141_v63  ;;  %v235_v61 = vpop.permute.xlu0 %234 }
 0x12e   :  { %2720 = vst [vmem:[#allocation2 + $0x68] sm:$0xff] %v2342_v62  ;;  %vm587_vm12 = vcmp.eq.s32.totalorder %v3865_v44, %v235_v61  ;;  %vm588_vm13 = vcmp.eq.s32.totalorder %v3877_v48, %v235_v61 }
 0x12f   :  { %2721 = vst [vmem:[#allocation2 + $0x70] sm:$0xff] %v1543_v1  ;;  %3004 = vmatmul.msk.f32.gmra.mxu0 %vm573_vm14, %v3528_v50  ;;  %3132 = vmatmul.msk.f32.gmra.mxu1 %vm574_vm15, %v3528_v50 }
 0x130   :  { %3260 = vmatmul.msk.f32.gmra.mxu2 %vm573_vm14, %v3528_v50  ;;  %3388 = vmatmul.msk.f32.gmra.mxu3 %vm574_vm15, %v3528_v50 }
 0x132   :  { %492 = vperm.xlu2 %3500, %v128_v2  }
 0x133   :  { %v1943_v6 = vpop.f32.mrf.mxu2  ;;  %v2344_v7 = vpop.f32.mrf.mxu3  ;;  %489 = vperm.xlu1 %3499, %v127_v3   ;;  %486 = vperm.xlu0 %3498, %v126_v4  }
 0x134   :  { %v2345_v8 = vadd.f32 %v2344_v7, %v1943_v6  ;;  %v1144_v9 = vpop.f32.mrf.mxu0  ;;  %v1545_v10 = vpop.f32.mrf.mxu1 }
 0x135   :  { %v1546_v11 = vadd.f32 %v1545_v10, %v1144_v9  ;;  %v238_v4 = vpop.permute.xlu1 %237 }
 0x136   :  { %2722 = vst [vmem:[#allocation2 + $0x78] sm:$0xff] %v2345_v8  ;;  %vm589_vm14 = vcmp.eq.s32.totalorder %v3865_v44, %v238_v4  ;;  %vm590_vm15 = vcmp.eq.s32.totalorder %v3877_v48, %v238_v4 }
 0x137   :  { %2723 = vst [vmem:[#allocation2 + $0x80] sm:$0xff] %v1546_v11  ;;  %3005 = vmatmul.msk.f32.gmra.mxu0 %vm575_vm0, %v3528_v50  ;;  %3133 = vmatmul.msk.f32.gmra.mxu1 %vm576_vm1, %v3528_v50  ;;  %v241_v11 = vpop.permute.xlu2 %240 }
 0x138   :  { %3261 = vmatmul.msk.f32.gmra.mxu2 %vm575_vm0, %v3528_v50  ;;  %3389 = vmatmul.msk.f32.gmra.mxu3 %vm576_vm1, %v3528_v50  ;;  %vm591_vm0 = vcmp.eq.s32.totalorder %v3865_v44, %v241_v11  ;;  %vm592_vm1 = vcmp.eq.s32.totalorder %v3877_v48, %v241_v11 }
 0x13a   :  { %501 = vperm.xlu2 %3500, %v131_v12  }
 0x13b   :  { %v1946_v16 = vpop.f32.mrf.mxu2  ;;  %v2347_v17 = vpop.f32.mrf.mxu3  ;;  %498 = vperm.xlu1 %3499, %v130_v13   ;;  %495 = vperm.xlu0 %3498, %v129_v14  }
 0x13c   :  { %v2348_v18 = vadd.f32 %v2347_v17, %v1946_v16  ;;  %v1147_v19 = vpop.f32.mrf.mxu0  ;;  %v1548_v20 = vpop.f32.mrf.mxu1 }
 0x13d   :  { %v1549_v21 = vadd.f32 %v1548_v20, %v1147_v19  ;;  %v247_v25 = vpop.permute.xlu1 %246 }
 0x13e   :  { %2724 = vst [vmem:[#allocation2 + $0x88] sm:$0xff] %v2348_v18  ;;  %v244_v18 = vpop.permute.xlu0 %243 }
 0x13f   :  { %2725 = vst [vmem:[#allocation2 + $0x90] sm:$0xff] %v1549_v21  ;;  %3006 = vmatmul.msk.f32.gmra.mxu0 %vm577_vm2, %v3528_v50  ;;  %3134 = vmatmul.msk.f32.gmra.mxu1 %vm578_vm3, %v3528_v50 }
 0x140   :  { %3262 = vmatmul.msk.f32.gmra.mxu2 %vm577_vm2, %v3528_v50  ;;  %3390 = vmatmul.msk.f32.gmra.mxu3 %vm578_vm3, %v3528_v50  ;;  %vm593_vm2 = vcmp.eq.s32.totalorder %v3865_v44, %v244_v18  ;;  %vm594_vm3 = vcmp.eq.s32.totalorder %v3877_v48, %v244_v18 }
 0x142   :  { %510 = vperm.xlu2 %3500, %v134_v22  }
 0x143   :  { %v1949_v26 = vpop.f32.mrf.mxu2  ;;  %v2350_v27 = vpop.f32.mrf.mxu3  ;;  %507 = vperm.xlu1 %3499, %v133_v23   ;;  %504 = vperm.xlu0 %3498, %v132_v24  }
 0x144   :  { %v2351_v28 = vadd.f32 %v2350_v27, %v1949_v26  ;;  %v1150_v29 = vpop.f32.mrf.mxu0  ;;  %v1551_v30 = vpop.f32.mrf.mxu1 }
 0x145   :  { %v1552_v31 = vadd.f32 %v1551_v30, %v1150_v29 }
 0x146   :  { %2726 = vst [vmem:[#allocation2 + $0x98] sm:$0xff] %v2351_v28 }
 0x147   :  { %2727 = vst [vmem:[#allocation2 + $0xa0] sm:$0xff] %v1552_v31  ;;  %3007 = vmatmul.msk.f32.gmra.mxu0 %vm579_vm4, %v3528_v50  ;;  %3135 = vmatmul.msk.f32.gmra.mxu1 %vm580_vm5, %v3528_v50 }
 0x148   :  { %3263 = vmatmul.msk.f32.gmra.mxu2 %vm579_vm4, %v3528_v50  ;;  %3391 = vmatmul.msk.f32.gmra.mxu3 %vm580_vm5, %v3528_v50  ;;  %vm595_vm4 = vcmp.eq.s32.totalorder %v3865_v44, %v247_v25  ;;  %vm596_vm5 = vcmp.eq.s32.totalorder %v3877_v48, %v247_v25 }
 0x14a   :  { %519 = vperm.xlu2 %3500, %v137_v32   ;;  %v250_v32 = vpop.permute.xlu2 %249 }
 0x14b   :  { %v1952_v36 = vpop.f32.mrf.mxu2  ;;  %v2353_v37 = vpop.f32.mrf.mxu3  ;;  %516 = vperm.xlu1 %3499, %v136_v33   ;;  %513 = vperm.xlu0 %3498, %v135_v34  }
 0x14c   :  { %v2354_v38 = vadd.f32 %v2353_v37, %v1952_v36  ;;  %v1153_v39 = vpop.f32.mrf.mxu0  ;;  %v1554_v40 = vpop.f32.mrf.mxu1 }
 0x14d   :  { %v1555_v41 = vadd.f32 %v1554_v40, %v1153_v39  ;;  %v253_v39 = vpop.permute.xlu0 %252 }
 0x14e   :  { %2728 = vst [vmem:[#allocation2 + $0xa8] sm:$0xff] %v2354_v38 }
 0x14f   :  { %2729 = vst [vmem:[#allocation2 + $0xb0] sm:$0xff] %v1555_v41  ;;  %3008 = vmatmul.msk.f32.gmra.mxu0 %vm581_vm6, %v3528_v50  ;;  %3136 = vmatmul.msk.f32.gmra.mxu1 %vm582_vm7, %v3528_v50 }
 0x150   :  { %3264 = vmatmul.msk.f32.gmra.mxu2 %vm581_vm6, %v3528_v50  ;;  %3392 = vmatmul.msk.f32.gmra.mxu3 %vm582_vm7, %v3528_v50  ;;  %vm597_vm6 = vcmp.eq.s32.totalorder %v3865_v44, %v250_v32  ;;  %vm598_vm7 = vcmp.eq.s32.totalorder %v3877_v48, %v250_v32 }
 0x153   :  { %v1955_v46 = vpop.f32.mrf.mxu2  ;;  %v2356_v47 = vpop.f32.mrf.mxu3  ;;  %525 = vperm.xlu1 %3499, %v139_v42   ;;  %522 = vperm.xlu0 %3498, %v138_v43  }
 0x154   :  { %v2357_v49 = vadd.f32 %v2356_v47, %v1955_v46  ;;  %v1156_v51 = vpop.f32.mrf.mxu0  ;;  %v1557_v52 = vpop.f32.mrf.mxu1 }
 0x155   :  { %v1558_v53 = vadd.f32 %v1557_v52, %v1156_v51  ;;  %v256_v47 = vpop.permute.xlu1 %255 }
 0x156   :  { %2730 = vst [vmem:[#allocation2 + $0xb8] sm:$0xff] %v2357_v49 }
 0x157   :  { %2731 = vst [vmem:[#allocation2 + $0xc0] sm:$0xff] %v1558_v53  ;;  %3009 = vmatmul.msk.f32.gmra.mxu0 %vm583_vm8, %v3528_v50  ;;  %3137 = vmatmul.msk.f32.gmra.mxu1 %vm584_vm9, %v3528_v50 }
 0x158   :  { %3265 = vmatmul.msk.f32.gmra.mxu2 %vm583_vm8, %v3528_v50  ;;  %3393 = vmatmul.msk.f32.gmra.mxu3 %vm584_vm9, %v3528_v50  ;;  %vm599_vm8 = vcmp.eq.s32.totalorder %v3865_v44, %v253_v39  ;;  %vm600_vm9 = vcmp.eq.s32.totalorder %v3877_v48, %v253_v39 }
 0x15b   :  { %v1958_v55 = vpop.f32.mrf.mxu2  ;;  %v2359_v56 = vpop.f32.mrf.mxu3 }
 0x15c   :  { %v2360_v57 = vadd.f32 %v2359_v56, %v1958_v55  ;;  %v1159_v58 = vpop.f32.mrf.mxu0  ;;  %v1560_v59 = vpop.f32.mrf.mxu1 }
 0x15d   :  { %v1561_v60 = vadd.f32 %v1560_v59, %v1159_v58  ;;  %v259_v56 = vpop.permute.xlu2 %258 }
 0x15e   :  { %2732 = vst [vmem:[#allocation2 + $0xc8] sm:$0xff] %v2360_v57 }
 0x15f   :  { %2733 = vst [vmem:[#allocation2 + $0xd0] sm:$0xff] %v1561_v60  ;;  %3010 = vmatmul.msk.f32.gmra.mxu0 %vm585_vm10, %v3528_v50  ;;  %3138 = vmatmul.msk.f32.gmra.mxu1 %vm586_vm11, %v3528_v50 }
 0x160   :  { %3266 = vmatmul.msk.f32.gmra.mxu2 %vm585_vm10, %v3528_v50  ;;  %3394 = vmatmul.msk.f32.gmra.mxu3 %vm586_vm11, %v3528_v50  ;;  %vm601_vm10 = vcmp.eq.s32.totalorder %v3865_v44, %v256_v47  ;;  %vm602_vm11 = vcmp.eq.s32.totalorder %v3877_v48, %v256_v47 }
 0x163   :  { %v1961_v62 = vpop.f32.mrf.mxu2  ;;  %v2362_v63 = vpop.f32.mrf.mxu3 }
 0x164   :  { %v2363_v0 = vadd.f32 %v2362_v63, %v1961_v62  ;;  %v1162_v1 = vpop.f32.mrf.mxu0  ;;  %v1563_v2 = vpop.f32.mrf.mxu1 }
 0x165   :  { %v1564_v3 = vadd.f32 %v1563_v2, %v1162_v1  ;;  %v262_v63 = vpop.permute.xlu0 %261 }
 0x166   :  { %2734 = vst [vmem:[#allocation2 + $0xd8] sm:$0xff] %v2363_v0 }
 0x167   :  { %2735 = vst [vmem:[#allocation2 + $0xe0] sm:$0xff] %v1564_v3  ;;  %3011 = vmatmul.msk.f32.gmra.mxu0 %vm587_vm12, %v3528_v50  ;;  %3139 = vmatmul.msk.f32.gmra.mxu1 %vm588_vm13, %v3528_v50 }
 0x168   :  { %3267 = vmatmul.msk.f32.gmra.mxu2 %vm587_vm12, %v3528_v50  ;;  %3395 = vmatmul.msk.f32.gmra.mxu3 %vm588_vm13, %v3528_v50  ;;  %vm603_vm12 = vcmp.eq.s32.totalorder %v3865_v44, %v259_v56  ;;  %vm604_vm13 = vcmp.eq.s32.totalorder %v3877_v48, %v259_v56 }
 0x16b   :  { %v1964_v5 = vpop.f32.mrf.mxu2  ;;  %v2365_v6 = vpop.f32.mrf.mxu3 }
 0x16c   :  { %v2366_v7 = vadd.f32 %v2365_v6, %v1964_v5  ;;  %v1165_v8 = vpop.f32.mrf.mxu0  ;;  %v1566_v9 = vpop.f32.mrf.mxu1 }
 0x16d   :  { %v1567_v10 = vadd.f32 %v1566_v9, %v1165_v8  ;;  %v265_v6 = vpop.permute.xlu1 %264 }
 0x16e   :  { %2736 = vst [vmem:[#allocation2 + $0xe8] sm:$0xff] %v2366_v7 }
 0x16f   :  { %2737 = vst [vmem:[#allocation2 + $0xf0] sm:$0xff] %v1567_v10  ;;  %3012 = vmatmul.msk.f32.gmra.mxu0 %vm589_vm14, %v3528_v50  ;;  %3140 = vmatmul.msk.f32.gmra.mxu1 %vm590_vm15, %v3528_v50 }
 0x170   :  { %3268 = vmatmul.msk.f32.gmra.mxu2 %vm589_vm14, %v3528_v50  ;;  %3396 = vmatmul.msk.f32.gmra.mxu3 %vm590_vm15, %v3528_v50  ;;  %vm605_vm14 = vcmp.eq.s32.totalorder %v3865_v44, %v262_v63  ;;  %vm606_vm15 = vcmp.eq.s32.totalorder %v3877_v48, %v262_v63 }
 0x173   :  { %v1967_v12 = vpop.f32.mrf.mxu2  ;;  %v2368_v13 = vpop.f32.mrf.mxu3 }
 0x174   :  { %v2369_v14 = vadd.f32 %v2368_v13, %v1967_v12  ;;  %v1168_v15 = vpop.f32.mrf.mxu0  ;;  %v1569_v16 = vpop.f32.mrf.mxu1 }
 0x175   :  { %v1570_v17 = vadd.f32 %v1569_v16, %v1168_v15  ;;  %v268_v13 = vpop.permute.xlu2 %267 }
 0x176   :  { %2738 = vst [vmem:[#allocation2 + $0xf8] sm:$0xff] %v2369_v14 }
 0x177   :  { %2739 = vst [vmem:[#allocation2 + $0x100] sm:$0xff] %v1570_v17  ;;  %3013 = vmatmul.msk.f32.gmra.mxu0 %vm591_vm0, %v3528_v50  ;;  %3141 = vmatmul.msk.f32.gmra.mxu1 %vm592_vm1, %v3528_v50 }
 0x178   :  { %3269 = vmatmul.msk.f32.gmra.mxu2 %vm591_vm0, %v3528_v50  ;;  %3397 = vmatmul.msk.f32.gmra.mxu3 %vm592_vm1, %v3528_v50  ;;  %vm607_vm0 = vcmp.eq.s32.totalorder %v3865_v44, %v265_v6  ;;  %vm608_vm1 = vcmp.eq.s32.totalorder %v3877_v48, %v265_v6 }
 0x17b   :  { %v1970_v19 = vpop.f32.mrf.mxu2  ;;  %v2371_v20 = vpop.f32.mrf.mxu3 }
 0x17c   :  { %v2372_v21 = vadd.f32 %v2371_v20, %v1970_v19  ;;  %v1171_v22 = vpop.f32.mrf.mxu0  ;;  %v1572_v23 = vpop.f32.mrf.mxu1 }
 0x17d   :  { %v1573_v24 = vadd.f32 %v1572_v23, %v1171_v22  ;;  %v271_v20 = vpop.permute.xlu0 %270 }
 0x17e   :  { %2740 = vst [vmem:[#allocation2 + $0x108] sm:$0xff] %v2372_v21 }
 0x17f   :  { %2741 = vst [vmem:[#allocation2 + $0x110] sm:$0xff] %v1573_v24  ;;  %3014 = vmatmul.msk.f32.gmra.mxu0 %vm593_vm2, %v3528_v50  ;;  %3142 = vmatmul.msk.f32.gmra.mxu1 %vm594_vm3, %v3528_v50 }
 0x180   :  { %3270 = vmatmul.msk.f32.gmra.mxu2 %vm593_vm2, %v3528_v50  ;;  %3398 = vmatmul.msk.f32.gmra.mxu3 %vm594_vm3, %v3528_v50  ;;  %vm609_vm2 = vcmp.eq.s32.totalorder %v3865_v44, %v268_v13  ;;  %vm610_vm3 = vcmp.eq.s32.totalorder %v3877_v48, %v268_v13 }
 0x183   :  { %v1973_v26 = vpop.f32.mrf.mxu2  ;;  %v2374_v27 = vpop.f32.mrf.mxu3 }
 0x184   :  { %v2375_v28 = vadd.f32 %v2374_v27, %v1973_v26  ;;  %v1174_v29 = vpop.f32.mrf.mxu0  ;;  %v1575_v30 = vpop.f32.mrf.mxu1 }
 0x185   :  { %v1576_v31 = vadd.f32 %v1575_v30, %v1174_v29  ;;  %v274_v27 = vpop.permute.xlu1 %273 }
 0x186   :  { %2742 = vst [vmem:[#allocation2 + $0x118] sm:$0xff] %v2375_v28 }
 0x187   :  { %2743 = vst [vmem:[#allocation2 + $0x120] sm:$0xff] %v1576_v31  ;;  %3015 = vmatmul.msk.f32.gmra.mxu0 %vm595_vm4, %v3528_v50  ;;  %3143 = vmatmul.msk.f32.gmra.mxu1 %vm596_vm5, %v3528_v50 }
 0x188   :  { %3271 = vmatmul.msk.f32.gmra.mxu2 %vm595_vm4, %v3528_v50  ;;  %3399 = vmatmul.msk.f32.gmra.mxu3 %vm596_vm5, %v3528_v50  ;;  %vm611_vm4 = vcmp.eq.s32.totalorder %v3865_v44, %v271_v20  ;;  %vm612_vm5 = vcmp.eq.s32.totalorder %v3877_v48, %v271_v20 }
 0x18b   :  { %v1976_v33 = vpop.f32.mrf.mxu2  ;;  %v2377_v34 = vpop.f32.mrf.mxu3 }
 0x18c   :  { %v2378_v35 = vadd.f32 %v2377_v34, %v1976_v33  ;;  %v1177_v36 = vpop.f32.mrf.mxu0  ;;  %v1578_v37 = vpop.f32.mrf.mxu1 }
 0x18d   :  { %v1579_v38 = vadd.f32 %v1578_v37, %v1177_v36  ;;  %v277_v34 = vpop.permute.xlu2 %276 }
 0x18e   :  { %2744 = vst [vmem:[#allocation2 + $0x128] sm:$0xff] %v2378_v35 }
 0x18f   :  { %2745 = vst [vmem:[#allocation2 + $0x130] sm:$0xff] %v1579_v38  ;;  %3016 = vmatmul.msk.f32.gmra.mxu0 %vm597_vm6, %v3528_v50  ;;  %3144 = vmatmul.msk.f32.gmra.mxu1 %vm598_vm7, %v3528_v50 }
 0x190   :  { %3272 = vmatmul.msk.f32.gmra.mxu2 %vm597_vm6, %v3528_v50  ;;  %3400 = vmatmul.msk.f32.gmra.mxu3 %vm598_vm7, %v3528_v50  ;;  %vm613_vm6 = vcmp.eq.s32.totalorder %v3865_v44, %v274_v27  ;;  %vm614_vm7 = vcmp.eq.s32.totalorder %v3877_v48, %v274_v27 }
 0x193   :  { %v1979_v40 = vpop.f32.mrf.mxu2  ;;  %v2380_v41 = vpop.f32.mrf.mxu3 }
 0x194   :  { %v2381_v42 = vadd.f32 %v2380_v41, %v1979_v40  ;;  %v1180_v43 = vpop.f32.mrf.mxu0  ;;  %v1581_v45 = vpop.f32.mrf.mxu1 }
 0x195   :  { %v1582_v46 = vadd.f32 %v1581_v45, %v1180_v43  ;;  %v280_v41 = vpop.permute.xlu0 %279 }
 0x196   :  { %2746 = vst [vmem:[#allocation2 + $0x138] sm:$0xff] %v2381_v42 }
 0x197   :  { %2747 = vst [vmem:[#allocation2 + $0x140] sm:$0xff] %v1582_v46  ;;  %3017 = vmatmul.msk.f32.gmra.mxu0 %vm599_vm8, %v3528_v50  ;;  %3145 = vmatmul.msk.f32.gmra.mxu1 %vm600_vm9, %v3528_v50 }
 0x198   :  { %3273 = vmatmul.msk.f32.gmra.mxu2 %vm599_vm8, %v3528_v50  ;;  %3401 = vmatmul.msk.f32.gmra.mxu3 %vm600_vm9, %v3528_v50  ;;  %vm615_vm8 = vcmp.eq.s32.totalorder %v3865_v44, %v277_v34  ;;  %vm616_vm9 = vcmp.eq.s32.totalorder %v3877_v48, %v277_v34 }
 0x19b   :  { %v1982_v49 = vpop.f32.mrf.mxu2  ;;  %v2383_v51 = vpop.f32.mrf.mxu3 }
 0x19c   :  { %v2384_v52 = vadd.f32 %v2383_v51, %v1982_v49  ;;  %v1183_v53 = vpop.f32.mrf.mxu0  ;;  %v1584_v54 = vpop.f32.mrf.mxu1 }
 0x19d   :  { %v1585_v55 = vadd.f32 %v1584_v54, %v1183_v53  ;;  %v283_v51 = vpop.permute.xlu1 %282 }
 0x19e   :  { %2748 = vst [vmem:[#allocation2 + $0x148] sm:$0xff] %v2384_v52 }
 0x19f   :  { %2749 = vst [vmem:[#allocation2 + $0x150] sm:$0xff] %v1585_v55  ;;  %3018 = vmatmul.msk.f32.gmra.mxu0 %vm601_vm10, %v3528_v50  ;;  %3146 = vmatmul.msk.f32.gmra.mxu1 %vm602_vm11, %v3528_v50 }
 0x1a0   :  { %3274 = vmatmul.msk.f32.gmra.mxu2 %vm601_vm10, %v3528_v50  ;;  %3402 = vmatmul.msk.f32.gmra.mxu3 %vm602_vm11, %v3528_v50  ;;  %vm617_vm10 = vcmp.eq.s32.totalorder %v3865_v44, %v280_v41  ;;  %vm618_vm11 = vcmp.eq.s32.totalorder %v3877_v48, %v280_v41 }
 0x1a3   :  { %v1985_v57 = vpop.f32.mrf.mxu2  ;;  %v2386_v58 = vpop.f32.mrf.mxu3 }
 0x1a4   :  { %v2387_v59 = vadd.f32 %v2386_v58, %v1985_v57  ;;  %v1186_v60 = vpop.f32.mrf.mxu0  ;;  %v1587_v61 = vpop.f32.mrf.mxu1 }
 0x1a5   :  { %v1588_v62 = vadd.f32 %v1587_v61, %v1186_v60  ;;  %v286_v58 = vpop.permute.xlu2 %285 }
 0x1a6   :  { %2750 = vst [vmem:[#allocation2 + $0x158] sm:$0xff] %v2387_v59 }
 0x1a7   :  { %2751 = vst [vmem:[#allocation2 + $0x160] sm:$0xff] %v1588_v62  ;;  %3019 = vmatmul.msk.f32.gmra.mxu0 %vm603_vm12, %v3528_v50  ;;  %3147 = vmatmul.msk.f32.gmra.mxu1 %vm604_vm13, %v3528_v50 }
 0x1a8   :  { %3275 = vmatmul.msk.f32.gmra.mxu2 %vm603_vm12, %v3528_v50  ;;  %3403 = vmatmul.msk.f32.gmra.mxu3 %vm604_vm13, %v3528_v50  ;;  %vm619_vm12 = vcmp.eq.s32.totalorder %v3865_v44, %v283_v51  ;;  %vm620_vm13 = vcmp.eq.s32.totalorder %v3877_v48, %v283_v51 }
 0x1ab   :  { %v1988_v0 = vpop.f32.mrf.mxu2  ;;  %v2389_v1 = vpop.f32.mrf.mxu3 }
 0x1ac   :  { %v2390_v2 = vadd.f32 %v2389_v1, %v1988_v0  ;;  %v1189_v3 = vpop.f32.mrf.mxu0  ;;  %v1590_v4 = vpop.f32.mrf.mxu1 }
 0x1ad   :  { %v1591_v5 = vadd.f32 %v1590_v4, %v1189_v3  ;;  %v289_v1 = vpop.permute.xlu0 %288 }
 0x1ae   :  { %2752 = vst [vmem:[#allocation2 + $0x168] sm:$0xff] %v2390_v2 }
 0x1af   :  { %2753 = vst [vmem:[#allocation2 + $0x170] sm:$0xff] %v1591_v5  ;;  %3020 = vmatmul.msk.f32.gmra.mxu0 %vm605_vm14, %v3528_v50  ;;  %3148 = vmatmul.msk.f32.gmra.mxu1 %vm606_vm15, %v3528_v50 }
 0x1b0   :  { %3276 = vmatmul.msk.f32.gmra.mxu2 %vm605_vm14, %v3528_v50  ;;  %3404 = vmatmul.msk.f32.gmra.mxu3 %vm606_vm15, %v3528_v50  ;;  %vm621_vm14 = vcmp.eq.s32.totalorder %v3865_v44, %v286_v58  ;;  %vm622_vm15 = vcmp.eq.s32.totalorder %v3877_v48, %v286_v58 }
 0x1b3   :  { %v1991_v7 = vpop.f32.mrf.mxu2  ;;  %v2392_v8 = vpop.f32.mrf.mxu3 }
 0x1b4   :  { %v2393_v9 = vadd.f32 %v2392_v8, %v1991_v7  ;;  %v1192_v10 = vpop.f32.mrf.mxu0  ;;  %v1593_v11 = vpop.f32.mrf.mxu1 }
 0x1b5   :  { %v1594_v12 = vadd.f32 %v1593_v11, %v1192_v10  ;;  %v292_v8 = vpop.permute.xlu1 %291 }
 0x1b6   :  { %2754 = vst [vmem:[#allocation2 + $0x178] sm:$0xff] %v2393_v9 }
 0x1b7   :  { %2755 = vst [vmem:[#allocation2 + $0x180] sm:$0xff] %v1594_v12  ;;  %3021 = vmatmul.msk.f32.gmra.mxu0 %vm607_vm0, %v3528_v50  ;;  %3149 = vmatmul.msk.f32.gmra.mxu1 %vm608_vm1, %v3528_v50 }
 0x1b8   :  { %3277 = vmatmul.msk.f32.gmra.mxu2 %vm607_vm0, %v3528_v50  ;;  %3405 = vmatmul.msk.f32.gmra.mxu3 %vm608_vm1, %v3528_v50  ;;  %vm623_vm0 = vcmp.eq.s32.totalorder %v3865_v44, %v289_v1  ;;  %vm624_vm1 = vcmp.eq.s32.totalorder %v3877_v48, %v289_v1 }
 0x1bb   :  { %v1994_v14 = vpop.f32.mrf.mxu2  ;;  %v2395_v15 = vpop.f32.mrf.mxu3 }
 0x1bc   :  { %v2396_v16 = vadd.f32 %v2395_v15, %v1994_v14  ;;  %v1195_v17 = vpop.f32.mrf.mxu0  ;;  %v1596_v18 = vpop.f32.mrf.mxu1 }
 0x1bd   :  { %v1597_v19 = vadd.f32 %v1596_v18, %v1195_v17  ;;  %v295_v15 = vpop.permute.xlu2 %294 }
 0x1be   :  { %2756 = vst [vmem:[#allocation2 + $0x188] sm:$0xff] %v2396_v16 }
 0x1bf   :  { %2757 = vst [vmem:[#allocation2 + $0x190] sm:$0xff] %v1597_v19  ;;  %3022 = vmatmul.msk.f32.gmra.mxu0 %vm609_vm2, %v3528_v50  ;;  %3150 = vmatmul.msk.f32.gmra.mxu1 %vm610_vm3, %v3528_v50 }
 0x1c0   :  { %3278 = vmatmul.msk.f32.gmra.mxu2 %vm609_vm2, %v3528_v50  ;;  %3406 = vmatmul.msk.f32.gmra.mxu3 %vm610_vm3, %v3528_v50  ;;  %vm625_vm2 = vcmp.eq.s32.totalorder %v3865_v44, %v292_v8  ;;  %vm626_vm3 = vcmp.eq.s32.totalorder %v3877_v48, %v292_v8 }
 0x1c3   :  { %v1997_v21 = vpop.f32.mrf.mxu2  ;;  %v2398_v22 = vpop.f32.mrf.mxu3 }
 0x1c4   :  { %v2399_v23 = vadd.f32 %v2398_v22, %v1997_v21  ;;  %v1198_v24 = vpop.f32.mrf.mxu0  ;;  %v1599_v25 = vpop.f32.mrf.mxu1 }
 0x1c5   :  { %v1600_v26 = vadd.f32 %v1599_v25, %v1198_v24  ;;  %v298_v22 = vpop.permute.xlu0 %297 }
 0x1c6   :  { %2758 = vst [vmem:[#allocation2 + $0x198] sm:$0xff] %v2399_v23 }
 0x1c7   :  { %2759 = vst [vmem:[#allocation2 + $0x1a0] sm:$0xff] %v1600_v26  ;;  %3023 = vmatmul.msk.f32.gmra.mxu0 %vm611_vm4, %v3528_v50  ;;  %3151 = vmatmul.msk.f32.gmra.mxu1 %vm612_vm5, %v3528_v50 }
 0x1c8   :  { %3279 = vmatmul.msk.f32.gmra.mxu2 %vm611_vm4, %v3528_v50  ;;  %3407 = vmatmul.msk.f32.gmra.mxu3 %vm612_vm5, %v3528_v50  ;;  %vm627_vm4 = vcmp.eq.s32.totalorder %v3865_v44, %v295_v15  ;;  %vm628_vm5 = vcmp.eq.s32.totalorder %v3877_v48, %v295_v15 }
 0x1cb   :  { %v2000_v28 = vpop.f32.mrf.mxu2  ;;  %v2401_v29 = vpop.f32.mrf.mxu3 }
 0x1cc   :  { %v2402_v30 = vadd.f32 %v2401_v29, %v2000_v28  ;;  %v1201_v31 = vpop.f32.mrf.mxu0  ;;  %v1602_v32 = vpop.f32.mrf.mxu1 }
 0x1cd   :  { %v1603_v33 = vadd.f32 %v1602_v32, %v1201_v31  ;;  %v301_v29 = vpop.permute.xlu1 %300 }
 0x1ce   :  { %2760 = vst [vmem:[#allocation2 + $0x1a8] sm:$0xff] %v2402_v30 }
 0x1cf   :  { %2761 = vst [vmem:[#allocation2 + $0x1b0] sm:$0xff] %v1603_v33  ;;  %3024 = vmatmul.msk.f32.gmra.mxu0 %vm613_vm6, %v3528_v50  ;;  %3152 = vmatmul.msk.f32.gmra.mxu1 %vm614_vm7, %v3528_v50 }
 0x1d0   :  { %3280 = vmatmul.msk.f32.gmra.mxu2 %vm613_vm6, %v3528_v50  ;;  %3408 = vmatmul.msk.f32.gmra.mxu3 %vm614_vm7, %v3528_v50  ;;  %vm629_vm6 = vcmp.eq.s32.totalorder %v3865_v44, %v298_v22  ;;  %vm630_vm7 = vcmp.eq.s32.totalorder %v3877_v48, %v298_v22 }
 0x1d3   :  { %v2003_v35 = vpop.f32.mrf.mxu2  ;;  %v2404_v36 = vpop.f32.mrf.mxu3 }
 0x1d4   :  { %v2405_v37 = vadd.f32 %v2404_v36, %v2003_v35  ;;  %v1204_v38 = vpop.f32.mrf.mxu0  ;;  %v1605_v39 = vpop.f32.mrf.mxu1 }
 0x1d5   :  { %v1606_v40 = vadd.f32 %v1605_v39, %v1204_v38  ;;  %v304_v36 = vpop.permute.xlu2 %303 }
 0x1d6   :  { %2762 = vst [vmem:[#allocation2 + $0x1b8] sm:$0xff] %v2405_v37 }
 0x1d7   :  { %2763 = vst [vmem:[#allocation2 + $0x1c0] sm:$0xff] %v1606_v40  ;;  %3025 = vmatmul.msk.f32.gmra.mxu0 %vm615_vm8, %v3528_v50  ;;  %3153 = vmatmul.msk.f32.gmra.mxu1 %vm616_vm9, %v3528_v50 }
 0x1d8   :  { %3281 = vmatmul.msk.f32.gmra.mxu2 %vm615_vm8, %v3528_v50  ;;  %3409 = vmatmul.msk.f32.gmra.mxu3 %vm616_vm9, %v3528_v50  ;;  %vm631_vm8 = vcmp.eq.s32.totalorder %v3865_v44, %v301_v29  ;;  %vm632_vm9 = vcmp.eq.s32.totalorder %v3877_v48, %v301_v29 }
 0x1db   :  { %v2006_v42 = vpop.f32.mrf.mxu2  ;;  %v2407_v43 = vpop.f32.mrf.mxu3 }
 0x1dc   :  { %v2408_v45 = vadd.f32 %v2407_v43, %v2006_v42  ;;  %v1207_v46 = vpop.f32.mrf.mxu0  ;;  %v1608_v47 = vpop.f32.mrf.mxu1 }
 0x1dd   :  { %v1609_v49 = vadd.f32 %v1608_v47, %v1207_v46  ;;  %v307_v43 = vpop.permute.xlu0 %306 }
 0x1de   :  { %2764 = vst [vmem:[#allocation2 + $0x1c8] sm:$0xff] %v2408_v45 }
 0x1df   :  { %2765 = vst [vmem:[#allocation2 + $0x1d0] sm:$0xff] %v1609_v49  ;;  %3026 = vmatmul.msk.f32.gmra.mxu0 %vm617_vm10, %v3528_v50  ;;  %3154 = vmatmul.msk.f32.gmra.mxu1 %vm618_vm11, %v3528_v50 }
 0x1e0   :  { %3282 = vmatmul.msk.f32.gmra.mxu2 %vm617_vm10, %v3528_v50  ;;  %3410 = vmatmul.msk.f32.gmra.mxu3 %vm618_vm11, %v3528_v50  ;;  %vm633_vm10 = vcmp.eq.s32.totalorder %v3865_v44, %v304_v36  ;;  %vm634_vm11 = vcmp.eq.s32.totalorder %v3877_v48, %v304_v36 }
 0x1e3   :  { %v2009_v52 = vpop.f32.mrf.mxu2  ;;  %v2410_v53 = vpop.f32.mrf.mxu3 }
 0x1e4   :  { %v2411_v54 = vadd.f32 %v2410_v53, %v2009_v52  ;;  %v1210_v55 = vpop.f32.mrf.mxu0  ;;  %v1611_v56 = vpop.f32.mrf.mxu1 }
 0x1e5   :  { %v1612_v57 = vadd.f32 %v1611_v56, %v1210_v55  ;;  %v310_v53 = vpop.permute.xlu1 %309 }
 0x1e6   :  { %2766 = vst [vmem:[#allocation2 + $0x1d8] sm:$0xff] %v2411_v54 }
 0x1e7   :  { %2767 = vst [vmem:[#allocation2 + $0x1e0] sm:$0xff] %v1612_v57  ;;  %3027 = vmatmul.msk.f32.gmra.mxu0 %vm619_vm12, %v3528_v50  ;;  %3155 = vmatmul.msk.f32.gmra.mxu1 %vm620_vm13, %v3528_v50 }
 0x1e8   :  { %3283 = vmatmul.msk.f32.gmra.mxu2 %vm619_vm12, %v3528_v50  ;;  %3411 = vmatmul.msk.f32.gmra.mxu3 %vm620_vm13, %v3528_v50  ;;  %vm635_vm12 = vcmp.eq.s32.totalorder %v3865_v44, %v307_v43  ;;  %vm636_vm13 = vcmp.eq.s32.totalorder %v3877_v48, %v307_v43 }
 0x1eb   :  { %v2012_v59 = vpop.f32.mrf.mxu2  ;;  %v2413_v60 = vpop.f32.mrf.mxu3 }
 0x1ec   :  { %v2414_v61 = vadd.f32 %v2413_v60, %v2012_v59  ;;  %v1213_v62 = vpop.f32.mrf.mxu0  ;;  %v1614_v63 = vpop.f32.mrf.mxu1 }
 0x1ed   :  { %v1615_v0 = vadd.f32 %v1614_v63, %v1213_v62  ;;  %v313_v60 = vpop.permute.xlu2 %312 }
 0x1ee   :  { %2768 = vst [vmem:[#allocation2 + $0x1e8] sm:$0xff] %v2414_v61 }
 0x1ef   :  { %2769 = vst [vmem:[#allocation2 + $0x1f0] sm:$0xff] %v1615_v0  ;;  %3028 = vmatmul.msk.f32.gmra.mxu0 %vm621_vm14, %v3528_v50  ;;  %3156 = vmatmul.msk.f32.gmra.mxu1 %vm622_vm15, %v3528_v50 }
 0x1f0   :  { %3284 = vmatmul.msk.f32.gmra.mxu2 %vm621_vm14, %v3528_v50  ;;  %3412 = vmatmul.msk.f32.gmra.mxu3 %vm622_vm15, %v3528_v50  ;;  %vm637_vm14 = vcmp.eq.s32.totalorder %v3865_v44, %v310_v53  ;;  %vm638_vm15 = vcmp.eq.s32.totalorder %v3877_v48, %v310_v53 }
 0x1f3   :  { %v2015_v2 = vpop.f32.mrf.mxu2  ;;  %v2416_v3 = vpop.f32.mrf.mxu3 }
 0x1f4   :  { %v2417_v4 = vadd.f32 %v2416_v3, %v2015_v2  ;;  %v1216_v5 = vpop.f32.mrf.mxu0  ;;  %v1617_v6 = vpop.f32.mrf.mxu1 }
 0x1f5   :  { %v1618_v7 = vadd.f32 %v1617_v6, %v1216_v5  ;;  %v316_v3 = vpop.permute.xlu0 %315 }
 0x1f6   :  { %2770 = vst [vmem:[#allocation2 + $0x1f8] sm:$0xff] %v2417_v4 }
 0x1f7   :  { %2771 = vst [vmem:[#allocation2 + $0x200] sm:$0xff] %v1618_v7  ;;  %3029 = vmatmul.msk.f32.gmra.mxu0 %vm623_vm0, %v3528_v50  ;;  %3157 = vmatmul.msk.f32.gmra.mxu1 %vm624_vm1, %v3528_v50 }
 0x1f8   :  { %3285 = vmatmul.msk.f32.gmra.mxu2 %vm623_vm0, %v3528_v50  ;;  %3413 = vmatmul.msk.f32.gmra.mxu3 %vm624_vm1, %v3528_v50  ;;  %vm639_vm0 = vcmp.eq.s32.totalorder %v3865_v44, %v313_v60  ;;  %vm640_vm1 = vcmp.eq.s32.totalorder %v3877_v48, %v313_v60 }
 0x1fb   :  { %v2018_v9 = vpop.f32.mrf.mxu2  ;;  %v2419_v10 = vpop.f32.mrf.mxu3 }
 0x1fc   :  { %v2420_v11 = vadd.f32 %v2419_v10, %v2018_v9  ;;  %v1219_v12 = vpop.f32.mrf.mxu0  ;;  %v1620_v13 = vpop.f32.mrf.mxu1 }
 0x1fd   :  { %v1621_v14 = vadd.f32 %v1620_v13, %v1219_v12  ;;  %v319_v10 = vpop.permute.xlu1 %318 }
 0x1fe   :  { %2772 = vst [vmem:[#allocation2 + $0x208] sm:$0xff] %v2420_v11 }
 0x1ff   :  { %2773 = vst [vmem:[#allocation2 + $0x210] sm:$0xff] %v1621_v14  ;;  %3030 = vmatmul.msk.f32.gmra.mxu0 %vm625_vm2, %v3528_v50  ;;  %3158 = vmatmul.msk.f32.gmra.mxu1 %vm626_vm3, %v3528_v50 }
 0x200   :  { %3286 = vmatmul.msk.f32.gmra.mxu2 %vm625_vm2, %v3528_v50  ;;  %3414 = vmatmul.msk.f32.gmra.mxu3 %vm626_vm3, %v3528_v50  ;;  %vm641_vm2 = vcmp.eq.s32.totalorder %v3865_v44, %v316_v3  ;;  %vm642_vm3 = vcmp.eq.s32.totalorder %v3877_v48, %v316_v3 }
 0x203   :  { %v2021_v16 = vpop.f32.mrf.mxu2  ;;  %v2422_v17 = vpop.f32.mrf.mxu3 }
 0x204   :  { %v2423_v18 = vadd.f32 %v2422_v17, %v2021_v16  ;;  %v1222_v19 = vpop.f32.mrf.mxu0  ;;  %v1623_v20 = vpop.f32.mrf.mxu1 }
 0x205   :  { %v1624_v21 = vadd.f32 %v1623_v20, %v1222_v19  ;;  %v322_v17 = vpop.permute.xlu2 %321 }
 0x206   :  { %2774 = vst [vmem:[#allocation2 + $0x218] sm:$0xff] %v2423_v18 }
 0x207   :  { %2775 = vst [vmem:[#allocation2 + $0x220] sm:$0xff] %v1624_v21  ;;  %3031 = vmatmul.msk.f32.gmra.mxu0 %vm627_vm4, %v3528_v50  ;;  %3159 = vmatmul.msk.f32.gmra.mxu1 %vm628_vm5, %v3528_v50 }
 0x208   :  { %3287 = vmatmul.msk.f32.gmra.mxu2 %vm627_vm4, %v3528_v50  ;;  %3415 = vmatmul.msk.f32.gmra.mxu3 %vm628_vm5, %v3528_v50  ;;  %vm643_vm4 = vcmp.eq.s32.totalorder %v3865_v44, %v319_v10  ;;  %vm644_vm5 = vcmp.eq.s32.totalorder %v3877_v48, %v319_v10 }
 0x20b   :  { %v2024_v23 = vpop.f32.mrf.mxu2  ;;  %v2425_v24 = vpop.f32.mrf.mxu3 }
 0x20c   :  { %v2426_v25 = vadd.f32 %v2425_v24, %v2024_v23  ;;  %v1225_v26 = vpop.f32.mrf.mxu0  ;;  %v1626_v27 = vpop.f32.mrf.mxu1 }
 0x20d   :  { %v1627_v28 = vadd.f32 %v1626_v27, %v1225_v26  ;;  %v325_v24 = vpop.permute.xlu0 %324 }
 0x20e   :  { %2776 = vst [vmem:[#allocation2 + $0x228] sm:$0xff] %v2426_v25 }
 0x20f   :  { %2777 = vst [vmem:[#allocation2 + $0x230] sm:$0xff] %v1627_v28  ;;  %3032 = vmatmul.msk.f32.gmra.mxu0 %vm629_vm6, %v3528_v50  ;;  %3160 = vmatmul.msk.f32.gmra.mxu1 %vm630_vm7, %v3528_v50 }
 0x210   :  { %3288 = vmatmul.msk.f32.gmra.mxu2 %vm629_vm6, %v3528_v50  ;;  %3416 = vmatmul.msk.f32.gmra.mxu3 %vm630_vm7, %v3528_v50  ;;  %vm645_vm6 = vcmp.eq.s32.totalorder %v3865_v44, %v322_v17  ;;  %vm646_vm7 = vcmp.eq.s32.totalorder %v3877_v48, %v322_v17 }
 0x213   :  { %v2027_v30 = vpop.f32.mrf.mxu2  ;;  %v2428_v31 = vpop.f32.mrf.mxu3 }
 0x214   :  { %v2429_v32 = vadd.f32 %v2428_v31, %v2027_v30  ;;  %v1228_v33 = vpop.f32.mrf.mxu0  ;;  %v1629_v34 = vpop.f32.mrf.mxu1 }
 0x215   :  { %v1630_v35 = vadd.f32 %v1629_v34, %v1228_v33  ;;  %v328_v31 = vpop.permute.xlu1 %327 }
 0x216   :  { %2778 = vst [vmem:[#allocation2 + $0x238] sm:$0xff] %v2429_v32 }
 0x217   :  { %2779 = vst [vmem:[#allocation2 + $0x240] sm:$0xff] %v1630_v35  ;;  %3033 = vmatmul.msk.f32.gmra.mxu0 %vm631_vm8, %v3528_v50  ;;  %3161 = vmatmul.msk.f32.gmra.mxu1 %vm632_vm9, %v3528_v50 }
 0x218   :  { %3289 = vmatmul.msk.f32.gmra.mxu2 %vm631_vm8, %v3528_v50  ;;  %3417 = vmatmul.msk.f32.gmra.mxu3 %vm632_vm9, %v3528_v50  ;;  %vm647_vm8 = vcmp.eq.s32.totalorder %v3865_v44, %v325_v24  ;;  %vm648_vm9 = vcmp.eq.s32.totalorder %v3877_v48, %v325_v24 }
 0x21b   :  { %v2030_v37 = vpop.f32.mrf.mxu2  ;;  %v2431_v38 = vpop.f32.mrf.mxu3 }
 0x21c   :  { %v2432_v39 = vadd.f32 %v2431_v38, %v2030_v37  ;;  %v1231_v40 = vpop.f32.mrf.mxu0  ;;  %v1632_v41 = vpop.f32.mrf.mxu1 }
 0x21d   :  { %v1633_v42 = vadd.f32 %v1632_v41, %v1231_v40  ;;  %v331_v38 = vpop.permute.xlu2 %330 }
 0x21e   :  { %2780 = vst [vmem:[#allocation2 + $0x248] sm:$0xff] %v2432_v39 }
 0x21f   :  { %2781 = vst [vmem:[#allocation2 + $0x250] sm:$0xff] %v1633_v42  ;;  %3034 = vmatmul.msk.f32.gmra.mxu0 %vm633_vm10, %v3528_v50  ;;  %3162 = vmatmul.msk.f32.gmra.mxu1 %vm634_vm11, %v3528_v50 }
 0x220   :  { %3290 = vmatmul.msk.f32.gmra.mxu2 %vm633_vm10, %v3528_v50  ;;  %3418 = vmatmul.msk.f32.gmra.mxu3 %vm634_vm11, %v3528_v50  ;;  %vm649_vm10 = vcmp.eq.s32.totalorder %v3865_v44, %v328_v31  ;;  %vm650_vm11 = vcmp.eq.s32.totalorder %v3877_v48, %v328_v31 }
 0x223   :  { %v2033_v45 = vpop.f32.mrf.mxu2  ;;  %v2434_v46 = vpop.f32.mrf.mxu3 }
 0x224   :  { %v2435_v47 = vadd.f32 %v2434_v46, %v2033_v45  ;;  %v1234_v49 = vpop.f32.mrf.mxu0  ;;  %v1635_v51 = vpop.f32.mrf.mxu1 }
 0x225   :  { %v1636_v52 = vadd.f32 %v1635_v51, %v1234_v49  ;;  %v334_v46 = vpop.permute.xlu0 %333 }
 0x226   :  { %2782 = vst [vmem:[#allocation2 + $0x258] sm:$0xff] %v2435_v47 }
 0x227   :  { %2783 = vst [vmem:[#allocation2 + $0x260] sm:$0xff] %v1636_v52  ;;  %3035 = vmatmul.msk.f32.gmra.mxu0 %vm635_vm12, %v3528_v50  ;;  %3163 = vmatmul.msk.f32.gmra.mxu1 %vm636_vm13, %v3528_v50 }
 0x228   :  { %3291 = vmatmul.msk.f32.gmra.mxu2 %vm635_vm12, %v3528_v50  ;;  %3419 = vmatmul.msk.f32.gmra.mxu3 %vm636_vm13, %v3528_v50  ;;  %vm651_vm12 = vcmp.eq.s32.totalorder %v3865_v44, %v331_v38  ;;  %vm652_vm13 = vcmp.eq.s32.totalorder %v3877_v48, %v331_v38 }
 0x22b   :  { %v2036_v54 = vpop.f32.mrf.mxu2  ;;  %v2437_v55 = vpop.f32.mrf.mxu3 }
 0x22c   :  { %v2438_v56 = vadd.f32 %v2437_v55, %v2036_v54  ;;  %v1237_v57 = vpop.f32.mrf.mxu0  ;;  %v1638_v58 = vpop.f32.mrf.mxu1 }
 0x22d   :  { %v1639_v59 = vadd.f32 %v1638_v58, %v1237_v57  ;;  %v337_v55 = vpop.permute.xlu1 %336 }
 0x22e   :  { %2784 = vst [vmem:[#allocation2 + $0x268] sm:$0xff] %v2438_v56 }
 0x22f   :  { %2785 = vst [vmem:[#allocation2 + $0x270] sm:$0xff] %v1639_v59  ;;  %3036 = vmatmul.msk.f32.gmra.mxu0 %vm637_vm14, %v3528_v50  ;;  %3164 = vmatmul.msk.f32.gmra.mxu1 %vm638_vm15, %v3528_v50 }
 0x230   :  { %3292 = vmatmul.msk.f32.gmra.mxu2 %vm637_vm14, %v3528_v50  ;;  %3420 = vmatmul.msk.f32.gmra.mxu3 %vm638_vm15, %v3528_v50  ;;  %vm653_vm14 = vcmp.eq.s32.totalorder %v3865_v44, %v334_v46  ;;  %vm654_vm15 = vcmp.eq.s32.totalorder %v3877_v48, %v334_v46 }
 0x233   :  { %v2039_v61 = vpop.f32.mrf.mxu2  ;;  %v2440_v62 = vpop.f32.mrf.mxu3 }
 0x234   :  { %v2441_v63 = vadd.f32 %v2440_v62, %v2039_v61  ;;  %v1240_v0 = vpop.f32.mrf.mxu0  ;;  %v1641_v1 = vpop.f32.mrf.mxu1 }
 0x235   :  { %v1642_v2 = vadd.f32 %v1641_v1, %v1240_v0  ;;  %v340_v62 = vpop.permute.xlu2 %339 }
 0x236   :  { %2786 = vst [vmem:[#allocation2 + $0x278] sm:$0xff] %v2441_v63 }
 0x237   :  { %2787 = vst [vmem:[#allocation2 + $0x280] sm:$0xff] %v1642_v2  ;;  %3037 = vmatmul.msk.f32.gmra.mxu0 %vm639_vm0, %v3528_v50  ;;  %3165 = vmatmul.msk.f32.gmra.mxu1 %vm640_vm1, %v3528_v50 }
 0x238   :  { %3293 = vmatmul.msk.f32.gmra.mxu2 %vm639_vm0, %v3528_v50  ;;  %3421 = vmatmul.msk.f32.gmra.mxu3 %vm640_vm1, %v3528_v50  ;;  %vm655_vm0 = vcmp.eq.s32.totalorder %v3865_v44, %v337_v55  ;;  %vm656_vm1 = vcmp.eq.s32.totalorder %v3877_v48, %v337_v55 }
 0x23b   :  { %v2042_v4 = vpop.f32.mrf.mxu2  ;;  %v2443_v5 = vpop.f32.mrf.mxu3 }
 0x23c   :  { %v2444_v6 = vadd.f32 %v2443_v5, %v2042_v4  ;;  %v1243_v7 = vpop.f32.mrf.mxu0  ;;  %v1644_v8 = vpop.f32.mrf.mxu1 }
 0x23d   :  { %v1645_v9 = vadd.f32 %v1644_v8, %v1243_v7  ;;  %v343_v5 = vpop.permute.xlu0 %342 }
 0x23e   :  { %2788 = vst [vmem:[#allocation2 + $0x288] sm:$0xff] %v2444_v6 }
 0x23f   :  { %2789 = vst [vmem:[#allocation2 + $0x290] sm:$0xff] %v1645_v9  ;;  %3038 = vmatmul.msk.f32.gmra.mxu0 %vm641_vm2, %v3528_v50  ;;  %3166 = vmatmul.msk.f32.gmra.mxu1 %vm642_vm3, %v3528_v50 }
 0x240   :  { %3294 = vmatmul.msk.f32.gmra.mxu2 %vm641_vm2, %v3528_v50  ;;  %3422 = vmatmul.msk.f32.gmra.mxu3 %vm642_vm3, %v3528_v50  ;;  %vm657_vm2 = vcmp.eq.s32.totalorder %v3865_v44, %v340_v62  ;;  %vm658_vm3 = vcmp.eq.s32.totalorder %v3877_v48, %v340_v62 }
 0x243   :  { %v2045_v11 = vpop.f32.mrf.mxu2  ;;  %v2446_v12 = vpop.f32.mrf.mxu3 }
 0x244   :  { %v2447_v13 = vadd.f32 %v2446_v12, %v2045_v11  ;;  %v1246_v14 = vpop.f32.mrf.mxu0  ;;  %v1647_v15 = vpop.f32.mrf.mxu1 }
 0x245   :  { %v1648_v16 = vadd.f32 %v1647_v15, %v1246_v14  ;;  %v346_v12 = vpop.permute.xlu1 %345 }
 0x246   :  { %2790 = vst [vmem:[#allocation2 + $0x298] sm:$0xff] %v2447_v13 }
 0x247   :  { %2791 = vst [vmem:[#allocation2 + $0x2a0] sm:$0xff] %v1648_v16  ;;  %3039 = vmatmul.msk.f32.gmra.mxu0 %vm643_vm4, %v3528_v50  ;;  %3167 = vmatmul.msk.f32.gmra.mxu1 %vm644_vm5, %v3528_v50 }
 0x248   :  { %3295 = vmatmul.msk.f32.gmra.mxu2 %vm643_vm4, %v3528_v50  ;;  %3423 = vmatmul.msk.f32.gmra.mxu3 %vm644_vm5, %v3528_v50  ;;  %vm659_vm4 = vcmp.eq.s32.totalorder %v3865_v44, %v343_v5  ;;  %vm660_vm5 = vcmp.eq.s32.totalorder %v3877_v48, %v343_v5 }
 0x24b   :  { %v2048_v18 = vpop.f32.mrf.mxu2  ;;  %v2449_v19 = vpop.f32.mrf.mxu3 }
 0x24c   :  { %v2450_v20 = vadd.f32 %v2449_v19, %v2048_v18  ;;  %v1249_v21 = vpop.f32.mrf.mxu0  ;;  %v1650_v22 = vpop.f32.mrf.mxu1 }
 0x24d   :  { %v1651_v23 = vadd.f32 %v1650_v22, %v1249_v21  ;;  %v349_v19 = vpop.permute.xlu2 %348 }
 0x24e   :  { %2792 = vst [vmem:[#allocation2 + $0x2a8] sm:$0xff] %v2450_v20 }
 0x24f   :  { %2793 = vst [vmem:[#allocation2 + $0x2b0] sm:$0xff] %v1651_v23  ;;  %3040 = vmatmul.msk.f32.gmra.mxu0 %vm645_vm6, %v3528_v50  ;;  %3168 = vmatmul.msk.f32.gmra.mxu1 %vm646_vm7, %v3528_v50 }
 0x250   :  { %3296 = vmatmul.msk.f32.gmra.mxu2 %vm645_vm6, %v3528_v50  ;;  %3424 = vmatmul.msk.f32.gmra.mxu3 %vm646_vm7, %v3528_v50  ;;  %vm661_vm6 = vcmp.eq.s32.totalorder %v3865_v44, %v346_v12  ;;  %vm662_vm7 = vcmp.eq.s32.totalorder %v3877_v48, %v346_v12 }
 0x253   :  { %v2051_v25 = vpop.f32.mrf.mxu2  ;;  %v2452_v26 = vpop.f32.mrf.mxu3 }
 0x254   :  { %v2453_v27 = vadd.f32 %v2452_v26, %v2051_v25  ;;  %v1252_v28 = vpop.f32.mrf.mxu0  ;;  %v1653_v29 = vpop.f32.mrf.mxu1 }
 0x255   :  { %v1654_v30 = vadd.f32 %v1653_v29, %v1252_v28  ;;  %v352_v26 = vpop.permute.xlu0 %351 }
 0x256   :  { %2794 = vst [vmem:[#allocation2 + $0x2b8] sm:$0xff] %v2453_v27 }
 0x257   :  { %2795 = vst [vmem:[#allocation2 + $0x2c0] sm:$0xff] %v1654_v30  ;;  %3041 = vmatmul.msk.f32.gmra.mxu0 %vm647_vm8, %v3528_v50  ;;  %3169 = vmatmul.msk.f32.gmra.mxu1 %vm648_vm9, %v3528_v50 }
 0x258   :  { %3297 = vmatmul.msk.f32.gmra.mxu2 %vm647_vm8, %v3528_v50  ;;  %3425 = vmatmul.msk.f32.gmra.mxu3 %vm648_vm9, %v3528_v50  ;;  %vm663_vm8 = vcmp.eq.s32.totalorder %v3865_v44, %v349_v19  ;;  %vm664_vm9 = vcmp.eq.s32.totalorder %v3877_v48, %v349_v19 }
 0x25b   :  { %v2054_v32 = vpop.f32.mrf.mxu2  ;;  %v2455_v33 = vpop.f32.mrf.mxu3 }
 0x25c   :  { %v2456_v34 = vadd.f32 %v2455_v33, %v2054_v32  ;;  %v1255_v35 = vpop.f32.mrf.mxu0  ;;  %v1656_v36 = vpop.f32.mrf.mxu1 }
 0x25d   :  { %v1657_v37 = vadd.f32 %v1656_v36, %v1255_v35  ;;  %v355_v33 = vpop.permute.xlu1 %354 }
 0x25e   :  { %2796 = vst [vmem:[#allocation2 + $0x2c8] sm:$0xff] %v2456_v34 }
 0x25f   :  { %2797 = vst [vmem:[#allocation2 + $0x2d0] sm:$0xff] %v1657_v37  ;;  %3042 = vmatmul.msk.f32.gmra.mxu0 %vm649_vm10, %v3528_v50  ;;  %3170 = vmatmul.msk.f32.gmra.mxu1 %vm650_vm11, %v3528_v50 }
 0x260   :  { %3298 = vmatmul.msk.f32.gmra.mxu2 %vm649_vm10, %v3528_v50  ;;  %3426 = vmatmul.msk.f32.gmra.mxu3 %vm650_vm11, %v3528_v50  ;;  %vm665_vm10 = vcmp.eq.s32.totalorder %v3865_v44, %v352_v26  ;;  %vm666_vm11 = vcmp.eq.s32.totalorder %v3877_v48, %v352_v26 }
 0x263   :  { %v2057_v39 = vpop.f32.mrf.mxu2  ;;  %v2458_v40 = vpop.f32.mrf.mxu3 }
 0x264   :  { %v2459_v41 = vadd.f32 %v2458_v40, %v2057_v39  ;;  %v1258_v42 = vpop.f32.mrf.mxu0  ;;  %v1659_v43 = vpop.f32.mrf.mxu1 }
 0x265   :  { %v1660_v45 = vadd.f32 %v1659_v43, %v1258_v42  ;;  %v358_v40 = vpop.permute.xlu2 %357 }
 0x266   :  { %2798 = vst [vmem:[#allocation2 + $0x2d8] sm:$0xff] %v2459_v41 }
 0x267   :  { %2799 = vst [vmem:[#allocation2 + $0x2e0] sm:$0xff] %v1660_v45  ;;  %3043 = vmatmul.msk.f32.gmra.mxu0 %vm651_vm12, %v3528_v50  ;;  %3171 = vmatmul.msk.f32.gmra.mxu1 %vm652_vm13, %v3528_v50 }
 0x268   :  { %3299 = vmatmul.msk.f32.gmra.mxu2 %vm651_vm12, %v3528_v50  ;;  %3427 = vmatmul.msk.f32.gmra.mxu3 %vm652_vm13, %v3528_v50  ;;  %vm667_vm12 = vcmp.eq.s32.totalorder %v3865_v44, %v355_v33  ;;  %vm668_vm13 = vcmp.eq.s32.totalorder %v3877_v48, %v355_v33 }
 0x26b   :  { %v2060_v47 = vpop.f32.mrf.mxu2  ;;  %v2461_v49 = vpop.f32.mrf.mxu3 }
 0x26c   :  { %v2462_v51 = vadd.f32 %v2461_v49, %v2060_v47  ;;  %v1261_v52 = vpop.f32.mrf.mxu0  ;;  %v1662_v53 = vpop.f32.mrf.mxu1 }
 0x26d   :  { %v1663_v54 = vadd.f32 %v1662_v53, %v1261_v52  ;;  %v361_v49 = vpop.permute.xlu0 %360 }
 0x26e   :  { %2800 = vst [vmem:[#allocation2 + $0x2e8] sm:$0xff] %v2462_v51 }
 0x26f   :  { %2801 = vst [vmem:[#allocation2 + $0x2f0] sm:$0xff] %v1663_v54  ;;  %3044 = vmatmul.msk.f32.gmra.mxu0 %vm653_vm14, %v3528_v50  ;;  %3172 = vmatmul.msk.f32.gmra.mxu1 %vm654_vm15, %v3528_v50 }
 0x270   :  { %3300 = vmatmul.msk.f32.gmra.mxu2 %vm653_vm14, %v3528_v50  ;;  %3428 = vmatmul.msk.f32.gmra.mxu3 %vm654_vm15, %v3528_v50  ;;  %vm669_vm14 = vcmp.eq.s32.totalorder %v3865_v44, %v358_v40  ;;  %vm670_vm15 = vcmp.eq.s32.totalorder %v3877_v48, %v358_v40 }
 0x273   :  { %v2063_v56 = vpop.f32.mrf.mxu2  ;;  %v2464_v57 = vpop.f32.mrf.mxu3 }
 0x274   :  { %v2465_v58 = vadd.f32 %v2464_v57, %v2063_v56  ;;  %v1264_v59 = vpop.f32.mrf.mxu0  ;;  %v1665_v60 = vpop.f32.mrf.mxu1 }
 0x275   :  { %v1666_v61 = vadd.f32 %v1665_v60, %v1264_v59  ;;  %v364_v57 = vpop.permute.xlu1 %363 }
 0x276   :  { %2802 = vst [vmem:[#allocation2 + $0x2f8] sm:$0xff] %v2465_v58 }
 0x277   :  { %2803 = vst [vmem:[#allocation2 + $0x300] sm:$0xff] %v1666_v61  ;;  %3045 = vmatmul.msk.f32.gmra.mxu0 %vm655_vm0, %v3528_v50  ;;  %3173 = vmatmul.msk.f32.gmra.mxu1 %vm656_vm1, %v3528_v50 }
 0x278   :  { %3301 = vmatmul.msk.f32.gmra.mxu2 %vm655_vm0, %v3528_v50  ;;  %3429 = vmatmul.msk.f32.gmra.mxu3 %vm656_vm1, %v3528_v50  ;;  %vm671_vm0 = vcmp.eq.s32.totalorder %v3865_v44, %v361_v49  ;;  %vm672_vm1 = vcmp.eq.s32.totalorder %v3877_v48, %v361_v49 }
 0x27b   :  { %v2066_v63 = vpop.f32.mrf.mxu2  ;;  %v2467_v0 = vpop.f32.mrf.mxu3 }
 0x27c   :  { %v2468_v1 = vadd.f32 %v2467_v0, %v2066_v63  ;;  %v1267_v2 = vpop.f32.mrf.mxu0  ;;  %v1668_v3 = vpop.f32.mrf.mxu1 }
 0x27d   :  { %v1669_v4 = vadd.f32 %v1668_v3, %v1267_v2  ;;  %v367_v0 = vpop.permute.xlu2 %366 }
 0x27e   :  { %2804 = vst [vmem:[#allocation2 + $0x308] sm:$0xff] %v2468_v1 }
 0x27f   :  { %2805 = vst [vmem:[#allocation2 + $0x310] sm:$0xff] %v1669_v4  ;;  %3046 = vmatmul.msk.f32.gmra.mxu0 %vm657_vm2, %v3528_v50  ;;  %3174 = vmatmul.msk.f32.gmra.mxu1 %vm658_vm3, %v3528_v50 }
 0x280   :  { %3302 = vmatmul.msk.f32.gmra.mxu2 %vm657_vm2, %v3528_v50  ;;  %3430 = vmatmul.msk.f32.gmra.mxu3 %vm658_vm3, %v3528_v50  ;;  %vm673_vm2 = vcmp.eq.s32.totalorder %v3865_v44, %v364_v57  ;;  %vm674_vm3 = vcmp.eq.s32.totalorder %v3877_v48, %v364_v57 }
 0x283   :  { %v2069_v6 = vpop.f32.mrf.mxu2  ;;  %v2470_v7 = vpop.f32.mrf.mxu3 }
 0x284   :  { %v2471_v8 = vadd.f32 %v2470_v7, %v2069_v6  ;;  %v1270_v9 = vpop.f32.mrf.mxu0  ;;  %v1671_v10 = vpop.f32.mrf.mxu1 }
 0x285   :  { %v1672_v11 = vadd.f32 %v1671_v10, %v1270_v9  ;;  %v370_v7 = vpop.permute.xlu0 %369 }
 0x286   :  { %2806 = vst [vmem:[#allocation2 + $0x318] sm:$0xff] %v2471_v8 }
 0x287   :  { %2807 = vst [vmem:[#allocation2 + $0x320] sm:$0xff] %v1672_v11  ;;  %3047 = vmatmul.msk.f32.gmra.mxu0 %vm659_vm4, %v3528_v50  ;;  %3175 = vmatmul.msk.f32.gmra.mxu1 %vm660_vm5, %v3528_v50 }
 0x288   :  { %3303 = vmatmul.msk.f32.gmra.mxu2 %vm659_vm4, %v3528_v50  ;;  %3431 = vmatmul.msk.f32.gmra.mxu3 %vm660_vm5, %v3528_v50  ;;  %vm675_vm4 = vcmp.eq.s32.totalorder %v3865_v44, %v367_v0  ;;  %vm676_vm5 = vcmp.eq.s32.totalorder %v3877_v48, %v367_v0 }
 0x28b   :  { %v2072_v13 = vpop.f32.mrf.mxu2  ;;  %v2473_v14 = vpop.f32.mrf.mxu3 }
 0x28c   :  { %v2474_v15 = vadd.f32 %v2473_v14, %v2072_v13  ;;  %v1273_v16 = vpop.f32.mrf.mxu0  ;;  %v1674_v17 = vpop.f32.mrf.mxu1 }
 0x28d   :  { %v1675_v18 = vadd.f32 %v1674_v17, %v1273_v16  ;;  %v373_v14 = vpop.permute.xlu1 %372 }
 0x28e   :  { %2808 = vst [vmem:[#allocation2 + $0x328] sm:$0xff] %v2474_v15 }
 0x28f   :  { %2809 = vst [vmem:[#allocation2 + $0x330] sm:$0xff] %v1675_v18  ;;  %3048 = vmatmul.msk.f32.gmra.mxu0 %vm661_vm6, %v3528_v50  ;;  %3176 = vmatmul.msk.f32.gmra.mxu1 %vm662_vm7, %v3528_v50 }
 0x290   :  { %3304 = vmatmul.msk.f32.gmra.mxu2 %vm661_vm6, %v3528_v50  ;;  %3432 = vmatmul.msk.f32.gmra.mxu3 %vm662_vm7, %v3528_v50  ;;  %vm677_vm6 = vcmp.eq.s32.totalorder %v3865_v44, %v370_v7  ;;  %vm678_vm7 = vcmp.eq.s32.totalorder %v3877_v48, %v370_v7 }
 0x293   :  { %v2075_v20 = vpop.f32.mrf.mxu2  ;;  %v2476_v21 = vpop.f32.mrf.mxu3 }
 0x294   :  { %v2477_v22 = vadd.f32 %v2476_v21, %v2075_v20  ;;  %v1276_v23 = vpop.f32.mrf.mxu0  ;;  %v1677_v24 = vpop.f32.mrf.mxu1 }
 0x295   :  { %v1678_v25 = vadd.f32 %v1677_v24, %v1276_v23  ;;  %v376_v21 = vpop.permute.xlu2 %375 }
 0x296   :  { %2810 = vst [vmem:[#allocation2 + $0x338] sm:$0xff] %v2477_v22 }
 0x297   :  { %2811 = vst [vmem:[#allocation2 + $0x340] sm:$0xff] %v1678_v25  ;;  %3049 = vmatmul.msk.f32.gmra.mxu0 %vm663_vm8, %v3528_v50  ;;  %3177 = vmatmul.msk.f32.gmra.mxu1 %vm664_vm9, %v3528_v50 }
 0x298   :  { %3305 = vmatmul.msk.f32.gmra.mxu2 %vm663_vm8, %v3528_v50  ;;  %3433 = vmatmul.msk.f32.gmra.mxu3 %vm664_vm9, %v3528_v50  ;;  %vm679_vm8 = vcmp.eq.s32.totalorder %v3865_v44, %v373_v14  ;;  %vm680_vm9 = vcmp.eq.s32.totalorder %v3877_v48, %v373_v14 }
 0x29b   :  { %v2078_v27 = vpop.f32.mrf.mxu2  ;;  %v2479_v28 = vpop.f32.mrf.mxu3 }
 0x29c   :  { %v2480_v29 = vadd.f32 %v2479_v28, %v2078_v27  ;;  %v1279_v30 = vpop.f32.mrf.mxu0  ;;  %v1680_v31 = vpop.f32.mrf.mxu1 }
 0x29d   :  { %v1681_v32 = vadd.f32 %v1680_v31, %v1279_v30  ;;  %v379_v28 = vpop.permute.xlu0 %378 }
 0x29e   :  { %2812 = vst [vmem:[#allocation2 + $0x348] sm:$0xff] %v2480_v29 }
 0x29f   :  { %2813 = vst [vmem:[#allocation2 + $0x350] sm:$0xff] %v1681_v32  ;;  %3050 = vmatmul.msk.f32.gmra.mxu0 %vm665_vm10, %v3528_v50  ;;  %3178 = vmatmul.msk.f32.gmra.mxu1 %vm666_vm11, %v3528_v50 }
 0x2a0   :  { %3306 = vmatmul.msk.f32.gmra.mxu2 %vm665_vm10, %v3528_v50  ;;  %3434 = vmatmul.msk.f32.gmra.mxu3 %vm666_vm11, %v3528_v50  ;;  %vm681_vm10 = vcmp.eq.s32.totalorder %v3865_v44, %v376_v21  ;;  %vm682_vm11 = vcmp.eq.s32.totalorder %v3877_v48, %v376_v21 }
 0x2a3   :  { %v2081_v34 = vpop.f32.mrf.mxu2  ;;  %v2482_v35 = vpop.f32.mrf.mxu3 }
 0x2a4   :  { %v2483_v36 = vadd.f32 %v2482_v35, %v2081_v34  ;;  %v1282_v37 = vpop.f32.mrf.mxu0  ;;  %v1683_v38 = vpop.f32.mrf.mxu1 }
 0x2a5   :  { %v1684_v39 = vadd.f32 %v1683_v38, %v1282_v37  ;;  %v382_v35 = vpop.permute.xlu1 %381 }
 0x2a6   :  { %2814 = vst [vmem:[#allocation2 + $0x358] sm:$0xff] %v2483_v36 }
 0x2a7   :  { %2815 = vst [vmem:[#allocation2 + $0x360] sm:$0xff] %v1684_v39  ;;  %3051 = vmatmul.msk.f32.gmra.mxu0 %vm667_vm12, %v3528_v50  ;;  %3179 = vmatmul.msk.f32.gmra.mxu1 %vm668_vm13, %v3528_v50 }
 0x2a8   :  { %3307 = vmatmul.msk.f32.gmra.mxu2 %vm667_vm12, %v3528_v50  ;;  %3435 = vmatmul.msk.f32.gmra.mxu3 %vm668_vm13, %v3528_v50  ;;  %vm683_vm12 = vcmp.eq.s32.totalorder %v3865_v44, %v379_v28  ;;  %vm684_vm13 = vcmp.eq.s32.totalorder %v3877_v48, %v379_v28 }
 0x2ab   :  { %v2084_v41 = vpop.f32.mrf.mxu2  ;;  %v2485_v42 = vpop.f32.mrf.mxu3 }
 0x2ac   :  { %v2486_v43 = vadd.f32 %v2485_v42, %v2084_v41  ;;  %v1285_v45 = vpop.f32.mrf.mxu0  ;;  %v1686_v46 = vpop.f32.mrf.mxu1 }
 0x2ad   :  { %v1687_v47 = vadd.f32 %v1686_v46, %v1285_v45  ;;  %v385_v42 = vpop.permute.xlu2 %384 }
 0x2ae   :  { %2816 = vst [vmem:[#allocation2 + $0x368] sm:$0xff] %v2486_v43 }
 0x2af   :  { %2817 = vst [vmem:[#allocation2 + $0x370] sm:$0xff] %v1687_v47  ;;  %3052 = vmatmul.msk.f32.gmra.mxu0 %vm669_vm14, %v3528_v50  ;;  %3180 = vmatmul.msk.f32.gmra.mxu1 %vm670_vm15, %v3528_v50 }
 0x2b0   :  { %3308 = vmatmul.msk.f32.gmra.mxu2 %vm669_vm14, %v3528_v50  ;;  %3436 = vmatmul.msk.f32.gmra.mxu3 %vm670_vm15, %v3528_v50  ;;  %vm685_vm14 = vcmp.eq.s32.totalorder %v3865_v44, %v382_v35  ;;  %vm686_vm15 = vcmp.eq.s32.totalorder %v3877_v48, %v382_v35 }
 0x2b3   :  { %v2087_v51 = vpop.f32.mrf.mxu2  ;;  %v2488_v52 = vpop.f32.mrf.mxu3 }
 0x2b4   :  { %v2489_v53 = vadd.f32 %v2488_v52, %v2087_v51  ;;  %v1288_v54 = vpop.f32.mrf.mxu0  ;;  %v1689_v55 = vpop.f32.mrf.mxu1 }
 0x2b5   :  { %v1690_v56 = vadd.f32 %v1689_v55, %v1288_v54  ;;  %v388_v52 = vpop.permute.xlu0 %387 }
 0x2b6   :  { %2818 = vst [vmem:[#allocation2 + $0x378] sm:$0xff] %v2489_v53 }
 0x2b7   :  { %2819 = vst [vmem:[#allocation2 + $0x380] sm:$0xff] %v1690_v56  ;;  %3053 = vmatmul.msk.f32.gmra.mxu0 %vm671_vm0, %v3528_v50  ;;  %3181 = vmatmul.msk.f32.gmra.mxu1 %vm672_vm1, %v3528_v50 }
 0x2b8   :  { %3309 = vmatmul.msk.f32.gmra.mxu2 %vm671_vm0, %v3528_v50  ;;  %3437 = vmatmul.msk.f32.gmra.mxu3 %vm672_vm1, %v3528_v50  ;;  %vm687_vm0 = vcmp.eq.s32.totalorder %v3865_v44, %v385_v42  ;;  %vm688_vm1 = vcmp.eq.s32.totalorder %v3877_v48, %v385_v42 }
 0x2bb   :  { %v2090_v58 = vpop.f32.mrf.mxu2  ;;  %v2491_v59 = vpop.f32.mrf.mxu3 }
 0x2bc   :  { %v2492_v60 = vadd.f32 %v2491_v59, %v2090_v58  ;;  %v1291_v61 = vpop.f32.mrf.mxu0  ;;  %v1692_v62 = vpop.f32.mrf.mxu1 }
 0x2bd   :  { %v1693_v63 = vadd.f32 %v1692_v62, %v1291_v61  ;;  %v391_v59 = vpop.permute.xlu1 %390 }
 0x2be   :  { %2820 = vst [vmem:[#allocation2 + $0x388] sm:$0xff] %v2492_v60 }
 0x2bf   :  { %2821 = vst [vmem:[#allocation2 + $0x390] sm:$0xff] %v1693_v63  ;;  %3054 = vmatmul.msk.f32.gmra.mxu0 %vm673_vm2, %v3528_v50  ;;  %3182 = vmatmul.msk.f32.gmra.mxu1 %vm674_vm3, %v3528_v50 }
 0x2c0   :  { %3310 = vmatmul.msk.f32.gmra.mxu2 %vm673_vm2, %v3528_v50  ;;  %3438 = vmatmul.msk.f32.gmra.mxu3 %vm674_vm3, %v3528_v50  ;;  %vm689_vm2 = vcmp.eq.s32.totalorder %v3865_v44, %v388_v52  ;;  %vm690_vm3 = vcmp.eq.s32.totalorder %v3877_v48, %v388_v52 }
 0x2c3   :  { %v2093_v1 = vpop.f32.mrf.mxu2  ;;  %v2494_v2 = vpop.f32.mrf.mxu3 }
 0x2c4   :  { %v2495_v3 = vadd.f32 %v2494_v2, %v2093_v1  ;;  %v1294_v4 = vpop.f32.mrf.mxu0  ;;  %v1695_v5 = vpop.f32.mrf.mxu1 }
 0x2c5   :  { %v1696_v6 = vadd.f32 %v1695_v5, %v1294_v4  ;;  %v394_v2 = vpop.permute.xlu2 %393 }
 0x2c6   :  { %2822 = vst [vmem:[#allocation2 + $0x398] sm:$0xff] %v2495_v3 }
 0x2c7   :  { %2823 = vst [vmem:[#allocation2 + $0x3a0] sm:$0xff] %v1696_v6  ;;  %3055 = vmatmul.msk.f32.gmra.mxu0 %vm675_vm4, %v3528_v50  ;;  %3183 = vmatmul.msk.f32.gmra.mxu1 %vm676_vm5, %v3528_v50 }
 0x2c8   :  { %3311 = vmatmul.msk.f32.gmra.mxu2 %vm675_vm4, %v3528_v50  ;;  %3439 = vmatmul.msk.f32.gmra.mxu3 %vm676_vm5, %v3528_v50  ;;  %vm691_vm4 = vcmp.eq.s32.totalorder %v3865_v44, %v391_v59  ;;  %vm692_vm5 = vcmp.eq.s32.totalorder %v3877_v48, %v391_v59 }
 0x2cb   :  { %v2096_v8 = vpop.f32.mrf.mxu2  ;;  %v2497_v9 = vpop.f32.mrf.mxu3 }
 0x2cc   :  { %v2498_v10 = vadd.f32 %v2497_v9, %v2096_v8  ;;  %v1297_v11 = vpop.f32.mrf.mxu0  ;;  %v1698_v12 = vpop.f32.mrf.mxu1 }
 0x2cd   :  { %v1699_v13 = vadd.f32 %v1698_v12, %v1297_v11  ;;  %v397_v9 = vpop.permute.xlu0 %396 }
 0x2ce   :  { %2824 = vst [vmem:[#allocation2 + $0x3a8] sm:$0xff] %v2498_v10 }
 0x2cf   :  { %2825 = vst [vmem:[#allocation2 + $0x3b0] sm:$0xff] %v1699_v13  ;;  %3056 = vmatmul.msk.f32.gmra.mxu0 %vm677_vm6, %v3528_v50  ;;  %3184 = vmatmul.msk.f32.gmra.mxu1 %vm678_vm7, %v3528_v50 }
 0x2d0   :  { %3312 = vmatmul.msk.f32.gmra.mxu2 %vm677_vm6, %v3528_v50  ;;  %3440 = vmatmul.msk.f32.gmra.mxu3 %vm678_vm7, %v3528_v50  ;;  %vm693_vm6 = vcmp.eq.s32.totalorder %v3865_v44, %v394_v2  ;;  %vm694_vm7 = vcmp.eq.s32.totalorder %v3877_v48, %v394_v2 }
 0x2d3   :  { %v2099_v15 = vpop.f32.mrf.mxu2  ;;  %v2500_v16 = vpop.f32.mrf.mxu3 }
 0x2d4   :  { %v2501_v17 = vadd.f32 %v2500_v16, %v2099_v15  ;;  %v1300_v18 = vpop.f32.mrf.mxu0  ;;  %v1701_v19 = vpop.f32.mrf.mxu1 }
 0x2d5   :  { %v1702_v20 = vadd.f32 %v1701_v19, %v1300_v18  ;;  %v400_v16 = vpop.permute.xlu1 %399 }
 0x2d6   :  { %2826 = vst [vmem:[#allocation2 + $0x3b8] sm:$0xff] %v2501_v17 }
 0x2d7   :  { %2827 = vst [vmem:[#allocation2 + $0x3c0] sm:$0xff] %v1702_v20  ;;  %3057 = vmatmul.msk.f32.gmra.mxu0 %vm679_vm8, %v3528_v50  ;;  %3185 = vmatmul.msk.f32.gmra.mxu1 %vm680_vm9, %v3528_v50 }
 0x2d8   :  { %3313 = vmatmul.msk.f32.gmra.mxu2 %vm679_vm8, %v3528_v50  ;;  %3441 = vmatmul.msk.f32.gmra.mxu3 %vm680_vm9, %v3528_v50  ;;  %vm695_vm8 = vcmp.eq.s32.totalorder %v3865_v44, %v397_v9  ;;  %vm696_vm9 = vcmp.eq.s32.totalorder %v3877_v48, %v397_v9 }
 0x2db   :  { %v2102_v22 = vpop.f32.mrf.mxu2  ;;  %v2503_v23 = vpop.f32.mrf.mxu3 }
 0x2dc   :  { %v2504_v24 = vadd.f32 %v2503_v23, %v2102_v22  ;;  %v1303_v25 = vpop.f32.mrf.mxu0  ;;  %v1704_v26 = vpop.f32.mrf.mxu1 }
 0x2dd   :  { %v1705_v27 = vadd.f32 %v1704_v26, %v1303_v25  ;;  %v403_v23 = vpop.permute.xlu2 %402 }
 0x2de   :  { %2828 = vst [vmem:[#allocation2 + $0x3c8] sm:$0xff] %v2504_v24 }
 0x2df   :  { %2829 = vst [vmem:[#allocation2 + $0x3d0] sm:$0xff] %v1705_v27  ;;  %3058 = vmatmul.msk.f32.gmra.mxu0 %vm681_vm10, %v3528_v50  ;;  %3186 = vmatmul.msk.f32.gmra.mxu1 %vm682_vm11, %v3528_v50 }
 0x2e0   :  { %3314 = vmatmul.msk.f32.gmra.mxu2 %vm681_vm10, %v3528_v50  ;;  %3442 = vmatmul.msk.f32.gmra.mxu3 %vm682_vm11, %v3528_v50  ;;  %vm697_vm10 = vcmp.eq.s32.totalorder %v3865_v44, %v400_v16  ;;  %vm698_vm11 = vcmp.eq.s32.totalorder %v3877_v48, %v400_v16 }
 0x2e3   :  { %v2105_v29 = vpop.f32.mrf.mxu2  ;;  %v2506_v30 = vpop.f32.mrf.mxu3 }
 0x2e4   :  { %v2507_v31 = vadd.f32 %v2506_v30, %v2105_v29  ;;  %v1306_v32 = vpop.f32.mrf.mxu0  ;;  %v1707_v33 = vpop.f32.mrf.mxu1 }
 0x2e5   :  { %v1708_v34 = vadd.f32 %v1707_v33, %v1306_v32  ;;  %v406_v30 = vpop.permute.xlu0 %405 }
 0x2e6   :  { %2830 = vst [vmem:[#allocation2 + $0x3d8] sm:$0xff] %v2507_v31 }
 0x2e7   :  { %2831 = vst [vmem:[#allocation2 + $0x3e0] sm:$0xff] %v1708_v34  ;;  %3059 = vmatmul.msk.f32.gmra.mxu0 %vm683_vm12, %v3528_v50  ;;  %3187 = vmatmul.msk.f32.gmra.mxu1 %vm684_vm13, %v3528_v50 }
 0x2e8   :  { %3315 = vmatmul.msk.f32.gmra.mxu2 %vm683_vm12, %v3528_v50  ;;  %3443 = vmatmul.msk.f32.gmra.mxu3 %vm684_vm13, %v3528_v50  ;;  %vm699_vm12 = vcmp.eq.s32.totalorder %v3865_v44, %v403_v23  ;;  %vm700_vm13 = vcmp.eq.s32.totalorder %v3877_v48, %v403_v23 }
 0x2eb   :  { %v2108_v36 = vpop.f32.mrf.mxu2  ;;  %v2509_v37 = vpop.f32.mrf.mxu3 }
 0x2ec   :  { %v2510_v38 = vadd.f32 %v2509_v37, %v2108_v36  ;;  %v1309_v39 = vpop.f32.mrf.mxu0  ;;  %v1710_v40 = vpop.f32.mrf.mxu1 }
 0x2ed   :  { %v1711_v41 = vadd.f32 %v1710_v40, %v1309_v39  ;;  %v409_v37 = vpop.permute.xlu1 %408 }
 0x2ee   :  { %2832 = vst [vmem:[#allocation2 + $0x3e8] sm:$0xff] %v2510_v38 }
 0x2ef   :  { %2833 = vst [vmem:[#allocation2 + $0x3f0] sm:$0xff] %v1711_v41  ;;  %3060 = vmatmul.msk.f32.gmra.mxu0 %vm685_vm14, %v3528_v50  ;;  %3188 = vmatmul.msk.f32.gmra.mxu1 %vm686_vm15, %v3528_v50 }
 0x2f0   :  { %3316 = vmatmul.msk.f32.gmra.mxu2 %vm685_vm14, %v3528_v50  ;;  %3444 = vmatmul.msk.f32.gmra.mxu3 %vm686_vm15, %v3528_v50  ;;  %vm701_vm14 = vcmp.eq.s32.totalorder %v3865_v44, %v406_v30  ;;  %vm702_vm15 = vcmp.eq.s32.totalorder %v3877_v48, %v406_v30 }
 0x2f3   :  { %v2111_v43 = vpop.f32.mrf.mxu2  ;;  %v2512_v45 = vpop.f32.mrf.mxu3 }
 0x2f4   :  { %v2513_v46 = vadd.f32 %v2512_v45, %v2111_v43  ;;  %v1312_v47 = vpop.f32.mrf.mxu0  ;;  %v1713_v49 = vpop.f32.mrf.mxu1 }
 0x2f5   :  { %v1714_v51 = vadd.f32 %v1713_v49, %v1312_v47  ;;  %v412_v45 = vpop.permute.xlu2 %411 }
 0x2f6   :  { %2834 = vst [vmem:[#allocation2 + $0x3f8] sm:$0xff] %v2513_v46 }
 0x2f7   :  { %2835 = vst [vmem:[#allocation2 + $0x400] sm:$0xff] %v1714_v51  ;;  %3061 = vmatmul.msk.f32.gmra.mxu0 %vm687_vm0, %v3528_v50  ;;  %3189 = vmatmul.msk.f32.gmra.mxu1 %vm688_vm1, %v3528_v50 }
 0x2f8   :  { %3317 = vmatmul.msk.f32.gmra.mxu2 %vm687_vm0, %v3528_v50  ;;  %3445 = vmatmul.msk.f32.gmra.mxu3 %vm688_vm1, %v3528_v50  ;;  %vm703_vm0 = vcmp.eq.s32.totalorder %v3865_v44, %v409_v37  ;;  %vm704_vm1 = vcmp.eq.s32.totalorder %v3877_v48, %v409_v37 }
 0x2fb   :  { %v2114_v53 = vpop.f32.mrf.mxu2  ;;  %v2515_v54 = vpop.f32.mrf.mxu3 }
 0x2fc   :  { %v2516_v55 = vadd.f32 %v2515_v54, %v2114_v53  ;;  %v1315_v56 = vpop.f32.mrf.mxu0  ;;  %v1716_v57 = vpop.f32.mrf.mxu1 }
 0x2fd   :  { %v1717_v58 = vadd.f32 %v1716_v57, %v1315_v56  ;;  %v415_v54 = vpop.permute.xlu0 %414 }
 0x2fe   :  { %2836 = vst [vmem:[#allocation2 + $0x408] sm:$0xff] %v2516_v55 }
 0x2ff   :  { %2837 = vst [vmem:[#allocation2 + $0x410] sm:$0xff] %v1717_v58  ;;  %3062 = vmatmul.msk.f32.gmra.mxu0 %vm689_vm2, %v3528_v50  ;;  %3190 = vmatmul.msk.f32.gmra.mxu1 %vm690_vm3, %v3528_v50 }
 0x300   :  { %3318 = vmatmul.msk.f32.gmra.mxu2 %vm689_vm2, %v3528_v50  ;;  %3446 = vmatmul.msk.f32.gmra.mxu3 %vm690_vm3, %v3528_v50  ;;  %vm705_vm2 = vcmp.eq.s32.totalorder %v3865_v44, %v412_v45  ;;  %vm706_vm3 = vcmp.eq.s32.totalorder %v3877_v48, %v412_v45 }
 0x303   :  { %v2117_v60 = vpop.f32.mrf.mxu2  ;;  %v2518_v61 = vpop.f32.mrf.mxu3 }
 0x304   :  { %v2519_v62 = vadd.f32 %v2518_v61, %v2117_v60  ;;  %v1318_v63 = vpop.f32.mrf.mxu0  ;;  %v1719_v0 = vpop.f32.mrf.mxu1 }
 0x305   :  { %v1720_v1 = vadd.f32 %v1719_v0, %v1318_v63  ;;  %v418_v61 = vpop.permute.xlu1 %417 }
 0x306   :  { %2838 = vst [vmem:[#allocation2 + $0x418] sm:$0xff] %v2519_v62 }
 0x307   :  { %2839 = vst [vmem:[#allocation2 + $0x420] sm:$0xff] %v1720_v1  ;;  %3063 = vmatmul.msk.f32.gmra.mxu0 %vm691_vm4, %v3528_v50  ;;  %3191 = vmatmul.msk.f32.gmra.mxu1 %vm692_vm5, %v3528_v50 }
 0x308   :  { %3319 = vmatmul.msk.f32.gmra.mxu2 %vm691_vm4, %v3528_v50  ;;  %3447 = vmatmul.msk.f32.gmra.mxu3 %vm692_vm5, %v3528_v50  ;;  %vm707_vm4 = vcmp.eq.s32.totalorder %v3865_v44, %v415_v54  ;;  %vm708_vm5 = vcmp.eq.s32.totalorder %v3877_v48, %v415_v54 }
 0x30b   :  { %v2120_v3 = vpop.f32.mrf.mxu2  ;;  %v2521_v4 = vpop.f32.mrf.mxu3 }
 0x30c   :  { %v2522_v5 = vadd.f32 %v2521_v4, %v2120_v3  ;;  %v1321_v6 = vpop.f32.mrf.mxu0  ;;  %v1722_v7 = vpop.f32.mrf.mxu1 }
 0x30d   :  { %v1723_v8 = vadd.f32 %v1722_v7, %v1321_v6  ;;  %v421_v4 = vpop.permute.xlu2 %420 }
 0x30e   :  { %2840 = vst [vmem:[#allocation2 + $0x428] sm:$0xff] %v2522_v5 }
 0x30f   :  { %2841 = vst [vmem:[#allocation2 + $0x430] sm:$0xff] %v1723_v8  ;;  %3064 = vmatmul.msk.f32.gmra.mxu0 %vm693_vm6, %v3528_v50  ;;  %3192 = vmatmul.msk.f32.gmra.mxu1 %vm694_vm7, %v3528_v50 }
 0x310   :  { %3320 = vmatmul.msk.f32.gmra.mxu2 %vm693_vm6, %v3528_v50  ;;  %3448 = vmatmul.msk.f32.gmra.mxu3 %vm694_vm7, %v3528_v50  ;;  %vm709_vm6 = vcmp.eq.s32.totalorder %v3865_v44, %v418_v61  ;;  %vm710_vm7 = vcmp.eq.s32.totalorder %v3877_v48, %v418_v61 }
 0x313   :  { %v2123_v10 = vpop.f32.mrf.mxu2  ;;  %v2524_v11 = vpop.f32.mrf.mxu3 }
 0x314   :  { %v2525_v12 = vadd.f32 %v2524_v11, %v2123_v10  ;;  %v1324_v13 = vpop.f32.mrf.mxu0  ;;  %v1725_v14 = vpop.f32.mrf.mxu1 }
 0x315   :  { %v1726_v15 = vadd.f32 %v1725_v14, %v1324_v13  ;;  %v424_v11 = vpop.permute.xlu0 %423 }
 0x316   :  { %2842 = vst [vmem:[#allocation2 + $0x438] sm:$0xff] %v2525_v12 }
 0x317   :  { %2843 = vst [vmem:[#allocation2 + $0x440] sm:$0xff] %v1726_v15  ;;  %3065 = vmatmul.msk.f32.gmra.mxu0 %vm695_vm8, %v3528_v50  ;;  %3193 = vmatmul.msk.f32.gmra.mxu1 %vm696_vm9, %v3528_v50 }
 0x318   :  { %3321 = vmatmul.msk.f32.gmra.mxu2 %vm695_vm8, %v3528_v50  ;;  %3449 = vmatmul.msk.f32.gmra.mxu3 %vm696_vm9, %v3528_v50  ;;  %vm711_vm8 = vcmp.eq.s32.totalorder %v3865_v44, %v421_v4  ;;  %vm712_vm9 = vcmp.eq.s32.totalorder %v3877_v48, %v421_v4 }
 0x31b   :  { %v2126_v17 = vpop.f32.mrf.mxu2  ;;  %v2527_v18 = vpop.f32.mrf.mxu3 }
 0x31c   :  { %v2528_v19 = vadd.f32 %v2527_v18, %v2126_v17  ;;  %v1327_v20 = vpop.f32.mrf.mxu0  ;;  %v1728_v21 = vpop.f32.mrf.mxu1 }
 0x31d   :  { %v1729_v22 = vadd.f32 %v1728_v21, %v1327_v20  ;;  %v427_v18 = vpop.permute.xlu1 %426 }
 0x31e   :  { %2844 = vst [vmem:[#allocation2 + $0x448] sm:$0xff] %v2528_v19 }
 0x31f   :  { %2845 = vst [vmem:[#allocation2 + $0x450] sm:$0xff] %v1729_v22  ;;  %3066 = vmatmul.msk.f32.gmra.mxu0 %vm697_vm10, %v3528_v50  ;;  %3194 = vmatmul.msk.f32.gmra.mxu1 %vm698_vm11, %v3528_v50 }
 0x320   :  { %3322 = vmatmul.msk.f32.gmra.mxu2 %vm697_vm10, %v3528_v50  ;;  %3450 = vmatmul.msk.f32.gmra.mxu3 %vm698_vm11, %v3528_v50  ;;  %vm713_vm10 = vcmp.eq.s32.totalorder %v3865_v44, %v424_v11  ;;  %vm714_vm11 = vcmp.eq.s32.totalorder %v3877_v48, %v424_v11 }
 0x323   :  { %v2129_v24 = vpop.f32.mrf.mxu2  ;;  %v2530_v25 = vpop.f32.mrf.mxu3 }
 0x324   :  { %v2531_v26 = vadd.f32 %v2530_v25, %v2129_v24  ;;  %v1330_v27 = vpop.f32.mrf.mxu0  ;;  %v1731_v28 = vpop.f32.mrf.mxu1 }
 0x325   :  { %v1732_v29 = vadd.f32 %v1731_v28, %v1330_v27  ;;  %v430_v25 = vpop.permute.xlu2 %429 }
 0x326   :  { %2846 = vst [vmem:[#allocation2 + $0x458] sm:$0xff] %v2531_v26 }
 0x327   :  { %2847 = vst [vmem:[#allocation2 + $0x460] sm:$0xff] %v1732_v29  ;;  %3067 = vmatmul.msk.f32.gmra.mxu0 %vm699_vm12, %v3528_v50  ;;  %3195 = vmatmul.msk.f32.gmra.mxu1 %vm700_vm13, %v3528_v50 }
 0x328   :  { %3323 = vmatmul.msk.f32.gmra.mxu2 %vm699_vm12, %v3528_v50  ;;  %3451 = vmatmul.msk.f32.gmra.mxu3 %vm700_vm13, %v3528_v50  ;;  %vm715_vm12 = vcmp.eq.s32.totalorder %v3865_v44, %v427_v18  ;;  %vm716_vm13 = vcmp.eq.s32.totalorder %v3877_v48, %v427_v18 }
 0x32b   :  { %v2132_v31 = vpop.f32.mrf.mxu2  ;;  %v2533_v32 = vpop.f32.mrf.mxu3 }
 0x32c   :  { %v2534_v33 = vadd.f32 %v2533_v32, %v2132_v31  ;;  %v1333_v34 = vpop.f32.mrf.mxu0  ;;  %v1734_v35 = vpop.f32.mrf.mxu1 }
 0x32d   :  { %v1735_v36 = vadd.f32 %v1734_v35, %v1333_v34  ;;  %v433_v32 = vpop.permute.xlu0 %432 }
 0x32e   :  { %2848 = vst [vmem:[#allocation2 + $0x468] sm:$0xff] %v2534_v33 }
 0x32f   :  { %2849 = vst [vmem:[#allocation2 + $0x470] sm:$0xff] %v1735_v36  ;;  %3068 = vmatmul.msk.f32.gmra.mxu0 %vm701_vm14, %v3528_v50  ;;  %3196 = vmatmul.msk.f32.gmra.mxu1 %vm702_vm15, %v3528_v50 }
 0x330   :  { %3324 = vmatmul.msk.f32.gmra.mxu2 %vm701_vm14, %v3528_v50  ;;  %3452 = vmatmul.msk.f32.gmra.mxu3 %vm702_vm15, %v3528_v50  ;;  %vm717_vm14 = vcmp.eq.s32.totalorder %v3865_v44, %v430_v25  ;;  %vm718_vm15 = vcmp.eq.s32.totalorder %v3877_v48, %v430_v25 }
 0x333   :  { %v2135_v38 = vpop.f32.mrf.mxu2  ;;  %v2536_v39 = vpop.f32.mrf.mxu3 }
 0x334   :  { %v2537_v40 = vadd.f32 %v2536_v39, %v2135_v38  ;;  %v1336_v41 = vpop.f32.mrf.mxu0  ;;  %v1737_v42 = vpop.f32.mrf.mxu1 }
 0x335   :  { %v1738_v43 = vadd.f32 %v1737_v42, %v1336_v41  ;;  %v436_v39 = vpop.permute.xlu1 %435 }
 0x336   :  { %2850 = vst [vmem:[#allocation2 + $0x478] sm:$0xff] %v2537_v40 }
 0x337   :  { %2851 = vst [vmem:[#allocation2 + $0x480] sm:$0xff] %v1738_v43  ;;  %3069 = vmatmul.msk.f32.gmra.mxu0 %vm703_vm0, %v3528_v50  ;;  %3197 = vmatmul.msk.f32.gmra.mxu1 %vm704_vm1, %v3528_v50 }
 0x338   :  { %3325 = vmatmul.msk.f32.gmra.mxu2 %vm703_vm0, %v3528_v50  ;;  %3453 = vmatmul.msk.f32.gmra.mxu3 %vm704_vm1, %v3528_v50  ;;  %vm719_vm0 = vcmp.eq.s32.totalorder %v3865_v44, %v433_v32  ;;  %vm720_vm1 = vcmp.eq.s32.totalorder %v3877_v48, %v433_v32 }
 0x33b   :  { %v2138_v46 = vpop.f32.mrf.mxu2  ;;  %v2539_v47 = vpop.f32.mrf.mxu3 }
 0x33c   :  { %v2540_v49 = vadd.f32 %v2539_v47, %v2138_v46  ;;  %v1339_v51 = vpop.f32.mrf.mxu0  ;;  %v1740_v52 = vpop.f32.mrf.mxu1 }
 0x33d   :  { %v1741_v53 = vadd.f32 %v1740_v52, %v1339_v51  ;;  %v439_v47 = vpop.permute.xlu2 %438 }
 0x33e   :  { %2852 = vst [vmem:[#allocation2 + $0x488] sm:$0xff] %v2540_v49 }
 0x33f   :  { %2853 = vst [vmem:[#allocation2 + $0x490] sm:$0xff] %v1741_v53  ;;  %3070 = vmatmul.msk.f32.gmra.mxu0 %vm705_vm2, %v3528_v50  ;;  %3198 = vmatmul.msk.f32.gmra.mxu1 %vm706_vm3, %v3528_v50 }
 0x340   :  { %3326 = vmatmul.msk.f32.gmra.mxu2 %vm705_vm2, %v3528_v50  ;;  %3454 = vmatmul.msk.f32.gmra.mxu3 %vm706_vm3, %v3528_v50  ;;  %vm721_vm2 = vcmp.eq.s32.totalorder %v3865_v44, %v436_v39  ;;  %vm722_vm3 = vcmp.eq.s32.totalorder %v3877_v48, %v436_v39 }
 0x343   :  { %v2141_v55 = vpop.f32.mrf.mxu2  ;;  %v2542_v56 = vpop.f32.mrf.mxu3 }
 0x344   :  { %v2543_v57 = vadd.f32 %v2542_v56, %v2141_v55  ;;  %v1342_v58 = vpop.f32.mrf.mxu0  ;;  %v1743_v59 = vpop.f32.mrf.mxu1 }
 0x345   :  { %v1744_v60 = vadd.f32 %v1743_v59, %v1342_v58  ;;  %v442_v56 = vpop.permute.xlu0 %441 }
 0x346   :  { %2854 = vst [vmem:[#allocation2 + $0x498] sm:$0xff] %v2543_v57 }
 0x347   :  { %2855 = vst [vmem:[#allocation2 + $0x4a0] sm:$0xff] %v1744_v60  ;;  %3071 = vmatmul.msk.f32.gmra.mxu0 %vm707_vm4, %v3528_v50  ;;  %3199 = vmatmul.msk.f32.gmra.mxu1 %vm708_vm5, %v3528_v50 }
 0x348   :  { %3327 = vmatmul.msk.f32.gmra.mxu2 %vm707_vm4, %v3528_v50  ;;  %3455 = vmatmul.msk.f32.gmra.mxu3 %vm708_vm5, %v3528_v50  ;;  %vm723_vm4 = vcmp.eq.s32.totalorder %v3865_v44, %v439_v47  ;;  %vm724_vm5 = vcmp.eq.s32.totalorder %v3877_v48, %v439_v47 }
 0x34b   :  { %v2144_v62 = vpop.f32.mrf.mxu2  ;;  %v2545_v63 = vpop.f32.mrf.mxu3 }
 0x34c   :  { %v2546_v0 = vadd.f32 %v2545_v63, %v2144_v62  ;;  %v1345_v1 = vpop.f32.mrf.mxu0  ;;  %v1746_v2 = vpop.f32.mrf.mxu1 }
 0x34d   :  { %v1747_v3 = vadd.f32 %v1746_v2, %v1345_v1  ;;  %v445_v63 = vpop.permute.xlu1 %444 }
 0x34e   :  { %2856 = vst [vmem:[#allocation2 + $0x4a8] sm:$0xff] %v2546_v0 }
 0x34f   :  { %2857 = vst [vmem:[#allocation2 + $0x4b0] sm:$0xff] %v1747_v3  ;;  %3072 = vmatmul.msk.f32.gmra.mxu0 %vm709_vm6, %v3528_v50  ;;  %3200 = vmatmul.msk.f32.gmra.mxu1 %vm710_vm7, %v3528_v50 }
 0x350   :  { %3328 = vmatmul.msk.f32.gmra.mxu2 %vm709_vm6, %v3528_v50  ;;  %3456 = vmatmul.msk.f32.gmra.mxu3 %vm710_vm7, %v3528_v50  ;;  %vm725_vm6 = vcmp.eq.s32.totalorder %v3865_v44, %v442_v56  ;;  %vm726_vm7 = vcmp.eq.s32.totalorder %v3877_v48, %v442_v56 }
 0x353   :  { %v2147_v5 = vpop.f32.mrf.mxu2  ;;  %v2548_v6 = vpop.f32.mrf.mxu3 }
 0x354   :  { %v2549_v7 = vadd.f32 %v2548_v6, %v2147_v5  ;;  %v1348_v8 = vpop.f32.mrf.mxu0  ;;  %v1749_v9 = vpop.f32.mrf.mxu1 }
 0x355   :  { %v1750_v10 = vadd.f32 %v1749_v9, %v1348_v8  ;;  %v448_v6 = vpop.permute.xlu2 %447 }
 0x356   :  { %2858 = vst [vmem:[#allocation2 + $0x4b8] sm:$0xff] %v2549_v7 }
 0x357   :  { %2859 = vst [vmem:[#allocation2 + $0x4c0] sm:$0xff] %v1750_v10  ;;  %3073 = vmatmul.msk.f32.gmra.mxu0 %vm711_vm8, %v3528_v50  ;;  %3201 = vmatmul.msk.f32.gmra.mxu1 %vm712_vm9, %v3528_v50 }
 0x358   :  { %3329 = vmatmul.msk.f32.gmra.mxu2 %vm711_vm8, %v3528_v50  ;;  %3457 = vmatmul.msk.f32.gmra.mxu3 %vm712_vm9, %v3528_v50  ;;  %vm727_vm8 = vcmp.eq.s32.totalorder %v3865_v44, %v445_v63  ;;  %vm728_vm9 = vcmp.eq.s32.totalorder %v3877_v48, %v445_v63 }
 0x35b   :  { %v2150_v12 = vpop.f32.mrf.mxu2  ;;  %v2551_v13 = vpop.f32.mrf.mxu3 }
 0x35c   :  { %v2552_v14 = vadd.f32 %v2551_v13, %v2150_v12  ;;  %v1351_v15 = vpop.f32.mrf.mxu0  ;;  %v1752_v16 = vpop.f32.mrf.mxu1 }
 0x35d   :  { %v1753_v17 = vadd.f32 %v1752_v16, %v1351_v15  ;;  %v451_v13 = vpop.permute.xlu0 %450 }
 0x35e   :  { %2860 = vst [vmem:[#allocation2 + $0x4c8] sm:$0xff] %v2552_v14 }
 0x35f   :  { %2861 = vst [vmem:[#allocation2 + $0x4d0] sm:$0xff] %v1753_v17  ;;  %3074 = vmatmul.msk.f32.gmra.mxu0 %vm713_vm10, %v3528_v50  ;;  %3202 = vmatmul.msk.f32.gmra.mxu1 %vm714_vm11, %v3528_v50 }
 0x360   :  { %3330 = vmatmul.msk.f32.gmra.mxu2 %vm713_vm10, %v3528_v50  ;;  %3458 = vmatmul.msk.f32.gmra.mxu3 %vm714_vm11, %v3528_v50  ;;  %vm729_vm10 = vcmp.eq.s32.totalorder %v3865_v44, %v448_v6  ;;  %vm730_vm11 = vcmp.eq.s32.totalorder %v3877_v48, %v448_v6 }
 0x363   :  { %v2153_v19 = vpop.f32.mrf.mxu2  ;;  %v2554_v20 = vpop.f32.mrf.mxu3 }
 0x364   :  { %v2555_v21 = vadd.f32 %v2554_v20, %v2153_v19  ;;  %v1354_v22 = vpop.f32.mrf.mxu0  ;;  %v1755_v23 = vpop.f32.mrf.mxu1 }
 0x365   :  { %v1756_v24 = vadd.f32 %v1755_v23, %v1354_v22  ;;  %v454_v20 = vpop.permute.xlu1 %453 }
 0x366   :  { %2862 = vst [vmem:[#allocation2 + $0x4d8] sm:$0xff] %v2555_v21 }
 0x367   :  { %2863 = vst [vmem:[#allocation2 + $0x4e0] sm:$0xff] %v1756_v24  ;;  %3075 = vmatmul.msk.f32.gmra.mxu0 %vm715_vm12, %v3528_v50  ;;  %3203 = vmatmul.msk.f32.gmra.mxu1 %vm716_vm13, %v3528_v50 }
 0x368   :  { %3331 = vmatmul.msk.f32.gmra.mxu2 %vm715_vm12, %v3528_v50  ;;  %3459 = vmatmul.msk.f32.gmra.mxu3 %vm716_vm13, %v3528_v50  ;;  %vm731_vm12 = vcmp.eq.s32.totalorder %v3865_v44, %v451_v13  ;;  %vm732_vm13 = vcmp.eq.s32.totalorder %v3877_v48, %v451_v13 }
 0x36b   :  { %v2156_v26 = vpop.f32.mrf.mxu2  ;;  %v2557_v27 = vpop.f32.mrf.mxu3 }
 0x36c   :  { %v2558_v28 = vadd.f32 %v2557_v27, %v2156_v26  ;;  %v1357_v29 = vpop.f32.mrf.mxu0  ;;  %v1758_v30 = vpop.f32.mrf.mxu1 }
 0x36d   :  { %v1759_v31 = vadd.f32 %v1758_v30, %v1357_v29  ;;  %v457_v27 = vpop.permute.xlu2 %456 }
 0x36e   :  { %2864 = vst [vmem:[#allocation2 + $0x4e8] sm:$0xff] %v2558_v28 }
 0x36f   :  { %2865 = vst [vmem:[#allocation2 + $0x4f0] sm:$0xff] %v1759_v31  ;;  %3076 = vmatmul.msk.f32.gmra.mxu0 %vm717_vm14, %v3528_v50  ;;  %3204 = vmatmul.msk.f32.gmra.mxu1 %vm718_vm15, %v3528_v50 }
 0x370   :  { %3332 = vmatmul.msk.f32.gmra.mxu2 %vm717_vm14, %v3528_v50  ;;  %3460 = vmatmul.msk.f32.gmra.mxu3 %vm718_vm15, %v3528_v50  ;;  %vm733_vm14 = vcmp.eq.s32.totalorder %v3865_v44, %v454_v20  ;;  %vm734_vm15 = vcmp.eq.s32.totalorder %v3877_v48, %v454_v20 }
 0x373   :  { %v2159_v33 = vpop.f32.mrf.mxu2  ;;  %v2560_v34 = vpop.f32.mrf.mxu3 }
 0x374   :  { %v2561_v35 = vadd.f32 %v2560_v34, %v2159_v33  ;;  %v1360_v36 = vpop.f32.mrf.mxu0  ;;  %v1761_v37 = vpop.f32.mrf.mxu1 }
 0x375   :  { %v1762_v38 = vadd.f32 %v1761_v37, %v1360_v36  ;;  %v460_v34 = vpop.permute.xlu0 %459 }
 0x376   :  { %2866 = vst [vmem:[#allocation2 + $0x4f8] sm:$0xff] %v2561_v35 }
 0x377   :  { %2867 = vst [vmem:[#allocation2 + $0x500] sm:$0xff] %v1762_v38  ;;  %3077 = vmatmul.msk.f32.gmra.mxu0 %vm719_vm0, %v3528_v50  ;;  %3205 = vmatmul.msk.f32.gmra.mxu1 %vm720_vm1, %v3528_v50 }
 0x378   :  { %3333 = vmatmul.msk.f32.gmra.mxu2 %vm719_vm0, %v3528_v50  ;;  %3461 = vmatmul.msk.f32.gmra.mxu3 %vm720_vm1, %v3528_v50  ;;  %vm735_vm0 = vcmp.eq.s32.totalorder %v3865_v44, %v457_v27  ;;  %vm736_vm1 = vcmp.eq.s32.totalorder %v3877_v48, %v457_v27 }
 0x37b   :  { %v2162_v40 = vpop.f32.mrf.mxu2  ;;  %v2563_v41 = vpop.f32.mrf.mxu3 }
 0x37c   :  { %v2564_v42 = vadd.f32 %v2563_v41, %v2162_v40  ;;  %v1363_v43 = vpop.f32.mrf.mxu0  ;;  %v1764_v45 = vpop.f32.mrf.mxu1 }
 0x37d   :  { %v1765_v46 = vadd.f32 %v1764_v45, %v1363_v43  ;;  %v463_v41 = vpop.permute.xlu1 %462 }
 0x37e   :  { %2868 = vst [vmem:[#allocation2 + $0x508] sm:$0xff] %v2564_v42 }
 0x37f   :  { %2869 = vst [vmem:[#allocation2 + $0x510] sm:$0xff] %v1765_v46  ;;  %3078 = vmatmul.msk.f32.gmra.mxu0 %vm721_vm2, %v3528_v50  ;;  %3206 = vmatmul.msk.f32.gmra.mxu1 %vm722_vm3, %v3528_v50 }
 0x380   :  { %3334 = vmatmul.msk.f32.gmra.mxu2 %vm721_vm2, %v3528_v50  ;;  %3462 = vmatmul.msk.f32.gmra.mxu3 %vm722_vm3, %v3528_v50  ;;  %vm737_vm2 = vcmp.eq.s32.totalorder %v3865_v44, %v460_v34  ;;  %vm738_vm3 = vcmp.eq.s32.totalorder %v3877_v48, %v460_v34 }
 0x383   :  { %v2165_v49 = vpop.f32.mrf.mxu2  ;;  %v2566_v51 = vpop.f32.mrf.mxu3 }
 0x384   :  { %v2567_v52 = vadd.f32 %v2566_v51, %v2165_v49  ;;  %v1366_v53 = vpop.f32.mrf.mxu0  ;;  %v1767_v54 = vpop.f32.mrf.mxu1 }
 0x385   :  { %v1768_v55 = vadd.f32 %v1767_v54, %v1366_v53  ;;  %v466_v51 = vpop.permute.xlu2 %465 }
 0x386   :  { %2870 = vst [vmem:[#allocation2 + $0x518] sm:$0xff] %v2567_v52 }
 0x387   :  { %2871 = vst [vmem:[#allocation2 + $0x520] sm:$0xff] %v1768_v55  ;;  %3079 = vmatmul.msk.f32.gmra.mxu0 %vm723_vm4, %v3528_v50  ;;  %3207 = vmatmul.msk.f32.gmra.mxu1 %vm724_vm5, %v3528_v50 }
 0x388   :  { %3335 = vmatmul.msk.f32.gmra.mxu2 %vm723_vm4, %v3528_v50  ;;  %3463 = vmatmul.msk.f32.gmra.mxu3 %vm724_vm5, %v3528_v50  ;;  %vm739_vm4 = vcmp.eq.s32.totalorder %v3865_v44, %v463_v41  ;;  %vm740_vm5 = vcmp.eq.s32.totalorder %v3877_v48, %v463_v41 }
 0x38b   :  { %v2168_v57 = vpop.f32.mrf.mxu2  ;;  %v2569_v58 = vpop.f32.mrf.mxu3 }
 0x38c   :  { %v2570_v59 = vadd.f32 %v2569_v58, %v2168_v57  ;;  %v1369_v60 = vpop.f32.mrf.mxu0  ;;  %v1770_v61 = vpop.f32.mrf.mxu1 }
 0x38d   :  { %v1771_v62 = vadd.f32 %v1770_v61, %v1369_v60  ;;  %v469_v58 = vpop.permute.xlu0 %468 }
 0x38e   :  { %2872 = vst [vmem:[#allocation2 + $0x528] sm:$0xff] %v2570_v59 }
 0x38f   :  { %2873 = vst [vmem:[#allocation2 + $0x530] sm:$0xff] %v1771_v62  ;;  %3080 = vmatmul.msk.f32.gmra.mxu0 %vm725_vm6, %v3528_v50  ;;  %3208 = vmatmul.msk.f32.gmra.mxu1 %vm726_vm7, %v3528_v50 }
 0x390   :  { %3336 = vmatmul.msk.f32.gmra.mxu2 %vm725_vm6, %v3528_v50  ;;  %3464 = vmatmul.msk.f32.gmra.mxu3 %vm726_vm7, %v3528_v50  ;;  %vm741_vm6 = vcmp.eq.s32.totalorder %v3865_v44, %v466_v51  ;;  %vm742_vm7 = vcmp.eq.s32.totalorder %v3877_v48, %v466_v51 }
 0x393   :  { %v2171_v0 = vpop.f32.mrf.mxu2  ;;  %v2572_v1 = vpop.f32.mrf.mxu3 }
 0x394   :  { %v2573_v2 = vadd.f32 %v2572_v1, %v2171_v0  ;;  %v1372_v3 = vpop.f32.mrf.mxu0  ;;  %v1773_v4 = vpop.f32.mrf.mxu1 }
 0x395   :  { %v1774_v5 = vadd.f32 %v1773_v4, %v1372_v3  ;;  %v472_v1 = vpop.permute.xlu1 %471 }
 0x396   :  { %2874 = vst [vmem:[#allocation2 + $0x538] sm:$0xff] %v2573_v2 }
 0x397   :  { %2875 = vst [vmem:[#allocation2 + $0x540] sm:$0xff] %v1774_v5  ;;  %3081 = vmatmul.msk.f32.gmra.mxu0 %vm727_vm8, %v3528_v50  ;;  %3209 = vmatmul.msk.f32.gmra.mxu1 %vm728_vm9, %v3528_v50 }
 0x398   :  { %3337 = vmatmul.msk.f32.gmra.mxu2 %vm727_vm8, %v3528_v50  ;;  %3465 = vmatmul.msk.f32.gmra.mxu3 %vm728_vm9, %v3528_v50  ;;  %vm743_vm8 = vcmp.eq.s32.totalorder %v3865_v44, %v469_v58  ;;  %vm744_vm9 = vcmp.eq.s32.totalorder %v3877_v48, %v469_v58 }
 0x39b   :  { %v2174_v7 = vpop.f32.mrf.mxu2  ;;  %v2575_v8 = vpop.f32.mrf.mxu3 }
 0x39c   :  { %v2576_v9 = vadd.f32 %v2575_v8, %v2174_v7  ;;  %v1375_v10 = vpop.f32.mrf.mxu0  ;;  %v1776_v11 = vpop.f32.mrf.mxu1 }
 0x39d   :  { %v1777_v12 = vadd.f32 %v1776_v11, %v1375_v10  ;;  %v475_v8 = vpop.permute.xlu2 %474 }
 0x39e   :  { %2876 = vst [vmem:[#allocation2 + $0x548] sm:$0xff] %v2576_v9 }
 0x39f   :  { %2877 = vst [vmem:[#allocation2 + $0x550] sm:$0xff] %v1777_v12  ;;  %3082 = vmatmul.msk.f32.gmra.mxu0 %vm729_vm10, %v3528_v50  ;;  %3210 = vmatmul.msk.f32.gmra.mxu1 %vm730_vm11, %v3528_v50 }
 0x3a0   :  { %3338 = vmatmul.msk.f32.gmra.mxu2 %vm729_vm10, %v3528_v50  ;;  %3466 = vmatmul.msk.f32.gmra.mxu3 %vm730_vm11, %v3528_v50  ;;  %vm745_vm10 = vcmp.eq.s32.totalorder %v3865_v44, %v472_v1  ;;  %vm746_vm11 = vcmp.eq.s32.totalorder %v3877_v48, %v472_v1 }
 0x3a3   :  { %v2177_v14 = vpop.f32.mrf.mxu2  ;;  %v2578_v15 = vpop.f32.mrf.mxu3 }
 0x3a4   :  { %v2579_v16 = vadd.f32 %v2578_v15, %v2177_v14  ;;  %v1378_v17 = vpop.f32.mrf.mxu0  ;;  %v1779_v18 = vpop.f32.mrf.mxu1 }
 0x3a5   :  { %v1780_v19 = vadd.f32 %v1779_v18, %v1378_v17  ;;  %v478_v15 = vpop.permute.xlu0 %477 }
 0x3a6   :  { %2878 = vst [vmem:[#allocation2 + $0x558] sm:$0xff] %v2579_v16 }
 0x3a7   :  { %2879 = vst [vmem:[#allocation2 + $0x560] sm:$0xff] %v1780_v19  ;;  %3083 = vmatmul.msk.f32.gmra.mxu0 %vm731_vm12, %v3528_v50  ;;  %3211 = vmatmul.msk.f32.gmra.mxu1 %vm732_vm13, %v3528_v50 }
 0x3a8   :  { %3339 = vmatmul.msk.f32.gmra.mxu2 %vm731_vm12, %v3528_v50  ;;  %3467 = vmatmul.msk.f32.gmra.mxu3 %vm732_vm13, %v3528_v50  ;;  %vm747_vm12 = vcmp.eq.s32.totalorder %v3865_v44, %v475_v8  ;;  %vm748_vm13 = vcmp.eq.s32.totalorder %v3877_v48, %v475_v8 }
 0x3ab   :  { %v2180_v21 = vpop.f32.mrf.mxu2  ;;  %v2581_v22 = vpop.f32.mrf.mxu3 }
 0x3ac   :  { %v2582_v23 = vadd.f32 %v2581_v22, %v2180_v21  ;;  %v1381_v24 = vpop.f32.mrf.mxu0  ;;  %v1782_v25 = vpop.f32.mrf.mxu1 }
 0x3ad   :  { %v1783_v26 = vadd.f32 %v1782_v25, %v1381_v24  ;;  %v481_v22 = vpop.permute.xlu1 %480 }
 0x3ae   :  { %2880 = vst [vmem:[#allocation2 + $0x568] sm:$0xff] %v2582_v23 }
 0x3af   :  { %2881 = vst [vmem:[#allocation2 + $0x570] sm:$0xff] %v1783_v26  ;;  %3084 = vmatmul.msk.f32.gmra.mxu0 %vm733_vm14, %v3528_v50  ;;  %3212 = vmatmul.msk.f32.gmra.mxu1 %vm734_vm15, %v3528_v50 }
 0x3b0   :  { %3340 = vmatmul.msk.f32.gmra.mxu2 %vm733_vm14, %v3528_v50  ;;  %3468 = vmatmul.msk.f32.gmra.mxu3 %vm734_vm15, %v3528_v50  ;;  %vm749_vm14 = vcmp.eq.s32.totalorder %v3865_v44, %v478_v15  ;;  %vm750_vm15 = vcmp.eq.s32.totalorder %v3877_v48, %v478_v15 }
 0x3b3   :  { %v2183_v28 = vpop.f32.mrf.mxu2  ;;  %v2584_v29 = vpop.f32.mrf.mxu3 }
 0x3b4   :  { %v2585_v30 = vadd.f32 %v2584_v29, %v2183_v28  ;;  %v1384_v31 = vpop.f32.mrf.mxu0  ;;  %v1785_v32 = vpop.f32.mrf.mxu1 }
 0x3b5   :  { %v1786_v33 = vadd.f32 %v1785_v32, %v1384_v31  ;;  %v484_v29 = vpop.permute.xlu2 %483 }
 0x3b6   :  { %2882 = vst [vmem:[#allocation2 + $0x578] sm:$0xff] %v2585_v30 }
 0x3b7   :  { %2883 = vst [vmem:[#allocation2 + $0x580] sm:$0xff] %v1786_v33  ;;  %3085 = vmatmul.msk.f32.gmra.mxu0 %vm735_vm0, %v3528_v50  ;;  %3213 = vmatmul.msk.f32.gmra.mxu1 %vm736_vm1, %v3528_v50 }
 0x3b8   :  { %3341 = vmatmul.msk.f32.gmra.mxu2 %vm735_vm0, %v3528_v50  ;;  %3469 = vmatmul.msk.f32.gmra.mxu3 %vm736_vm1, %v3528_v50  ;;  %vm751_vm0 = vcmp.eq.s32.totalorder %v3865_v44, %v481_v22  ;;  %vm752_vm1 = vcmp.eq.s32.totalorder %v3877_v48, %v481_v22 }
 0x3bb   :  { %v2186_v35 = vpop.f32.mrf.mxu2  ;;  %v2587_v36 = vpop.f32.mrf.mxu3 }
 0x3bc   :  { %v2588_v37 = vadd.f32 %v2587_v36, %v2186_v35  ;;  %v1387_v38 = vpop.f32.mrf.mxu0  ;;  %v1788_v39 = vpop.f32.mrf.mxu1 }
 0x3bd   :  { %v1789_v40 = vadd.f32 %v1788_v39, %v1387_v38  ;;  %v487_v36 = vpop.permute.xlu0 %486 }
 0x3be   :  { %2884 = vst [vmem:[#allocation2 + $0x588] sm:$0xff] %v2588_v37 }
 0x3bf   :  { %2885 = vst [vmem:[#allocation2 + $0x590] sm:$0xff] %v1789_v40  ;;  %3086 = vmatmul.msk.f32.gmra.mxu0 %vm737_vm2, %v3528_v50  ;;  %3214 = vmatmul.msk.f32.gmra.mxu1 %vm738_vm3, %v3528_v50 }
 0x3c0   :  { %3342 = vmatmul.msk.f32.gmra.mxu2 %vm737_vm2, %v3528_v50  ;;  %3470 = vmatmul.msk.f32.gmra.mxu3 %vm738_vm3, %v3528_v50  ;;  %vm753_vm2 = vcmp.eq.s32.totalorder %v3865_v44, %v484_v29  ;;  %vm754_vm3 = vcmp.eq.s32.totalorder %v3877_v48, %v484_v29 }
 0x3c3   :  { %v2189_v42 = vpop.f32.mrf.mxu2  ;;  %v2590_v43 = vpop.f32.mrf.mxu3 }
 0x3c4   :  { %v2591_v45 = vadd.f32 %v2590_v43, %v2189_v42  ;;  %v1390_v46 = vpop.f32.mrf.mxu0  ;;  %v1791_v47 = vpop.f32.mrf.mxu1 }
 0x3c5   :  { %v1792_v49 = vadd.f32 %v1791_v47, %v1390_v46  ;;  %v490_v43 = vpop.permute.xlu1 %489 }
 0x3c6   :  { %2886 = vst [vmem:[#allocation2 + $0x598] sm:$0xff] %v2591_v45 }
 0x3c7   :  { %2887 = vst [vmem:[#allocation2 + $0x5a0] sm:$0xff] %v1792_v49  ;;  %3087 = vmatmul.msk.f32.gmra.mxu0 %vm739_vm4, %v3528_v50  ;;  %3215 = vmatmul.msk.f32.gmra.mxu1 %vm740_vm5, %v3528_v50 }
 0x3c8   :  { %3343 = vmatmul.msk.f32.gmra.mxu2 %vm739_vm4, %v3528_v50  ;;  %3471 = vmatmul.msk.f32.gmra.mxu3 %vm740_vm5, %v3528_v50  ;;  %vm755_vm4 = vcmp.eq.s32.totalorder %v3865_v44, %v487_v36  ;;  %vm756_vm5 = vcmp.eq.s32.totalorder %v3877_v48, %v487_v36 }
 0x3cb   :  { %v2192_v52 = vpop.f32.mrf.mxu2  ;;  %v2593_v53 = vpop.f32.mrf.mxu3 }
 0x3cc   :  { %v2594_v54 = vadd.f32 %v2593_v53, %v2192_v52  ;;  %v1393_v55 = vpop.f32.mrf.mxu0  ;;  %v1794_v56 = vpop.f32.mrf.mxu1 }
 0x3cd   :  { %v1795_v57 = vadd.f32 %v1794_v56, %v1393_v55  ;;  %v493_v53 = vpop.permute.xlu2 %492 }
 0x3ce   :  { %2888 = vst [vmem:[#allocation2 + $0x5a8] sm:$0xff] %v2594_v54 }
 0x3cf   :  { %2889 = vst [vmem:[#allocation2 + $0x5b0] sm:$0xff] %v1795_v57  ;;  %3088 = vmatmul.msk.f32.gmra.mxu0 %vm741_vm6, %v3528_v50  ;;  %3216 = vmatmul.msk.f32.gmra.mxu1 %vm742_vm7, %v3528_v50 }
 0x3d0   :  { %3344 = vmatmul.msk.f32.gmra.mxu2 %vm741_vm6, %v3528_v50  ;;  %3472 = vmatmul.msk.f32.gmra.mxu3 %vm742_vm7, %v3528_v50  ;;  %vm757_vm6 = vcmp.eq.s32.totalorder %v3865_v44, %v490_v43  ;;  %vm758_vm7 = vcmp.eq.s32.totalorder %v3877_v48, %v490_v43 }
 0x3d3   :  { %v2195_v59 = vpop.f32.mrf.mxu2  ;;  %v2596_v60 = vpop.f32.mrf.mxu3 }
 0x3d4   :  { %v2597_v61 = vadd.f32 %v2596_v60, %v2195_v59  ;;  %v1396_v62 = vpop.f32.mrf.mxu0  ;;  %v1797_v63 = vpop.f32.mrf.mxu1 }
 0x3d5   :  { %v1798_v0 = vadd.f32 %v1797_v63, %v1396_v62  ;;  %v496_v60 = vpop.permute.xlu0 %495 }
 0x3d6   :  { %2890 = vst [vmem:[#allocation2 + $0x5b8] sm:$0xff] %v2597_v61 }
 0x3d7   :  { %2891 = vst [vmem:[#allocation2 + $0x5c0] sm:$0xff] %v1798_v0  ;;  %3089 = vmatmul.msk.f32.gmra.mxu0 %vm743_vm8, %v3528_v50  ;;  %3217 = vmatmul.msk.f32.gmra.mxu1 %vm744_vm9, %v3528_v50 }
 0x3d8   :  { %3345 = vmatmul.msk.f32.gmra.mxu2 %vm743_vm8, %v3528_v50  ;;  %3473 = vmatmul.msk.f32.gmra.mxu3 %vm744_vm9, %v3528_v50  ;;  %vm759_vm8 = vcmp.eq.s32.totalorder %v3865_v44, %v493_v53  ;;  %vm760_vm9 = vcmp.eq.s32.totalorder %v3877_v48, %v493_v53 }
 0x3db   :  { %v2198_v2 = vpop.f32.mrf.mxu2  ;;  %v2599_v3 = vpop.f32.mrf.mxu3 }
 0x3dc   :  { %v2600_v4 = vadd.f32 %v2599_v3, %v2198_v2  ;;  %v1399_v5 = vpop.f32.mrf.mxu0  ;;  %v1800_v6 = vpop.f32.mrf.mxu1 }
 0x3dd   :  { %v1801_v7 = vadd.f32 %v1800_v6, %v1399_v5  ;;  %v499_v3 = vpop.permute.xlu1 %498 }
 0x3de   :  { %2892 = vst [vmem:[#allocation2 + $0x5c8] sm:$0xff] %v2600_v4 }
 0x3df   :  { %2893 = vst [vmem:[#allocation2 + $0x5d0] sm:$0xff] %v1801_v7  ;;  %3090 = vmatmul.msk.f32.gmra.mxu0 %vm745_vm10, %v3528_v50  ;;  %3218 = vmatmul.msk.f32.gmra.mxu1 %vm746_vm11, %v3528_v50 }
 0x3e0   :  { %3346 = vmatmul.msk.f32.gmra.mxu2 %vm745_vm10, %v3528_v50  ;;  %3474 = vmatmul.msk.f32.gmra.mxu3 %vm746_vm11, %v3528_v50  ;;  %vm761_vm10 = vcmp.eq.s32.totalorder %v3865_v44, %v496_v60  ;;  %vm762_vm11 = vcmp.eq.s32.totalorder %v3877_v48, %v496_v60 }
 0x3e3   :  { %v2201_v9 = vpop.f32.mrf.mxu2  ;;  %v2602_v10 = vpop.f32.mrf.mxu3 }
 0x3e4   :  { %v2603_v11 = vadd.f32 %v2602_v10, %v2201_v9  ;;  %v1402_v12 = vpop.f32.mrf.mxu0  ;;  %v1803_v13 = vpop.f32.mrf.mxu1 }
 0x3e5   :  { %v1804_v14 = vadd.f32 %v1803_v13, %v1402_v12  ;;  %v502_v10 = vpop.permute.xlu2 %501 }
 0x3e6   :  { %2894 = vst [vmem:[#allocation2 + $0x5d8] sm:$0xff] %v2603_v11 }
 0x3e7   :  { %2895 = vst [vmem:[#allocation2 + $0x5e0] sm:$0xff] %v1804_v14  ;;  %3091 = vmatmul.msk.f32.gmra.mxu0 %vm747_vm12, %v3528_v50  ;;  %3219 = vmatmul.msk.f32.gmra.mxu1 %vm748_vm13, %v3528_v50 }
 0x3e8   :  { %3347 = vmatmul.msk.f32.gmra.mxu2 %vm747_vm12, %v3528_v50  ;;  %3475 = vmatmul.msk.f32.gmra.mxu3 %vm748_vm13, %v3528_v50  ;;  %vm763_vm12 = vcmp.eq.s32.totalorder %v3865_v44, %v499_v3  ;;  %vm764_vm13 = vcmp.eq.s32.totalorder %v3877_v48, %v499_v3 }
 0x3eb   :  { %v2204_v16 = vpop.f32.mrf.mxu2  ;;  %v2605_v17 = vpop.f32.mrf.mxu3 }
 0x3ec   :  { %v2606_v18 = vadd.f32 %v2605_v17, %v2204_v16  ;;  %v1405_v19 = vpop.f32.mrf.mxu0  ;;  %v1806_v20 = vpop.f32.mrf.mxu1 }
 0x3ed   :  { %v1807_v21 = vadd.f32 %v1806_v20, %v1405_v19  ;;  %v505_v17 = vpop.permute.xlu0 %504 }
 0x3ee   :  { %2896 = vst [vmem:[#allocation2 + $0x5e8] sm:$0xff] %v2606_v18 }
 0x3ef   :  { %2897 = vst [vmem:[#allocation2 + $0x5f0] sm:$0xff] %v1807_v21  ;;  %3092 = vmatmul.msk.f32.gmra.mxu0 %vm749_vm14, %v3528_v50  ;;  %3220 = vmatmul.msk.f32.gmra.mxu1 %vm750_vm15, %v3528_v50 }
 0x3f0   :  { %3348 = vmatmul.msk.f32.gmra.mxu2 %vm749_vm14, %v3528_v50  ;;  %3476 = vmatmul.msk.f32.gmra.mxu3 %vm750_vm15, %v3528_v50  ;;  %vm765_vm14 = vcmp.eq.s32.totalorder %v3865_v44, %v502_v10  ;;  %vm766_vm15 = vcmp.eq.s32.totalorder %v3877_v48, %v502_v10 }
 0x3f3   :  { %v2207_v23 = vpop.f32.mrf.mxu2  ;;  %v2608_v24 = vpop.f32.mrf.mxu3 }
 0x3f4   :  { %v2609_v25 = vadd.f32 %v2608_v24, %v2207_v23  ;;  %v1408_v26 = vpop.f32.mrf.mxu0  ;;  %v1809_v27 = vpop.f32.mrf.mxu1 }
 0x3f5   :  { %v1810_v28 = vadd.f32 %v1809_v27, %v1408_v26  ;;  %v508_v24 = vpop.permute.xlu1 %507 }
 0x3f6   :  { %2898 = vst [vmem:[#allocation2 + $0x5f8] sm:$0xff] %v2609_v25 }
 0x3f7   :  { %2899 = vst [vmem:[#allocation2 + $0x600] sm:$0xff] %v1810_v28  ;;  %3093 = vmatmul.msk.f32.gmra.mxu0 %vm751_vm0, %v3528_v50  ;;  %3221 = vmatmul.msk.f32.gmra.mxu1 %vm752_vm1, %v3528_v50 }
 0x3f8   :  { %3349 = vmatmul.msk.f32.gmra.mxu2 %vm751_vm0, %v3528_v50  ;;  %3477 = vmatmul.msk.f32.gmra.mxu3 %vm752_vm1, %v3528_v50  ;;  %vm767_vm0 = vcmp.eq.s32.totalorder %v3865_v44, %v505_v17  ;;  %vm768_vm1 = vcmp.eq.s32.totalorder %v3877_v48, %v505_v17 }
 0x3fb   :  { %v2210_v30 = vpop.f32.mrf.mxu2  ;;  %v2611_v31 = vpop.f32.mrf.mxu3 }
 0x3fc   :  { %v2612_v32 = vadd.f32 %v2611_v31, %v2210_v30  ;;  %v1411_v33 = vpop.f32.mrf.mxu0  ;;  %v1812_v34 = vpop.f32.mrf.mxu1 }
 0x3fd   :  { %v1813_v35 = vadd.f32 %v1812_v34, %v1411_v33  ;;  %v511_v31 = vpop.permute.xlu2 %510 }
 0x3fe   :  { %2900 = vst [vmem:[#allocation2 + $0x608] sm:$0xff] %v2612_v32 }
 0x3ff   :  { %2901 = vst [vmem:[#allocation2 + $0x610] sm:$0xff] %v1813_v35  ;;  %3094 = vmatmul.msk.f32.gmra.mxu0 %vm753_vm2, %v3528_v50  ;;  %3222 = vmatmul.msk.f32.gmra.mxu1 %vm754_vm3, %v3528_v50 }
 0x400   :  { %3350 = vmatmul.msk.f32.gmra.mxu2 %vm753_vm2, %v3528_v50  ;;  %3478 = vmatmul.msk.f32.gmra.mxu3 %vm754_vm3, %v3528_v50  ;;  %vm769_vm2 = vcmp.eq.s32.totalorder %v3865_v44, %v508_v24  ;;  %vm770_vm3 = vcmp.eq.s32.totalorder %v3877_v48, %v508_v24 }
 0x403   :  { %v2213_v37 = vpop.f32.mrf.mxu2  ;;  %v2614_v38 = vpop.f32.mrf.mxu3 }
 0x404   :  { %v2615_v39 = vadd.f32 %v2614_v38, %v2213_v37  ;;  %v1414_v40 = vpop.f32.mrf.mxu0  ;;  %v1815_v41 = vpop.f32.mrf.mxu1 }
 0x405   :  { %v1816_v42 = vadd.f32 %v1815_v41, %v1414_v40  ;;  %v514_v38 = vpop.permute.xlu0 %513 }
 0x406   :  { %2902 = vst [vmem:[#allocation2 + $0x618] sm:$0xff] %v2615_v39 }
 0x407   :  { %2903 = vst [vmem:[#allocation2 + $0x620] sm:$0xff] %v1816_v42  ;;  %3095 = vmatmul.msk.f32.gmra.mxu0 %vm755_vm4, %v3528_v50  ;;  %3223 = vmatmul.msk.f32.gmra.mxu1 %vm756_vm5, %v3528_v50 }
 0x408   :  { %3351 = vmatmul.msk.f32.gmra.mxu2 %vm755_vm4, %v3528_v50  ;;  %3479 = vmatmul.msk.f32.gmra.mxu3 %vm756_vm5, %v3528_v50  ;;  %vm771_vm4 = vcmp.eq.s32.totalorder %v3865_v44, %v511_v31  ;;  %vm772_vm5 = vcmp.eq.s32.totalorder %v3877_v48, %v511_v31 }
 0x40b   :  { %v2216_v45 = vpop.f32.mrf.mxu2  ;;  %v2617_v46 = vpop.f32.mrf.mxu3 }
 0x40c   :  { %v2618_v47 = vadd.f32 %v2617_v46, %v2216_v45  ;;  %v1417_v49 = vpop.f32.mrf.mxu0  ;;  %v1818_v51 = vpop.f32.mrf.mxu1 }
 0x40d   :  { %v1819_v52 = vadd.f32 %v1818_v51, %v1417_v49  ;;  %v517_v46 = vpop.permute.xlu1 %516 }
 0x40e   :  { %2904 = vst [vmem:[#allocation2 + $0x628] sm:$0xff] %v2618_v47 }
 0x40f   :  { %2905 = vst [vmem:[#allocation2 + $0x630] sm:$0xff] %v1819_v52  ;;  %3096 = vmatmul.msk.f32.gmra.mxu0 %vm757_vm6, %v3528_v50  ;;  %3224 = vmatmul.msk.f32.gmra.mxu1 %vm758_vm7, %v3528_v50 }
 0x410   :  { %3352 = vmatmul.msk.f32.gmra.mxu2 %vm757_vm6, %v3528_v50  ;;  %3480 = vmatmul.msk.f32.gmra.mxu3 %vm758_vm7, %v3528_v50  ;;  %vm773_vm6 = vcmp.eq.s32.totalorder %v3865_v44, %v514_v38  ;;  %vm774_vm7 = vcmp.eq.s32.totalorder %v3877_v48, %v514_v38 }
 0x413   :  { %v2219_v54 = vpop.f32.mrf.mxu2  ;;  %v2620_v55 = vpop.f32.mrf.mxu3 }
 0x414   :  { %v2621_v56 = vadd.f32 %v2620_v55, %v2219_v54  ;;  %v1420_v57 = vpop.f32.mrf.mxu0  ;;  %v1821_v58 = vpop.f32.mrf.mxu1 }
 0x415   :  { %v1822_v59 = vadd.f32 %v1821_v58, %v1420_v57  ;;  %v520_v55 = vpop.permute.xlu2 %519 }
 0x416   :  { %2906 = vst [vmem:[#allocation2 + $0x638] sm:$0xff] %v2621_v56 }
 0x417   :  { %2907 = vst [vmem:[#allocation2 + $0x640] sm:$0xff] %v1822_v59  ;;  %3097 = vmatmul.msk.f32.gmra.mxu0 %vm759_vm8, %v3528_v50  ;;  %3225 = vmatmul.msk.f32.gmra.mxu1 %vm760_vm9, %v3528_v50 }
 0x418   :  { %3353 = vmatmul.msk.f32.gmra.mxu2 %vm759_vm8, %v3528_v50  ;;  %3481 = vmatmul.msk.f32.gmra.mxu3 %vm760_vm9, %v3528_v50  ;;  %vm775_vm8 = vcmp.eq.s32.totalorder %v3865_v44, %v517_v46  ;;  %vm776_vm9 = vcmp.eq.s32.totalorder %v3877_v48, %v517_v46 }
 0x41b   :  { %v2222_v61 = vpop.f32.mrf.mxu2  ;;  %v2623_v62 = vpop.f32.mrf.mxu3 }
 0x41c   :  { %v2624_v63 = vadd.f32 %v2623_v62, %v2222_v61  ;;  %v1423_v0 = vpop.f32.mrf.mxu0  ;;  %v1824_v1 = vpop.f32.mrf.mxu1 }
 0x41d   :  { %v1825_v2 = vadd.f32 %v1824_v1, %v1423_v0  ;;  %v523_v62 = vpop.permute.xlu0 %522 }
 0x41e   :  { %2908 = vst [vmem:[#allocation2 + $0x648] sm:$0xff] %v2624_v63 }
 0x41f   :  { %2909 = vst [vmem:[#allocation2 + $0x650] sm:$0xff] %v1825_v2  ;;  %3098 = vmatmul.msk.f32.gmra.mxu0 %vm761_vm10, %v3528_v50  ;;  %3226 = vmatmul.msk.f32.gmra.mxu1 %vm762_vm11, %v3528_v50 }
 0x420   :  { %3354 = vmatmul.msk.f32.gmra.mxu2 %vm761_vm10, %v3528_v50  ;;  %3482 = vmatmul.msk.f32.gmra.mxu3 %vm762_vm11, %v3528_v50  ;;  %vm777_vm10 = vcmp.eq.s32.totalorder %v3865_v44, %v520_v55  ;;  %vm778_vm11 = vcmp.eq.s32.totalorder %v3877_v48, %v520_v55 }
 0x423   :  { %v2225_v4 = vpop.f32.mrf.mxu2  ;;  %v2626_v5 = vpop.f32.mrf.mxu3 }
 0x424   :  { %v2627_v6 = vadd.f32 %v2626_v5, %v2225_v4  ;;  %v1426_v7 = vpop.f32.mrf.mxu0  ;;  %v1827_v8 = vpop.f32.mrf.mxu1 }
 0x425   :  { %v1828_v9 = vadd.f32 %v1827_v8, %v1426_v7  ;;  %v526_v5 = vpop.permute.xlu1 %525 }
 0x426   :  { %2910 = vst [vmem:[#allocation2 + $0x658] sm:$0xff] %v2627_v6 }
 0x427   :  { %2911 = vst [vmem:[#allocation2 + $0x660] sm:$0xff] %v1828_v9  ;;  %3099 = vmatmul.msk.f32.gmra.mxu0 %vm763_vm12, %v3528_v50  ;;  %3227 = vmatmul.msk.f32.gmra.mxu1 %vm764_vm13, %v3528_v50 }
 0x428   :  { %3355 = vmatmul.msk.f32.gmra.mxu2 %vm763_vm12, %v3528_v50  ;;  %3483 = vmatmul.msk.f32.gmra.mxu3 %vm764_vm13, %v3528_v50  ;;  %vm779_vm12 = vcmp.eq.s32.totalorder %v3865_v44, %v523_v62  ;;  %vm780_vm13 = vcmp.eq.s32.totalorder %v3877_v48, %v523_v62 }
 0x42b   :  { %v2228_v11 = vpop.f32.mrf.mxu2  ;;  %v2629_v12 = vpop.f32.mrf.mxu3 }
 0x42c   :  { %v2630_v13 = vadd.f32 %v2629_v12, %v2228_v11  ;;  %v1429_v14 = vpop.f32.mrf.mxu0  ;;  %v1830_v15 = vpop.f32.mrf.mxu1 }
 0x42d   :  { %v1831_v16 = vadd.f32 %v1830_v15, %v1429_v14 }
 0x42e   :  { %2912 = vst [vmem:[#allocation2 + $0x668] sm:$0xff] %v2630_v13 }
 0x42f   :  { %2913 = vst [vmem:[#allocation2 + $0x670] sm:$0xff] %v1831_v16  ;;  %3100 = vmatmul.msk.f32.gmra.mxu0 %vm765_vm14, %v3528_v50  ;;  %3228 = vmatmul.msk.f32.gmra.mxu1 %vm766_vm15, %v3528_v50 }
 0x430   :  { %3356 = vmatmul.msk.f32.gmra.mxu2 %vm765_vm14, %v3528_v50  ;;  %3484 = vmatmul.msk.f32.gmra.mxu3 %vm766_vm15, %v3528_v50  ;;  %vm781_vm14 = vcmp.eq.s32.totalorder %v3865_v44, %v526_v5  ;;  %vm782_vm15 = vcmp.eq.s32.totalorder %v3877_v48, %v526_v5 }
 0x433   :  { %v2231_v18 = vpop.f32.mrf.mxu2  ;;  %v2632_v19 = vpop.f32.mrf.mxu3 }
 0x434   :  { %v2633_v20 = vadd.f32 %v2632_v19, %v2231_v18  ;;  %v1432_v21 = vpop.f32.mrf.mxu0  ;;  %v1833_v22 = vpop.f32.mrf.mxu1 }
 0x435   :  { %v1834_v23 = vadd.f32 %v1833_v22, %v1432_v21 }
 0x436   :  { %2914 = vst [vmem:[#allocation2 + $0x678] sm:$0xff] %v2633_v20 }
 0x437   :  { %2915 = vst [vmem:[#allocation2 + $0x680] sm:$0xff] %v1834_v23  ;;  %3101 = vmatmul.msk.f32.gmra.mxu0 %vm767_vm0, %v3528_v50  ;;  %3229 = vmatmul.msk.f32.gmra.mxu1 %vm768_vm1, %v3528_v50 }
 0x438   :  { %3357 = vmatmul.msk.f32.gmra.mxu2 %vm767_vm0, %v3528_v50  ;;  %3485 = vmatmul.msk.f32.gmra.mxu3 %vm768_vm1, %v3528_v50 }
 0x43b   :  { %v2234_v25 = vpop.f32.mrf.mxu2  ;;  %v2635_v26 = vpop.f32.mrf.mxu3 }
 0x43c   :  { %v2636_v27 = vadd.f32 %v2635_v26, %v2234_v25  ;;  %v1435_v28 = vpop.f32.mrf.mxu0  ;;  %v1836_v29 = vpop.f32.mrf.mxu1 }
 0x43d   :  { %v1837_v30 = vadd.f32 %v1836_v29, %v1435_v28 }
 0x43e   :  { %2916 = vst [vmem:[#allocation2 + $0x688] sm:$0xff] %v2636_v27 }
 0x43f   :  { %2917 = vst [vmem:[#allocation2 + $0x690] sm:$0xff] %v1837_v30  ;;  %3102 = vmatmul.msk.f32.gmra.mxu0 %vm769_vm2, %v3528_v50  ;;  %3230 = vmatmul.msk.f32.gmra.mxu1 %vm770_vm3, %v3528_v50 }
 0x440   :  { %3358 = vmatmul.msk.f32.gmra.mxu2 %vm769_vm2, %v3528_v50  ;;  %3486 = vmatmul.msk.f32.gmra.mxu3 %vm770_vm3, %v3528_v50 }
 0x443   :  { %v2237_v32 = vpop.f32.mrf.mxu2  ;;  %v2638_v33 = vpop.f32.mrf.mxu3 }
 0x444   :  { %v2639_v34 = vadd.f32 %v2638_v33, %v2237_v32  ;;  %v1438_v35 = vpop.f32.mrf.mxu0  ;;  %v1839_v36 = vpop.f32.mrf.mxu1 }
 0x445   :  { %v1840_v37 = vadd.f32 %v1839_v36, %v1438_v35 }
 0x446   :  { %2918 = vst [vmem:[#allocation2 + $0x698] sm:$0xff] %v2639_v34 }
 0x447   :  { %2919 = vst [vmem:[#allocation2 + $0x6a0] sm:$0xff] %v1840_v37  ;;  %3103 = vmatmul.msk.f32.gmra.mxu0 %vm771_vm4, %v3528_v50  ;;  %3231 = vmatmul.msk.f32.gmra.mxu1 %vm772_vm5, %v3528_v50 }
 0x448   :  { %3359 = vmatmul.msk.f32.gmra.mxu2 %vm771_vm4, %v3528_v50  ;;  %3487 = vmatmul.msk.f32.gmra.mxu3 %vm772_vm5, %v3528_v50 }
 0x44b   :  { %v2240_v39 = vpop.f32.mrf.mxu2  ;;  %v2641_v40 = vpop.f32.mrf.mxu3 }
 0x44c   :  { %v2642_v41 = vadd.f32 %v2641_v40, %v2240_v39  ;;  %v1441_v42 = vpop.f32.mrf.mxu0  ;;  %v1842_v43 = vpop.f32.mrf.mxu1 }
 0x44d   :  { %v1843_v45 = vadd.f32 %v1842_v43, %v1441_v42 }
 0x44e   :  { %2920 = vst [vmem:[#allocation2 + $0x6a8] sm:$0xff] %v2642_v41 }
 0x44f   :  { %2921 = vst [vmem:[#allocation2 + $0x6b0] sm:$0xff] %v1843_v45  ;;  %3104 = vmatmul.msk.f32.gmra.mxu0 %vm773_vm6, %v3528_v50  ;;  %3232 = vmatmul.msk.f32.gmra.mxu1 %vm774_vm7, %v3528_v50 }
 0x450   :  { %3360 = vmatmul.msk.f32.gmra.mxu2 %vm773_vm6, %v3528_v50  ;;  %3488 = vmatmul.msk.f32.gmra.mxu3 %vm774_vm7, %v3528_v50 }
 0x453   :  { %v2243_v47 = vpop.f32.mrf.mxu2  ;;  %v2644_v49 = vpop.f32.mrf.mxu3 }
 0x454   :  { %v2645_v51 = vadd.f32 %v2644_v49, %v2243_v47  ;;  %v1444_v52 = vpop.f32.mrf.mxu0  ;;  %v1845_v53 = vpop.f32.mrf.mxu1 }
 0x455   :  { %v1846_v54 = vadd.f32 %v1845_v53, %v1444_v52 }
 0x456   :  { %2922 = vst [vmem:[#allocation2 + $0x6b8] sm:$0xff] %v2645_v51 }
 0x457   :  { %2923 = vst [vmem:[#allocation2 + $0x6c0] sm:$0xff] %v1846_v54  ;;  %3105 = vmatmul.msk.f32.gmra.mxu0 %vm775_vm8, %v3528_v50  ;;  %3233 = vmatmul.msk.f32.gmra.mxu1 %vm776_vm9, %v3528_v50 }
 0x458   :  { %3361 = vmatmul.msk.f32.gmra.mxu2 %vm775_vm8, %v3528_v50  ;;  %3489 = vmatmul.msk.f32.gmra.mxu3 %vm776_vm9, %v3528_v50 }
 0x45b   :  { %v2246_v56 = vpop.f32.mrf.mxu2  ;;  %v2647_v57 = vpop.f32.mrf.mxu3 }
 0x45c   :  { %v2648_v58 = vadd.f32 %v2647_v57, %v2246_v56  ;;  %v1447_v59 = vpop.f32.mrf.mxu0  ;;  %v1848_v60 = vpop.f32.mrf.mxu1 }
 0x45d   :  { %v1849_v61 = vadd.f32 %v1848_v60, %v1447_v59 }
 0x45e   :  { %2924 = vst [vmem:[#allocation2 + $0x6c8] sm:$0xff] %v2648_v58 }
 0x45f   :  { %2925 = vst [vmem:[#allocation2 + $0x6d0] sm:$0xff] %v1849_v61  ;;  %3106 = vmatmul.msk.f32.gmra.mxu0 %vm777_vm10, %v3528_v50  ;;  %3234 = vmatmul.msk.f32.gmra.mxu1 %vm778_vm11, %v3528_v50 }
 0x460   :  { %3362 = vmatmul.msk.f32.gmra.mxu2 %vm777_vm10, %v3528_v50  ;;  %3490 = vmatmul.msk.f32.gmra.mxu3 %vm778_vm11, %v3528_v50 }
 0x463   :  { %v2249_v63 = vpop.f32.mrf.mxu2  ;;  %v2650_v0 = vpop.f32.mrf.mxu3 }
 0x464   :  { %v2651_v1 = vadd.f32 %v2650_v0, %v2249_v63  ;;  %v1450_v2 = vpop.f32.mrf.mxu0  ;;  %v1851_v3 = vpop.f32.mrf.mxu1 }
 0x465   :  { %v1852_v4 = vadd.f32 %v1851_v3, %v1450_v2 }
 0x466   :  { %2926 = vst [vmem:[#allocation2 + $0x6d8] sm:$0xff] %v2651_v1 }
 0x467   :  { %2927 = vst [vmem:[#allocation2 + $0x6e0] sm:$0xff] %v1852_v4  ;;  %3107 = vmatmul.msk.f32.gmra.mxu0 %vm779_vm12, %v3528_v50  ;;  %3235 = vmatmul.msk.f32.gmra.mxu1 %vm780_vm13, %v3528_v50 }
 0x468   :  { %3363 = vmatmul.msk.f32.gmra.mxu2 %vm779_vm12, %v3528_v50  ;;  %3491 = vmatmul.msk.f32.gmra.mxu3 %vm780_vm13, %v3528_v50 }
 0x46b   :  { %v2252_v6 = vpop.f32.mrf.mxu2  ;;  %v2653_v7 = vpop.f32.mrf.mxu3 }
 0x46c   :  { %v2654_v8 = vadd.f32 %v2653_v7, %v2252_v6  ;;  %v1453_v9 = vpop.f32.mrf.mxu0  ;;  %v1854_v10 = vpop.f32.mrf.mxu1 }
 0x46d   :  { %v1855_v11 = vadd.f32 %v1854_v10, %v1453_v9 }
 0x46e   :  { %2928 = vst [vmem:[#allocation2 + $0x6e8] sm:$0xff] %v2654_v8 }
 0x46f   :  { %2929 = vst [vmem:[#allocation2 + $0x6f0] sm:$0xff] %v1855_v11  ;;  %3108 = vmatmul.msk.f32.gmra.mxu0 %vm781_vm14, %v3528_v50  ;;  %3236 = vmatmul.msk.f32.gmra.mxu1 %vm782_vm15, %v3528_v50 }
 0x470   :  { %3364 = vmatmul.msk.f32.gmra.mxu2 %vm781_vm14, %v3528_v50  ;;  %3492 = vmatmul.msk.f32.gmra.mxu3 %vm782_vm15, %v3528_v50 }
 0x473   :  { %v2255_v12 = vpop.f32.mrf.mxu2  ;;  %v2656_v13 = vpop.f32.mrf.mxu3 }
 0x474   :  { %v2657_v14 = vadd.f32 %v2656_v13, %v2255_v12  ;;  %v1456_v15 = vpop.f32.mrf.mxu0  ;;  %v1857_v16 = vpop.f32.mrf.mxu1 }
 0x475   :  { %v1858_v17 = vadd.f32 %v1857_v16, %v1456_v15 }
 0x476   :  { %2930 = vst [vmem:[#allocation2 + $0x6f8] sm:$0xff] %v2657_v14 }
 0x477   :  { %2931 = vst [vmem:[#allocation2 + $0x700] sm:$0xff] %v1858_v17 }
 0x47b   :  { %v2258_v44 = vpop.f32.mrf.mxu2  ;;  %v2659_v48 = vpop.f32.mrf.mxu3 }
 0x47c   :  { %v2660_v18 = vadd.f32 %v2659_v48, %v2258_v44  ;;  %v1459_v19 = vpop.f32.mrf.mxu0  ;;  %v1860_v20 = vpop.f32.mrf.mxu1 }
 0x47d   :  { %v1861_v21 = vadd.f32 %v1860_v20, %v1459_v19 }
 0x47e   :  { %2932 = vst [vmem:[#allocation2 + $0x708] sm:$0xff] %v2660_v18 }
 0x47f   :  { %2933 = vst [vmem:[#allocation2 + $0x710] sm:$0xff] %v1861_v21 }
 0x483   :  { %v2261_v22 = vpop.f32.mrf.mxu2  ;;  %v2662_v23 = vpop.f32.mrf.mxu3 }
 0x484   :  { %v2663_v24 = vadd.f32 %v2662_v23, %v2261_v22  ;;  %v1462_v50 = vpop.f32.mrf.mxu0  ;;  %v1863_v25 = vpop.f32.mrf.mxu1 }
 0x485   :  { %v1864_v26 = vadd.f32 %v1863_v25, %v1462_v50 }
 0x486   :  { %2934 = vst [vmem:[#allocation2 + $0x718] sm:$0xff] %v2663_v24 }
 0x487   :  { %2935 = vst [vmem:[#allocation2 + $0x720] sm:$0xff] %v1864_v26 }
 0x48b   :  { %v2264_v27 = vpop.f32.mrf.mxu2  ;;  %v2665_v28 = vpop.f32.mrf.mxu3 }
 0x48c   :  { %v2666_v29 = vadd.f32 %v2665_v28, %v2264_v27  ;;  %v1465_v30 = vpop.f32.mrf.mxu0  ;;  %v1866_v31 = vpop.f32.mrf.mxu1 }
 0x48d   :  { %v1867_v32 = vadd.f32 %v1866_v31, %v1465_v30 }
 0x48e   :  { %2936 = vst [vmem:[#allocation2 + $0x728] sm:$0xff] %v2666_v29 }
 0x48f   :  { %2937 = vst [vmem:[#allocation2 + $0x730] sm:$0xff] %v1867_v32 }
 0x493   :  { %v2267_v33 = vpop.f32.mrf.mxu2  ;;  %v2668_v34 = vpop.f32.mrf.mxu3 }
 0x494   :  { %v2669_v35 = vadd.f32 %v2668_v34, %v2267_v33  ;;  %v1468_v36 = vpop.f32.mrf.mxu0  ;;  %v1869_v37 = vpop.f32.mrf.mxu1 }
 0x495   :  { %v1870_v38 = vadd.f32 %v1869_v37, %v1468_v36 }
 0x496   :  { %2938 = vst [vmem:[#allocation2 + $0x738] sm:$0xff] %v2669_v35 }
 0x497   :  { %2939 = vst [vmem:[#allocation2 + $0x740] sm:$0xff] %v1870_v38 }
 0x49b   :  { %v2270_v39 = vpop.f32.mrf.mxu2  ;;  %v2671_v40 = vpop.f32.mrf.mxu3 }
 0x49c   :  { %v2672_v41 = vadd.f32 %v2671_v40, %v2270_v39  ;;  %v1471_v42 = vpop.f32.mrf.mxu0  ;;  %v1872_v43 = vpop.f32.mrf.mxu1 }
 0x49d   :  { %v1873_v45 = vadd.f32 %v1872_v43, %v1471_v42 }
 0x49e   :  { %2940 = vst [vmem:[#allocation2 + $0x748] sm:$0xff] %v2672_v41 }
 0x49f   :  { %2941 = vst [vmem:[#allocation2 + $0x750] sm:$0xff] %v1873_v45 }
 0x4a3   :  { %v2273_v46 = vpop.f32.mrf.mxu2  ;;  %v2674_v47 = vpop.f32.mrf.mxu3 }
 0x4a4   :  { %v2675_v49 = vadd.f32 %v2674_v47, %v2273_v46  ;;  %v1474_v51 = vpop.f32.mrf.mxu0  ;;  %v1875_v52 = vpop.f32.mrf.mxu1 }
 0x4a5   :  { %v1876_v53 = vadd.f32 %v1875_v52, %v1474_v51 }
 0x4a6   :  { %2942 = vst [vmem:[#allocation2 + $0x758] sm:$0xff] %v2675_v49 }
 0x4a7   :  { %2943 = vst [vmem:[#allocation2 + $0x760] sm:$0xff] %v1876_v53 }
 0x4ab   :  { %v2276_v54 = vpop.f32.mrf.mxu2  ;;  %v2677_v55 = vpop.f32.mrf.mxu3 }
 0x4ac   :  { %v2678_v56 = vadd.f32 %v2677_v55, %v2276_v54  ;;  %v1477_v57 = vpop.f32.mrf.mxu0  ;;  %v1878_v58 = vpop.f32.mrf.mxu1 }
 0x4ad   :  { %v1879_v59 = vadd.f32 %v1878_v58, %v1477_v57 }
 0x4ae   :  { %2944 = vst [vmem:[#allocation2 + $0x768] sm:$0xff] %v2678_v56 }
 0x4af   :  { %2945 = vst [vmem:[#allocation2 + $0x770] sm:$0xff] %v1879_v59 }
 0x4b3   :  { %v2279_v60 = vpop.f32.mrf.mxu2  ;;  %v2680_v61 = vpop.f32.mrf.mxu3 }
 0x4b4   :  { %v2681_v62 = vadd.f32 %v2680_v61, %v2279_v60  ;;  %v1480_v63 = vpop.f32.mrf.mxu0  ;;  %v1881_v0 = vpop.f32.mrf.mxu1 }
 0x4b5   :  { %v1882_v1 = vadd.f32 %v1881_v0, %v1480_v63 }
 0x4b6   :  { %2946 = vst [vmem:[#allocation2 + $0x778] sm:$0xff] %v2681_v62 }
 0x4b7   :  { %2947 = vst [vmem:[#allocation2 + $0x780] sm:$0xff] %v1882_v1 }
 0x4bb   :  { %v2282_v2 = vpop.f32.mrf.mxu2  ;;  %v2683_v3 = vpop.f32.mrf.mxu3 }
 0x4bc   :  { %v2684_v4 = vadd.f32 %v2683_v3, %v2282_v2  ;;  %v1483_v5 = vpop.f32.mrf.mxu0  ;;  %v1884_v6 = vpop.f32.mrf.mxu1 }
 0x4bd   :  { %v1885_v7 = vadd.f32 %v1884_v6, %v1483_v5 }
 0x4be   :  { %2948 = vst [vmem:[#allocation2 + $0x788] sm:$0xff] %v2684_v4 }
 0x4bf   :  { %2949 = vst [vmem:[#allocation2 + $0x790] sm:$0xff] %v1885_v7 }
 0x4c3   :  { %v2285_v8 = vpop.f32.mrf.mxu2  ;;  %v2686_v9 = vpop.f32.mrf.mxu3 }
 0x4c4   :  { %v2687_v10 = vadd.f32 %v2686_v9, %v2285_v8  ;;  %v1486_v11 = vpop.f32.mrf.mxu0  ;;  %v1887_v12 = vpop.f32.mrf.mxu1 }
 0x4c5   :  { %v1888_v13 = vadd.f32 %v1887_v12, %v1486_v11 }
 0x4c6   :  { %2950 = vst [vmem:[#allocation2 + $0x798] sm:$0xff] %v2687_v10 }
 0x4c7   :  { %2951 = vst [vmem:[#allocation2 + $0x7a0] sm:$0xff] %v1888_v13 }
 0x4cb   :  { %v2288_v14 = vpop.f32.mrf.mxu2  ;;  %v2689_v15 = vpop.f32.mrf.mxu3 }
 0x4cc   :  { %v2690_v16 = vadd.f32 %v2689_v15, %v2288_v14  ;;  %v1489_v17 = vpop.f32.mrf.mxu0  ;;  %v1890_v44 = vpop.f32.mrf.mxu1 }
 0x4cd   :  { %v1891_v48 = vadd.f32 %v1890_v44, %v1489_v17 }
 0x4ce   :  { %2952 = vst [vmem:[#allocation2 + $0x7a8] sm:$0xff] %v2690_v16 }
 0x4cf   :  { %2953 = vst [vmem:[#allocation2 + $0x7b0] sm:$0xff] %v1891_v48 }
 0x4d3   :  { %v2291_v18 = vpop.f32.mrf.mxu2  ;;  %v2692_v19 = vpop.f32.mrf.mxu3 }
 0x4d4   :  { %v2693_v20 = vadd.f32 %v2692_v19, %v2291_v18  ;;  %v1492_v21 = vpop.f32.mrf.mxu0  ;;  %v1893_v22 = vpop.f32.mrf.mxu1 }
 0x4d5   :  { %v1894_v23 = vadd.f32 %v1893_v22, %v1492_v21 }
 0x4d6   :  { %2954 = vst [vmem:[#allocation2 + $0x7b8] sm:$0xff] %v2693_v20 }
 0x4d7   :  { %2955 = vst [vmem:[#allocation2 + $0x7c0] sm:$0xff] %v1894_v23 }
 0x4db   :  { %v2294_v24 = vpop.f32.mrf.mxu2  ;;  %v2695_v50 = vpop.f32.mrf.mxu3 }
 0x4dc   :  { %v2696_v25 = vadd.f32 %v2695_v50, %v2294_v24  ;;  %v1495_v26 = vpop.f32.mrf.mxu0  ;;  %v1896_v27 = vpop.f32.mrf.mxu1 }
 0x4dd   :  { %v1897_v28 = vadd.f32 %v1896_v27, %v1495_v26 }
 0x4de   :  { %2956 = vst [vmem:[#allocation2 + $0x7c8] sm:$0xff] %v2696_v25 }
 0x4df   :  { %2957 = vst [vmem:[#allocation2 + $0x7d0] sm:$0xff] %v1897_v28 }
 0x4e3   :  { %v2297_v29 = vpop.f32.mrf.mxu2  ;;  %v2698_v30 = vpop.f32.mrf.mxu3 }
 0x4e4   :  { %v2699_v31 = vadd.f32 %v2698_v30, %v2297_v29  ;;  %v1498_v32 = vpop.f32.mrf.mxu0  ;;  %v1899_v33 = vpop.f32.mrf.mxu1 }
 0x4e5   :  { %v1900_v34 = vadd.f32 %v1899_v33, %v1498_v32 }
 0x4e6   :  { %2958 = vst [vmem:[#allocation2 + $0x7d8] sm:$0xff] %v2699_v31 }
 0x4e7   :  { %2959 = vst [vmem:[#allocation2 + $0x7e0] sm:$0xff] %v1900_v34 }
 0x4eb   :  { %v2300_v35 = vpop.f32.mrf.mxu2  ;;  %v2701_v36 = vpop.f32.mrf.mxu3 }
 0x4ec   :  { %v2702_v37 = vadd.f32 %v2701_v36, %v2300_v35  ;;  %v1501_v38 = vpop.f32.mrf.mxu0  ;;  %v1902_v39 = vpop.f32.mrf.mxu1 }
 0x4ed   :  { %v1903_v40 = vadd.f32 %v1902_v39, %v1501_v38 }
 0x4ee   :  { %2960 = vst [vmem:[#allocation2 + $0x7e8] sm:$0xff] %v2702_v37 }
 0x4ef   :  { %2961 = vst [vmem:[#allocation2 + $0x7f0] sm:$0xff] %v1903_v40 }
 0x4f3   :  { %v2303_v41 = vpop.f32.mrf.mxu2  ;;  %v2704_v42 = vpop.f32.mrf.mxu3 }
 0x4f4   :  { %v2705_v43 = vadd.f32 %v2704_v42, %v2303_v41 }
 0x4f6   :  { %2962 = vst [vmem:[#allocation2 + $0x7f8] sm:$0xff] %v2705_v43 }
 0x4f7   :  { %2975 = dma.vmem_to_hbm [thread:$0]  %s2968_s22, 32768, %s2970_s25, [#allocation3], %s3530_s26, %s3530_s26, %s3531_s27  }
 0x4f8   :  { %3525 = dma.done.wait [#allocation3], 32768  }
 0x4f9   :  { %3526 = vsyncadd [#allocation3], 4294934528 }
 0x4fa   :  { %2980 = vsyncpa [#allocation3], 1 }

</bundles_post_ra>
